<compile_context>
chip_gen: v7x
topology: tpu7x:2x2x1
jax: 0.10.0
libtpu: 0.0.40
codegen_flags: <defaults>
</compile_context>

<pallas_src>
import functools

import jax
import jax.numpy as jnp
from jax.experimental import pallas as pl
from jax.experimental.pallas import tpu as pltpu


# Architecture fixed by the PyTorch module: (kernel, stride, out_channels)
_CONV_CFG = ((8, 4, 32), (4, 2, 64), (3, 1, 64))
_HIDDEN = 512

_LANE = 128      # TPU lane width
_SUBLANE = 8     # f32 sublane tile


def _cdiv(a, b):
    return (a + b - 1) // b


def _round_up(a, b):
    return _cdiv(a, b) * b


def _conv_out(n, k, s):
    return (n - k) // s + 1


def _arch(inputs_shape, num_actions):
    """Static geometry of the fused network for a given input shape."""
    c, h, w = inputs_shape
    convs = []
    ch, hh, ww = c, h, w
    for (k, s, co) in _CONV_CFG:
        ho, wo = _conv_out(hh, k, s), _conv_out(ww, k, s)
        assert ho >= 1 and wo >= 1, "input too small for the conv stack"
        in_row = ww * ch                       # one input row, (w, c) order
        convs.append(dict(
            k=k, s=s, cin=ch, cout=co, w_in=ww, h_out=ho, w_out=wo,
            in_row=in_row,
            seg=_round_up(in_row, _LANE),      # lane-aligned segment per tap row
            out_row=wo * co,
            m=_round_up(ho, _SUBLANE),         # sublane-padded matmul M
        ))
        ch, hh, ww = co, ho, wo
    feat = hh * ww * ch
    return dict(conv=convs, h3=hh, w3=ww, c3=ch, feat=feat,
                feat_seg=_round_up(ww * ch, _LANE),
                hidden=_HIDDEN,
                a_pad=_round_up(num_actions, _LANE),
                num_actions=num_actions)


# ----------------------------------------------------------------------------
# Parameter init (same convention as before: HWIO convs, (in, out) linears)
# ----------------------------------------------------------------------------
def init_params(key, inputs_shape, num_actions):
    a = _arch(inputs_shape, num_actions)
    ks = jax.random.split(key, 5)

    def conv_w(k, kh, kw, cin, cout):
        return (jax.random.normal(k, (kh, kw, cin, cout), jnp.float32)
                / jnp.sqrt(kh * kw * cin))

    def lin_w(k, din, dout):
        return jax.random.normal(k, (din, dout), jnp.float32) / jnp.sqrt(din)

    cins = [inputs_shape[0], 32, 64]
    p = {}
    for i, (kk, _, co) in enumerate(_CONV_CFG, start=1):
        p[f"w{i}"] = conv_w(ks[i - 1], kk, kk, cins[i - 1], co)
        p[f"b{i}"] = jnp.zeros((co,), jnp.float32)
    p["wf1"] = lin_w(ks[3], a["feat"], _HIDDEN)
    p["bf1"] = jnp.zeros((_HIDDEN,), jnp.float32)
    p["wf2"] = lin_w(ks[4], _HIDDEN, num_actions)
    p["bf2"] = jnp.zeros((num_actions,), jnp.float32)
    return p


# ----------------------------------------------------------------------------
# Weight packing: conv -> lane-padded block-Toeplitz matmul operands (bf16)
# ----------------------------------------------------------------------------
def _pack_conv(w, b, d):
    kh, kw, cin, cout = w.shape
    big = jnp.zeros((kh, d["w_in"], cin, d["w_out"], cout), jnp.float32)
    for ow in range(d["w_out"]):
        big = big.at[:, d["s"] * ow:d["s"] * ow + kw, :, ow, :].set(w)
    big = big.reshape(kh, d["w_in"] * cin, d["w_out"] * cout)
    big = jnp.pad(big, ((0, 0), (0, d["seg"] - d["w_in"] * cin), (0, 0)))
    big = big.reshape(kh * d["seg"], d["w_out"] * cout).astype(jnp.bfloat16)
    bias = jnp.tile(b, d["w_out"]).reshape(1, d["w_out"] * cout).astype(jnp.float32)
    return big, bias


def pack_params(params, inputs_shape, num_actions):
    a = _arch(inputs_shape, num_actions)
    packed = {}
    for i in range(3):
        wb, bb = _pack_conv(params[f"w{i + 1}"], params[f"b{i + 1}"], a["conv"][i])
        packed[f"w{i + 1}"] = wb
        packed[f"b{i + 1}"] = bb

    # fc1: rows are features in (h3, w3, c3) order; pad each (w3*c3) row-group
    # to a lane multiple so the in-kernel feature gather is 128-aligned.
    r3 = a["w3"] * a["c3"]
    wf1 = params["wf1"].reshape(a["h3"], r3, a["hidden"])
    wf1 = jnp.pad(wf1, ((0, 0), (0, a["feat_seg"] - r3), (0, 0)))
    packed["wf1"] = wf1.reshape(a["h3"] * a["feat_seg"], a["hidden"]).astype(jnp.bfloat16)
    packed["bf1"] = params["bf1"].reshape(1, a["hidden"]).astype(jnp.float32)

    # fc2: pad num_actions -> a_pad (128) so the final HBM store is lane-dense.
    pad_n = a["a_pad"] - num_actions
    packed["wf2"] = jnp.pad(params["wf2"], ((0, 0), (0, pad_n))).astype(jnp.bfloat16)
    packed["bf2"] = jnp.pad(params["bf2"], (0, pad_n)).reshape(1, a["a_pad"]).astype(jnp.float32)
    return packed


# ----------------------------------------------------------------------------
# The fused kernel (one image per grid step; everything VMEM-resident)
# ----------------------------------------------------------------------------
def _fused_forward_kernel(x_ref, w1_ref, b1_ref, w2_ref, b2_ref, w3_ref, b3_ref,
                          wf1_ref, bf1_ref, wf2_ref, bf2_ref, o_ref,
                          x1_s, x2_s, x3_s, xf_s, *, arch):
    c1, c2, c3 = arch["conv"]

    def mm(x, w_ref_, b_ref_, relu):
        # bf16 MXU inputs, f32 accumulate, f32 bias + ReLU epilogue.
        acc = jnp.dot(x.astype(jnp.bfloat16), w_ref_[...],
                      preferred_element_type=jnp.float32)
        acc = acc + b_ref_[...]
        return jnp.maximum(acc, 0.0) if relu else acc

    # Zero the gather scratch: the lane-padding columns inside each segment
    # face zero weight rows, so they must hold 0.0 (never garbage/NaN).
    x1_s[...] = jnp.zeros_like(x1_s)
    x2_s[...] = jnp.zeros_like(x2_s)
    x3_s[...] = jnp.zeros_like(x3_s)
    xf_s[...] = jnp.zeros_like(xf_s)

    def gather_rows(dst, src_row, d):
        # dst[oh, i*seg : i*seg + in_row] = input row (s*oh + i); static copies.
        for oh in range(d["h_out"]):
            for i in range(d["k"]):
                dst[oh:oh + 1, i * d["seg"]:i * d["seg"] + d["in_row"]] = \
                    src_row(d["s"] * oh + i)

    # conv1: im2col row-window gather straight from the VMEM-resident image.
    gather_rows(x1_s, lambda r: x_ref[0, r:r + 1, :], c1)
    a1 = mm(x1_s[...], w1_ref, b1_ref, relu=True)        # (M1, w1_out*32)

    # conv2
    gather_rows(x2_s, lambda r: a1[r:r + 1, :], c2)
    a2 = mm(x2_s[...], w2_ref, b2_ref, relu=True)        # (M2, w2_out*64)

    # conv3
    gather_rows(x3_s, lambda r: a2[r:r + 1, :], c3)
    a3 = mm(x3_s[...], w3_ref, b3_ref, relu=True)        # (M3, w3_out*64)

    # Flatten conv3 rows -> one (HWC-ordered) feature row, lane-aligned.
    r3 = arch["w3"] * arch["c3"]
    for r in range(arch["h3"]):
        xf_s[0:1, r * arch["feat_seg"]:r * arch["feat_seg"] + r3] = a3[r:r + 1, :]

    h = mm(xf_s[...], wf1_ref, bf1_ref, relu=True)       # (8, 512)
    q = mm(h, wf2_ref, bf2_ref, relu=False)              # (8, a_pad)
    o_ref[0, :, :] = q                                   # full (8,128) f32 tile


# ----------------------------------------------------------------------------
# Wrapper
# ----------------------------------------------------------------------------
def network_forward(packed, x_nchw, num_actions):
    batch, c, h, w = x_nchw.shape
    arch = _arch((c, h, w), num_actions)
    c1, c2, c3 = arch["conv"]
    a_pad = arch["a_pad"]

    # NCHW -> NHWC -> (B, H, W*C).  One input transpose; no im2col duplication
    # in HBM (patch extraction happens inside the kernel, in VMEM).
    x_rows = jnp.transpose(x_nchw, (0, 2, 3, 1)).astype(jnp.float32).reshape(batch, h, w * c)

    operands = [x_rows,
                packed["w1"], packed["b1"], packed["w2"], packed["b2"],
                packed["w3"], packed["b3"], packed["wf1"], packed["bf1"],
                packed["wf2"], packed["bf2"]]

    in_specs = [pl.BlockSpec((1, h, w * c), lambda i: (i, 0, 0))]
    in_specs += [pl.BlockSpec(op.shape, lambda i: (0, 0)) for op in operands[1:]]
    out_spec = pl.BlockSpec((1, _SUBLANE, a_pad), lambda i: (i, 0, 0))

    scratch = [
        pltpu.VMEM((c1["m"], c1["k"] * c1["seg"]), jnp.float32),
        pltpu.VMEM((c2["m"], c2["k"] * c2["seg"]), jnp.float32),
        pltpu.VMEM((c3["m"], c3["k"] * c3["seg"]), jnp.float32),
        pltpu.VMEM((_SUBLANE, arch["h3"] * arch["feat_seg"]), jnp.float32),
    ]

    flops = 2 * batch * (
        c1["m"] * c1["k"] * c1["seg"] * c1["out_row"]
        + c2["m"] * c2["k"] * c2["seg"] * c2["out_row"]
        + c3["m"] * c3["k"] * c3["seg"] * c3["out_row"]
        + _SUBLANE * arch["h3"] * arch["feat_seg"] * arch["hidden"]
        + _SUBLANE * arch["hidden"] * a_pad)
    bytes_accessed = (x_rows.size * 4
                      + sum(int(op.size) * op.dtype.itemsize for op in operands[1:])
                      + batch * _SUBLANE * a_pad * 4)

    out = pl.pallas_call(
        functools.partial(_fused_forward_kernel, arch=arch),
        out_shape=jax.ShapeDtypeStruct((batch, _SUBLANE, a_pad), jnp.float32),
        grid_spec=pltpu.PrefetchScalarGridSpec(
            num_scalar_prefetch=0,
            grid=(batch,),
            in_specs=in_specs,
            out_specs=out_spec,
            scratch_shapes=scratch),
        compiler_params=pltpu.CompilerParams(
            dimension_semantics=("parallel",)),
        cost_estimate=pl.CostEstimate(flops=flops, transcendentals=0,
                                      bytes_accessed=bytes_accessed),
    )(*operands)

    return out[:, 0, :num_actions]


# ----------------------------------------------------------------------------
# Plain-JAX reference (for a sanity check only)
# ----------------------------------------------------------------------------
def reference_forward(params, x_nchw):
    x = jnp.transpose(x_nchw, (0, 2, 3, 1)).astype(jnp.float32)
    for i, (k, s, _) in enumerate(_CONV_CFG, start=1):
        x = jax.lax.conv_general_dilated(
            x, params[f"w{i}"], (s, s), "VALID",
            dimension_numbers=("NHWC", "HWIO", "NHWC"))
        x = jax.nn.relu(x + params[f"b{i}"])
    x = x.reshape(x.shape[0], -1)                 # (h, w, c) flatten order
    x = jax.nn.relu(x @ params["wf1"] + params["bf1"])
    return x @ params["wf2"] + params["bf2"]


if __name__ == "__main__":
    key = jax.random.PRNGKey(0)
    inputs_shape = (4, 36, 36)      # (C, H, W): small Atari-style frame stack
    num_actions = 6
    batch = 2

    kx, kp = jax.random.split(key)
    x = jax.random.normal(kx, (batch,) + inputs_shape, jnp.float32)
    params = init_params(kp, inputs_shape, num_actions)
    packed = pack_params(params, inputs_shape, num_actions)

    fwd = jax.jit(functools.partial(network_forward, num_actions=num_actions))
    out = fwd(packed, x)
    jax.block_until_ready(out)

    assert out.shape == (batch, num_actions), out.shape
    assert out.dtype == jnp.float32

    # Sanity check vs. plain JAX (loose tolerance: bf16 MXU inputs).
    ref = jax.jit(reference_forward)(params, x)
    err = float(jnp.max(jnp.abs(out - ref)))
    assert err < 0.2, f"max abs error vs reference too large: {err}"

    print("KERNEL_OK")
</pallas_src>

<mosaic_0001>
module attributes {stable_mosaic.version = 11 : i64} {
  func.func @_fused_forward_kernel(%arg0: i32, %arg1: memref<1x36x144xf32, #tpu.memory_space<vmem>>, %arg2: memref<2048x256xbf16, #tpu.memory_space<vmem>>, %arg3: memref<1x256xf32, #tpu.memory_space<vmem>>, %arg4: memref<1024x192xbf16, #tpu.memory_space<vmem>>, %arg5: memref<1x192xf32, #tpu.memory_space<vmem>>, %arg6: memref<768x64xbf16, #tpu.memory_space<vmem>>, %arg7: memref<1x64xf32, #tpu.memory_space<vmem>>, %arg8: memref<128x512xbf16, #tpu.memory_space<vmem>>, %arg9: memref<1x512xf32, #tpu.memory_space<vmem>>, %arg10: memref<512x128xbf16, #tpu.memory_space<vmem>>, %arg11: memref<1x128xf32, #tpu.memory_space<vmem>>, %arg12: memref<1x8x128xf32, #tpu.memory_space<vmem>>, %arg13: memref<8x2048xf32, #tpu.memory_space<vmem>>, %arg14: memref<8x1024xf32, #tpu.memory_space<vmem>>, %arg15: memref<8x768xf32, #tpu.memory_space<vmem>>, %arg16: memref<8x128xf32, #tpu.memory_space<vmem>>) attributes {dimension_semantics = [#tpu.dimension_semantics<parallel>], iteration_bounds = array<i64: 2>, scalar_prefetch = 0 : i64, scratch_operands = 4 : i64, tpu.core_type = #tpu.core_type<tc>, window_params = [{transform_indices = @transform_0, window_bounds = array<i64: 1, 36, 144>}, {pipeline_mode = #tpu.pipeline_mode<synchronous>, transform_indices = @transform_1, window_bounds = array<i64: 2048, 256>}, {pipeline_mode = #tpu.pipeline_mode<synchronous>, transform_indices = @transform_2, window_bounds = array<i64: 1, 256>}, {pipeline_mode = #tpu.pipeline_mode<synchronous>, transform_indices = @transform_3, window_bounds = array<i64: 1024, 192>}, {pipeline_mode = #tpu.pipeline_mode<synchronous>, transform_indices = @transform_4, window_bounds = array<i64: 1, 192>}, {pipeline_mode = #tpu.pipeline_mode<synchronous>, transform_indices = @transform_5, window_bounds = array<i64: 768, 64>}, {pipeline_mode = #tpu.pipeline_mode<synchronous>, transform_indices = @transform_6, window_bounds = array<i64: 1, 64>}, {pipeline_mode = #tpu.pipeline_mode<synchronous>, transform_indices = @transform_7, window_bounds = array<i64: 128, 512>}, {pipeline_mode = #tpu.pipeline_mode<synchronous>, transform_indices = @transform_8, window_bounds = array<i64: 1, 512>}, {pipeline_mode = #tpu.pipeline_mode<synchronous>, transform_indices = @transform_9, window_bounds = array<i64: 512, 128>}, {pipeline_mode = #tpu.pipeline_mode<synchronous>, transform_indices = @transform_10, window_bounds = array<i64: 1, 128>}, {transform_indices = @transform_11, window_bounds = array<i64: 1, 8, 128>}]} {
    %cst = arith.constant 0.000000e+00 : f32
    %0 = vector.broadcast %cst : f32 to vector<8x2048xf32>
    %c0 = arith.constant 0 : index
    %c0_0 = arith.constant 0 : index
    %1 = vector.load %arg13[%c0, %c0_0] : memref<8x2048xf32, #tpu.memory_space<vmem>>, vector<8x2048xf32>
    tpu.vector_store %arg13[%c0, %c0_0], %0 {strides = array<i32>} : memref<8x2048xf32, #tpu.memory_space<vmem>>, vector<8x2048xf32>,
    %cst_1 = arith.constant 0.000000e+00 : f32
    %2 = vector.broadcast %cst_1 : f32 to vector<8x1024xf32>
    %c0_2 = arith.constant 0 : index
    %c0_3 = arith.constant 0 : index
    %3 = vector.load %arg14[%c0_2, %c0_3] : memref<8x1024xf32, #tpu.memory_space<vmem>>, vector<8x1024xf32>
    tpu.vector_store %arg14[%c0_2, %c0_3], %2 {strides = array<i32>} : memref<8x1024xf32, #tpu.memory_space<vmem>>, vector<8x1024xf32>,
    %cst_4 = arith.constant 0.000000e+00 : f32
    %4 = vector.broadcast %cst_4 : f32 to vector<8x768xf32>
    %c0_5 = arith.constant 0 : index
    %c0_6 = arith.constant 0 : index
    %5 = vector.load %arg15[%c0_5, %c0_6] : memref<8x768xf32, #tpu.memory_space<vmem>>, vector<8x768xf32>
    tpu.vector_store %arg15[%c0_5, %c0_6], %4 {strides = array<i32>} : memref<8x768xf32, #tpu.memory_space<vmem>>, vector<8x768xf32>,
    %cst_7 = arith.constant 0.000000e+00 : f32
    %6 = vector.broadcast %cst_7 : f32 to vector<8x128xf32>
    %c0_8 = arith.constant 0 : index
    %c0_9 = arith.constant 0 : index
    %7 = vector.load %arg16[%c0_8, %c0_9] : memref<8x128xf32, #tpu.memory_space<vmem>>, vector<8x128xf32>
    tpu.vector_store %arg16[%c0_8, %c0_9], %6 {strides = array<i32>} : memref<8x128xf32, #tpu.memory_space<vmem>>, vector<8x128xf32>,
    %c0_10 = arith.constant 0 : index
    %c0_11 = arith.constant 0 : index
    %c0_12 = arith.constant 0 : index
    %8 = vector.load %arg1[%c0_10, %c0_11, %c0_12] : memref<1x36x144xf32, #tpu.memory_space<vmem>>, vector<1x1x144xf32>
    %9 = vector.shape_cast %8 : vector<1x1x144xf32> to vector<1x144xf32>
    %c0_13 = arith.constant 0 : index
    %c0_14 = arith.constant 0 : index
    %10 = vector.load %arg13[%c0_13, %c0_14] : memref<8x2048xf32, #tpu.memory_space<vmem>>, vector<1x144xf32>
    tpu.vector_store %arg13[%c0_13, %c0_14], %9 {strides = array<i32>} : memref<8x2048xf32, #tpu.memory_space<vmem>>, vector<1x144xf32>,
    %c0_15 = arith.constant 0 : index
    %c1 = arith.constant 1 : index
    %c0_16 = arith.constant 0 : index
    %11 = vector.load %arg1[%c0_15, %c1, %c0_16] : memref<1x36x144xf32, #tpu.memory_space<vmem>>, vector<1x1x144xf32>
    %12 = vector.shape_cast %11 : vector<1x1x144xf32> to vector<1x144xf32>
    %c0_17 = arith.constant 0 : index
    %c256 = arith.constant 256 : index
    %13 = vector.load %arg13[%c0_17, %c256] : memref<8x2048xf32, #tpu.memory_space<vmem>>, vector<1x144xf32>
    tpu.vector_store %arg13[%c0_17, %c256], %12 {strides = array<i32>} : memref<8x2048xf32, #tpu.memory_space<vmem>>, vector<1x144xf32>,
    %c0_18 = arith.constant 0 : index
    %c2 = arith.constant 2 : index
    %c0_19 = arith.constant 0 : index
    %14 = vector.load %arg1[%c0_18, %c2, %c0_19] : memref<1x36x144xf32, #tpu.memory_space<vmem>>, vector<1x1x144xf32>
    %15 = vector.shape_cast %14 : vector<1x1x144xf32> to vector<1x144xf32>
    %c0_20 = arith.constant 0 : index
    %c512 = arith.constant 512 : index
    %16 = vector.load %arg13[%c0_20, %c512] : memref<8x2048xf32, #tpu.memory_space<vmem>>, vector<1x144xf32>
    tpu.vector_store %arg13[%c0_20, %c512], %15 {strides = array<i32>} : memref<8x2048xf32, #tpu.memory_space<vmem>>, vector<1x144xf32>,
    %c0_21 = arith.constant 0 : index
    %c3 = arith.constant 3 : index
    %c0_22 = arith.constant 0 : index
    %17 = vector.load %arg1[%c0_21, %c3, %c0_22] : memref<1x36x144xf32, #tpu.memory_space<vmem>>, vector<1x1x144xf32>
    %18 = vector.shape_cast %17 : vector<1x1x144xf32> to vector<1x144xf32>
    %c0_23 = arith.constant 0 : index
    %c768 = arith.constant 768 : index
    %19 = vector.load %arg13[%c0_23, %c768] : memref<8x2048xf32, #tpu.memory_space<vmem>>, vector<1x144xf32>
    tpu.vector_store %arg13[%c0_23, %c768], %18 {strides = array<i32>} : memref<8x2048xf32, #tpu.memory_space<vmem>>, vector<1x144xf32>,
    %c0_24 = arith.constant 0 : index
    %c4 = arith.constant 4 : index
    %c0_25 = arith.constant 0 : index
    %20 = vector.load %arg1[%c0_24, %c4, %c0_25] : memref<1x36x144xf32, #tpu.memory_space<vmem>>, vector<1x1x144xf32>
    %21 = vector.shape_cast %20 : vector<1x1x144xf32> to vector<1x144xf32>
    %c0_26 = arith.constant 0 : index
    %c1024 = arith.constant 1024 : index
    %22 = vector.load %arg13[%c0_26, %c1024] : memref<8x2048xf32, #tpu.memory_space<vmem>>, vector<1x144xf32>
    tpu.vector_store %arg13[%c0_26, %c1024], %21 {strides = array<i32>} : memref<8x2048xf32, #tpu.memory_space<vmem>>, vector<1x144xf32>,
    %c0_27 = arith.constant 0 : index
    %c5 = arith.constant 5 : index
    %c0_28 = arith.constant 0 : index
    %23 = vector.load %arg1[%c0_27, %c5, %c0_28] : memref<1x36x144xf32, #tpu.memory_space<vmem>>, vector<1x1x144xf32>
    %24 = vector.shape_cast %23 : vector<1x1x144xf32> to vector<1x144xf32>
    %c0_29 = arith.constant 0 : index
    %c1280 = arith.constant 1280 : index
    %25 = vector.load %arg13[%c0_29, %c1280] : memref<8x2048xf32, #tpu.memory_space<vmem>>, vector<1x144xf32>
    tpu.vector_store %arg13[%c0_29, %c1280], %24 {strides = array<i32>} : memref<8x2048xf32, #tpu.memory_space<vmem>>, vector<1x144xf32>,
    %c0_30 = arith.constant 0 : index
    %c6 = arith.constant 6 : index
    %c0_31 = arith.constant 0 : index
    %26 = vector.load %arg1[%c0_30, %c6, %c0_31] : memref<1x36x144xf32, #tpu.memory_space<vmem>>, vector<1x1x144xf32>
    %27 = vector.shape_cast %26 : vector<1x1x144xf32> to vector<1x144xf32>
    %c0_32 = arith.constant 0 : index
    %c1536 = arith.constant 1536 : index
    %28 = vector.load %arg13[%c0_32, %c1536] : memref<8x2048xf32, #tpu.memory_space<vmem>>, vector<1x144xf32>
    tpu.vector_store %arg13[%c0_32, %c1536], %27 {strides = array<i32>} : memref<8x2048xf32, #tpu.memory_space<vmem>>, vector<1x144xf32>,
    %c0_33 = arith.constant 0 : index
    %c7 = arith.constant 7 : index
    %c0_34 = arith.constant 0 : index
    %29 = vector.load %arg1[%c0_33, %c7, %c0_34] : memref<1x36x144xf32, #tpu.memory_space<vmem>>, vector<1x1x144xf32>
    %30 = vector.shape_cast %29 : vector<1x1x144xf32> to vector<1x144xf32>
    %c0_35 = arith.constant 0 : index
    %c1792 = arith.constant 1792 : index
    %31 = vector.load %arg13[%c0_35, %c1792] : memref<8x2048xf32, #tpu.memory_space<vmem>>, vector<1x144xf32>
    tpu.vector_store %arg13[%c0_35, %c1792], %30 {strides = array<i32>} : memref<8x2048xf32, #tpu.memory_space<vmem>>, vector<1x144xf32>,
    %c0_36 = arith.constant 0 : index
    %c4_37 = arith.constant 4 : index
    %c0_38 = arith.constant 0 : index
    %32 = vector.load %arg1[%c0_36, %c4_37, %c0_38] : memref<1x36x144xf32, #tpu.memory_space<vmem>>, vector<1x1x144xf32>
    %33 = vector.shape_cast %32 : vector<1x1x144xf32> to vector<1x144xf32>
    %c1_39 = arith.constant 1 : index
    %c0_40 = arith.constant 0 : index
    %34 = vector.load %arg13[%c1_39, %c0_40] : memref<8x2048xf32, #tpu.memory_space<vmem>>, vector<1x144xf32>
    tpu.vector_store %arg13[%c1_39, %c0_40], %33 {strides = array<i32>} : memref<8x2048xf32, #tpu.memory_space<vmem>>, vector<1x144xf32>,
    %c0_41 = arith.constant 0 : index
    %c5_42 = arith.constant 5 : index
    %c0_43 = arith.constant 0 : index
    %35 = vector.load %arg1[%c0_41, %c5_42, %c0_43] : memref<1x36x144xf32, #tpu.memory_space<vmem>>, vector<1x1x144xf32>
    %36 = vector.shape_cast %35 : vector<1x1x144xf32> to vector<1x144xf32>
    %c1_44 = arith.constant 1 : index
    %c256_45 = arith.constant 256 : index
    %37 = vector.load %arg13[%c1_44, %c256_45] : memref<8x2048xf32, #tpu.memory_space<vmem>>, vector<1x144xf32>
    tpu.vector_store %arg13[%c1_44, %c256_45], %36 {strides = array<i32>} : memref<8x2048xf32, #tpu.memory_space<vmem>>, vector<1x144xf32>,
    %c0_46 = arith.constant 0 : index
    %c6_47 = arith.constant 6 : index
    %c0_48 = arith.constant 0 : index
    %38 = vector.load %arg1[%c0_46, %c6_47, %c0_48] : memref<1x36x144xf32, #tpu.memory_space<vmem>>, vector<1x1x144xf32>
    %39 = vector.shape_cast %38 : vector<1x1x144xf32> to vector<1x144xf32>
    %c1_49 = arith.constant 1 : index
    %c512_50 = arith.constant 512 : index
    %40 = vector.load %arg13[%c1_49, %c512_50] : memref<8x2048xf32, #tpu.memory_space<vmem>>, vector<1x144xf32>
    tpu.vector_store %arg13[%c1_49, %c512_50], %39 {strides = array<i32>} : memref<8x2048xf32, #tpu.memory_space<vmem>>, vector<1x144xf32>,
    %c0_51 = arith.constant 0 : index
    %c7_52 = arith.constant 7 : index
    %c0_53 = arith.constant 0 : index
    %41 = vector.load %arg1[%c0_51, %c7_52, %c0_53] : memref<1x36x144xf32, #tpu.memory_space<vmem>>, vector<1x1x144xf32>
    %42 = vector.shape_cast %41 : vector<1x1x144xf32> to vector<1x144xf32>
    %c1_54 = arith.constant 1 : index
    %c768_55 = arith.constant 768 : index
    %43 = vector.load %arg13[%c1_54, %c768_55] : memref<8x2048xf32, #tpu.memory_space<vmem>>, vector<1x144xf32>
    tpu.vector_store %arg13[%c1_54, %c768_55], %42 {strides = array<i32>} : memref<8x2048xf32, #tpu.memory_space<vmem>>, vector<1x144xf32>,
    %c0_56 = arith.constant 0 : index
    %c8 = arith.constant 8 : index
    %c0_57 = arith.constant 0 : index
    %44 = vector.load %arg1[%c0_56, %c8, %c0_57] : memref<1x36x144xf32, #tpu.memory_space<vmem>>, vector<1x1x144xf32>
    %45 = vector.shape_cast %44 : vector<1x1x144xf32> to vector<1x144xf32>
    %c1_58 = arith.constant 1 : index
    %c1024_59 = arith.constant 1024 : index
    %46 = vector.load %arg13[%c1_58, %c1024_59] : memref<8x2048xf32, #tpu.memory_space<vmem>>, vector<1x144xf32>
    tpu.vector_store %arg13[%c1_58, %c1024_59], %45 {strides = array<i32>} : memref<8x2048xf32, #tpu.memory_space<vmem>>, vector<1x144xf32>,
    %c0_60 = arith.constant 0 : index
    %c9 = arith.constant 9 : index
    %c0_61 = arith.constant 0 : index
    %47 = vector.load %arg1[%c0_60, %c9, %c0_61] : memref<1x36x144xf32, #tpu.memory_space<vmem>>, vector<1x1x144xf32>
    %48 = vector.shape_cast %47 : vector<1x1x144xf32> to vector<1x144xf32>
    %c1_62 = arith.constant 1 : index
    %c1280_63 = arith.constant 1280 : index
    %49 = vector.load %arg13[%c1_62, %c1280_63] : memref<8x2048xf32, #tpu.memory_space<vmem>>, vector<1x144xf32>
    tpu.vector_store %arg13[%c1_62, %c1280_63], %48 {strides = array<i32>} : memref<8x2048xf32, #tpu.memory_space<vmem>>, vector<1x144xf32>,
    %c0_64 = arith.constant 0 : index
    %c10 = arith.constant 10 : index
    %c0_65 = arith.constant 0 : index
    %50 = vector.load %arg1[%c0_64, %c10, %c0_65] : memref<1x36x144xf32, #tpu.memory_space<vmem>>, vector<1x1x144xf32>
    %51 = vector.shape_cast %50 : vector<1x1x144xf32> to vector<1x144xf32>
    %c1_66 = arith.constant 1 : index
    %c1536_67 = arith.constant 1536 : index
    %52 = vector.load %arg13[%c1_66, %c1536_67] : memref<8x2048xf32, #tpu.memory_space<vmem>>, vector<1x144xf32>
    tpu.vector_store %arg13[%c1_66, %c1536_67], %51 {strides = array<i32>} : memref<8x2048xf32, #tpu.memory_space<vmem>>, vector<1x144xf32>,
    %c0_68 = arith.constant 0 : index
    %c11 = arith.constant 11 : index
    %c0_69 = arith.constant 0 : index
    %53 = vector.load %arg1[%c0_68, %c11, %c0_69] : memref<1x36x144xf32, #tpu.memory_space<vmem>>, vector<1x1x144xf32>
    %54 = vector.shape_cast %53 : vector<1x1x144xf32> to vector<1x144xf32>
    %c1_70 = arith.constant 1 : index
    %c1792_71 = arith.constant 1792 : index
    %55 = vector.load %arg13[%c1_70, %c1792_71] : memref<8x2048xf32, #tpu.memory_space<vmem>>, vector<1x144xf32>
    tpu.vector_store %arg13[%c1_70, %c1792_71], %54 {strides = array<i32>} : memref<8x2048xf32, #tpu.memory_space<vmem>>, vector<1x144xf32>,
    %c0_72 = arith.constant 0 : index
    %c8_73 = arith.constant 8 : index
    %c0_74 = arith.constant 0 : index
    %56 = vector.load %arg1[%c0_72, %c8_73, %c0_74] : memref<1x36x144xf32, #tpu.memory_space<vmem>>, vector<1x1x144xf32>
    %57 = vector.shape_cast %56 : vector<1x1x144xf32> to vector<1x144xf32>
    %c2_75 = arith.constant 2 : index
    %c0_76 = arith.constant 0 : index
    %58 = vector.load %arg13[%c2_75, %c0_76] : memref<8x2048xf32, #tpu.memory_space<vmem>>, vector<1x144xf32>
    tpu.vector_store %arg13[%c2_75, %c0_76], %57 {strides = array<i32>} : memref<8x2048xf32, #tpu.memory_space<vmem>>, vector<1x144xf32>,
    %c0_77 = arith.constant 0 : index
    %c9_78 = arith.constant 9 : index
    %c0_79 = arith.constant 0 : index
    %59 = vector.load %arg1[%c0_77, %c9_78, %c0_79] : memref<1x36x144xf32, #tpu.memory_space<vmem>>, vector<1x1x144xf32>
    %60 = vector.shape_cast %59 : vector<1x1x144xf32> to vector<1x144xf32>
    %c2_80 = arith.constant 2 : index
    %c256_81 = arith.constant 256 : index
    %61 = vector.load %arg13[%c2_80, %c256_81] : memref<8x2048xf32, #tpu.memory_space<vmem>>, vector<1x144xf32>
    tpu.vector_store %arg13[%c2_80, %c256_81], %60 {strides = array<i32>} : memref<8x2048xf32, #tpu.memory_space<vmem>>, vector<1x144xf32>,
    %c0_82 = arith.constant 0 : index
    %c10_83 = arith.constant 10 : index
    %c0_84 = arith.constant 0 : index
    %62 = vector.load %arg1[%c0_82, %c10_83, %c0_84] : memref<1x36x144xf32, #tpu.memory_space<vmem>>, vector<1x1x144xf32>
    %63 = vector.shape_cast %62 : vector<1x1x144xf32> to vector<1x144xf32>
    %c2_85 = arith.constant 2 : index
    %c512_86 = arith.constant 512 : index
    %64 = vector.load %arg13[%c2_85, %c512_86] : memref<8x2048xf32, #tpu.memory_space<vmem>>, vector<1x144xf32>
    tpu.vector_store %arg13[%c2_85, %c512_86], %63 {strides = array<i32>} : memref<8x2048xf32, #tpu.memory_space<vmem>>, vector<1x144xf32>,
    %c0_87 = arith.constant 0 : index
    %c11_88 = arith.constant 11 : index
    %c0_89 = arith.constant 0 : index
    %65 = vector.load %arg1[%c0_87, %c11_88, %c0_89] : memref<1x36x144xf32, #tpu.memory_space<vmem>>, vector<1x1x144xf32>
    %66 = vector.shape_cast %65 : vector<1x1x144xf32> to vector<1x144xf32>
    %c2_90 = arith.constant 2 : index
    %c768_91 = arith.constant 768 : index
    %67 = vector.load %arg13[%c2_90, %c768_91] : memref<8x2048xf32, #tpu.memory_space<vmem>>, vector<1x144xf32>
    tpu.vector_store %arg13[%c2_90, %c768_91], %66 {strides = array<i32>} : memref<8x2048xf32, #tpu.memory_space<vmem>>, vector<1x144xf32>,
    %c0_92 = arith.constant 0 : index
    %c12 = arith.constant 12 : index
    %c0_93 = arith.constant 0 : index
    %68 = vector.load %arg1[%c0_92, %c12, %c0_93] : memref<1x36x144xf32, #tpu.memory_space<vmem>>, vector<1x1x144xf32>
    %69 = vector.shape_cast %68 : vector<1x1x144xf32> to vector<1x144xf32>
    %c2_94 = arith.constant 2 : index
    %c1024_95 = arith.constant 1024 : index
    %70 = vector.load %arg13[%c2_94, %c1024_95] : memref<8x2048xf32, #tpu.memory_space<vmem>>, vector<1x144xf32>
    tpu.vector_store %arg13[%c2_94, %c1024_95], %69 {strides = array<i32>} : memref<8x2048xf32, #tpu.memory_space<vmem>>, vector<1x144xf32>,
    %c0_96 = arith.constant 0 : index
    %c13 = arith.constant 13 : index
    %c0_97 = arith.constant 0 : index
    %71 = vector.load %arg1[%c0_96, %c13, %c0_97] : memref<1x36x144xf32, #tpu.memory_space<vmem>>, vector<1x1x144xf32>
    %72 = vector.shape_cast %71 : vector<1x1x144xf32> to vector<1x144xf32>
    %c2_98 = arith.constant 2 : index
    %c1280_99 = arith.constant 1280 : index
    %73 = vector.load %arg13[%c2_98, %c1280_99] : memref<8x2048xf32, #tpu.memory_space<vmem>>, vector<1x144xf32>
    tpu.vector_store %arg13[%c2_98, %c1280_99], %72 {strides = array<i32>} : memref<8x2048xf32, #tpu.memory_space<vmem>>, vector<1x144xf32>,
    %c0_100 = arith.constant 0 : index
    %c14 = arith.constant 14 : index
    %c0_101 = arith.constant 0 : index
    %74 = vector.load %arg1[%c0_100, %c14, %c0_101] : memref<1x36x144xf32, #tpu.memory_space<vmem>>, vector<1x1x144xf32>
    %75 = vector.shape_cast %74 : vector<1x1x144xf32> to vector<1x144xf32>
    %c2_102 = arith.constant 2 : index
    %c1536_103 = arith.constant 1536 : index
    %76 = vector.load %arg13[%c2_102, %c1536_103] : memref<8x2048xf32, #tpu.memory_space<vmem>>, vector<1x144xf32>
    tpu.vector_store %arg13[%c2_102, %c1536_103], %75 {strides = array<i32>} : memref<8x2048xf32, #tpu.memory_space<vmem>>, vector<1x144xf32>,
    %c0_104 = arith.constant 0 : index
    %c15 = arith.constant 15 : index
    %c0_105 = arith.constant 0 : index
    %77 = vector.load %arg1[%c0_104, %c15, %c0_105] : memref<1x36x144xf32, #tpu.memory_space<vmem>>, vector<1x1x144xf32>
    %78 = vector.shape_cast %77 : vector<1x1x144xf32> to vector<1x144xf32>
    %c2_106 = arith.constant 2 : index
    %c1792_107 = arith.constant 1792 : index
    %79 = vector.load %arg13[%c2_106, %c1792_107] : memref<8x2048xf32, #tpu.memory_space<vmem>>, vector<1x144xf32>
    tpu.vector_store %arg13[%c2_106, %c1792_107], %78 {strides = array<i32>} : memref<8x2048xf32, #tpu.memory_space<vmem>>, vector<1x144xf32>,
    %c0_108 = arith.constant 0 : index
    %c12_109 = arith.constant 12 : index
    %c0_110 = arith.constant 0 : index
    %80 = vector.load %arg1[%c0_108, %c12_109, %c0_110] : memref<1x36x144xf32, #tpu.memory_space<vmem>>, vector<1x1x144xf32>
    %81 = vector.shape_cast %80 : vector<1x1x144xf32> to vector<1x144xf32>
    %c3_111 = arith.constant 3 : index
    %c0_112 = arith.constant 0 : index
    %82 = vector.load %arg13[%c3_111, %c0_112] : memref<8x2048xf32, #tpu.memory_space<vmem>>, vector<1x144xf32>
    tpu.vector_store %arg13[%c3_111, %c0_112], %81 {strides = array<i32>} : memref<8x2048xf32, #tpu.memory_space<vmem>>, vector<1x144xf32>,
    %c0_113 = arith.constant 0 : index
    %c13_114 = arith.constant 13 : index
    %c0_115 = arith.constant 0 : index
    %83 = vector.load %arg1[%c0_113, %c13_114, %c0_115] : memref<1x36x144xf32, #tpu.memory_space<vmem>>, vector<1x1x144xf32>
    %84 = vector.shape_cast %83 : vector<1x1x144xf32> to vector<1x144xf32>
    %c3_116 = arith.constant 3 : index
    %c256_117 = arith.constant 256 : index
    %85 = vector.load %arg13[%c3_116, %c256_117] : memref<8x2048xf32, #tpu.memory_space<vmem>>, vector<1x144xf32>
    tpu.vector_store %arg13[%c3_116, %c256_117], %84 {strides = array<i32>} : memref<8x2048xf32, #tpu.memory_space<vmem>>, vector<1x144xf32>,
    %c0_118 = arith.constant 0 : index
    %c14_119 = arith.constant 14 : index
    %c0_120 = arith.constant 0 : index
    %86 = vector.load %arg1[%c0_118, %c14_119, %c0_120] : memref<1x36x144xf32, #tpu.memory_space<vmem>>, vector<1x1x144xf32>
    %87 = vector.shape_cast %86 : vector<1x1x144xf32> to vector<1x144xf32>
    %c3_121 = arith.constant 3 : index
    %c512_122 = arith.constant 512 : index
    %88 = vector.load %arg13[%c3_121, %c512_122] : memref<8x2048xf32, #tpu.memory_space<vmem>>, vector<1x144xf32>
    tpu.vector_store %arg13[%c3_121, %c512_122], %87 {strides = array<i32>} : memref<8x2048xf32, #tpu.memory_space<vmem>>, vector<1x144xf32>,
    %c0_123 = arith.constant 0 : index
    %c15_124 = arith.constant 15 : index
    %c0_125 = arith.constant 0 : index
    %89 = vector.load %arg1[%c0_123, %c15_124, %c0_125] : memref<1x36x144xf32, #tpu.memory_space<vmem>>, vector<1x1x144xf32>
    %90 = vector.shape_cast %89 : vector<1x1x144xf32> to vector<1x144xf32>
    %c3_126 = arith.constant 3 : index
    %c768_127 = arith.constant 768 : index
    %91 = vector.load %arg13[%c3_126, %c768_127] : memref<8x2048xf32, #tpu.memory_space<vmem>>, vector<1x144xf32>
    tpu.vector_store %arg13[%c3_126, %c768_127], %90 {strides = array<i32>} : memref<8x2048xf32, #tpu.memory_space<vmem>>, vector<1x144xf32>,
    %c0_128 = arith.constant 0 : index
    %c16 = arith.constant 16 : index
    %c0_129 = arith.constant 0 : index
    %92 = vector.load %arg1[%c0_128, %c16, %c0_129] : memref<1x36x144xf32, #tpu.memory_space<vmem>>, vector<1x1x144xf32>
    %93 = vector.shape_cast %92 : vector<1x1x144xf32> to vector<1x144xf32>
    %c3_130 = arith.constant 3 : index
    %c1024_131 = arith.constant 1024 : index
    %94 = vector.load %arg13[%c3_130, %c1024_131] : memref<8x2048xf32, #tpu.memory_space<vmem>>, vector<1x144xf32>
    tpu.vector_store %arg13[%c3_130, %c1024_131], %93 {strides = array<i32>} : memref<8x2048xf32, #tpu.memory_space<vmem>>, vector<1x144xf32>,
    %c0_132 = arith.constant 0 : index
    %c17 = arith.constant 17 : index
    %c0_133 = arith.constant 0 : index
    %95 = vector.load %arg1[%c0_132, %c17, %c0_133] : memref<1x36x144xf32, #tpu.memory_space<vmem>>, vector<1x1x144xf32>
    %96 = vector.shape_cast %95 : vector<1x1x144xf32> to vector<1x144xf32>
    %c3_134 = arith.constant 3 : index
    %c1280_135 = arith.constant 1280 : index
    %97 = vector.load %arg13[%c3_134, %c1280_135] : memref<8x2048xf32, #tpu.memory_space<vmem>>, vector<1x144xf32>
    tpu.vector_store %arg13[%c3_134, %c1280_135], %96 {strides = array<i32>} : memref<8x2048xf32, #tpu.memory_space<vmem>>, vector<1x144xf32>,
    %c0_136 = arith.constant 0 : index
    %c18 = arith.constant 18 : index
    %c0_137 = arith.constant 0 : index
    %98 = vector.load %arg1[%c0_136, %c18, %c0_137] : memref<1x36x144xf32, #tpu.memory_space<vmem>>, vector<1x1x144xf32>
    %99 = vector.shape_cast %98 : vector<1x1x144xf32> to vector<1x144xf32>
    %c3_138 = arith.constant 3 : index
    %c1536_139 = arith.constant 1536 : index
    %100 = vector.load %arg13[%c3_138, %c1536_139] : memref<8x2048xf32, #tpu.memory_space<vmem>>, vector<1x144xf32>
    tpu.vector_store %arg13[%c3_138, %c1536_139], %99 {strides = array<i32>} : memref<8x2048xf32, #tpu.memory_space<vmem>>, vector<1x144xf32>,
    %c0_140 = arith.constant 0 : index
    %c19 = arith.constant 19 : index
    %c0_141 = arith.constant 0 : index
    %101 = vector.load %arg1[%c0_140, %c19, %c0_141] : memref<1x36x144xf32, #tpu.memory_space<vmem>>, vector<1x1x144xf32>
    %102 = vector.shape_cast %101 : vector<1x1x144xf32> to vector<1x144xf32>
    %c3_142 = arith.constant 3 : index
    %c1792_143 = arith.constant 1792 : index
    %103 = vector.load %arg13[%c3_142, %c1792_143] : memref<8x2048xf32, #tpu.memory_space<vmem>>, vector<1x144xf32>
    tpu.vector_store %arg13[%c3_142, %c1792_143], %102 {strides = array<i32>} : memref<8x2048xf32, #tpu.memory_space<vmem>>, vector<1x144xf32>,
    %c0_144 = arith.constant 0 : index
    %c16_145 = arith.constant 16 : index
    %c0_146 = arith.constant 0 : index
    %104 = vector.load %arg1[%c0_144, %c16_145, %c0_146] : memref<1x36x144xf32, #tpu.memory_space<vmem>>, vector<1x1x144xf32>
    %105 = vector.shape_cast %104 : vector<1x1x144xf32> to vector<1x144xf32>
    %c4_147 = arith.constant 4 : index
    %c0_148 = arith.constant 0 : index
    %106 = vector.load %arg13[%c4_147, %c0_148] : memref<8x2048xf32, #tpu.memory_space<vmem>>, vector<1x144xf32>
    tpu.vector_store %arg13[%c4_147, %c0_148], %105 {strides = array<i32>} : memref<8x2048xf32, #tpu.memory_space<vmem>>, vector<1x144xf32>,
    %c0_149 = arith.constant 0 : index
    %c17_150 = arith.constant 17 : index
    %c0_151 = arith.constant 0 : index
    %107 = vector.load %arg1[%c0_149, %c17_150, %c0_151] : memref<1x36x144xf32, #tpu.memory_space<vmem>>, vector<1x1x144xf32>
    %108 = vector.shape_cast %107 : vector<1x1x144xf32> to vector<1x144xf32>
    %c4_152 = arith.constant 4 : index
    %c256_153 = arith.constant 256 : index
    %109 = vector.load %arg13[%c4_152, %c256_153] : memref<8x2048xf32, #tpu.memory_space<vmem>>, vector<1x144xf32>
    tpu.vector_store %arg13[%c4_152, %c256_153], %108 {strides = array<i32>} : memref<8x2048xf32, #tpu.memory_space<vmem>>, vector<1x144xf32>,
    %c0_154 = arith.constant 0 : index
    %c18_155 = arith.constant 18 : index
    %c0_156 = arith.constant 0 : index
    %110 = vector.load %arg1[%c0_154, %c18_155, %c0_156] : memref<1x36x144xf32, #tpu.memory_space<vmem>>, vector<1x1x144xf32>
    %111 = vector.shape_cast %110 : vector<1x1x144xf32> to vector<1x144xf32>
    %c4_157 = arith.constant 4 : index
    %c512_158 = arith.constant 512 : index
    %112 = vector.load %arg13[%c4_157, %c512_158] : memref<8x2048xf32, #tpu.memory_space<vmem>>, vector<1x144xf32>
    tpu.vector_store %arg13[%c4_157, %c512_158], %111 {strides = array<i32>} : memref<8x2048xf32, #tpu.memory_space<vmem>>, vector<1x144xf32>,
    %c0_159 = arith.constant 0 : index
    %c19_160 = arith.constant 19 : index
    %c0_161 = arith.constant 0 : index
    %113 = vector.load %arg1[%c0_159, %c19_160, %c0_161] : memref<1x36x144xf32, #tpu.memory_space<vmem>>, vector<1x1x144xf32>
    %114 = vector.shape_cast %113 : vector<1x1x144xf32> to vector<1x144xf32>
    %c4_162 = arith.constant 4 : index
    %c768_163 = arith.constant 768 : index
    %115 = vector.load %arg13[%c4_162, %c768_163] : memref<8x2048xf32, #tpu.memory_space<vmem>>, vector<1x144xf32>
    tpu.vector_store %arg13[%c4_162, %c768_163], %114 {strides = array<i32>} : memref<8x2048xf32, #tpu.memory_space<vmem>>, vector<1x144xf32>,
    %c0_164 = arith.constant 0 : index
    %c20 = arith.constant 20 : index
    %c0_165 = arith.constant 0 : index
    %116 = vector.load %arg1[%c0_164, %c20, %c0_165] : memref<1x36x144xf32, #tpu.memory_space<vmem>>, vector<1x1x144xf32>
    %117 = vector.shape_cast %116 : vector<1x1x144xf32> to vector<1x144xf32>
    %c4_166 = arith.constant 4 : index
    %c1024_167 = arith.constant 1024 : index
    %118 = vector.load %arg13[%c4_166, %c1024_167] : memref<8x2048xf32, #tpu.memory_space<vmem>>, vector<1x144xf32>
    tpu.vector_store %arg13[%c4_166, %c1024_167], %117 {strides = array<i32>} : memref<8x2048xf32, #tpu.memory_space<vmem>>, vector<1x144xf32>,
    %c0_168 = arith.constant 0 : index
    %c21 = arith.constant 21 : index
    %c0_169 = arith.constant 0 : index
    %119 = vector.load %arg1[%c0_168, %c21, %c0_169] : memref<1x36x144xf32, #tpu.memory_space<vmem>>, vector<1x1x144xf32>
    %120 = vector.shape_cast %119 : vector<1x1x144xf32> to vector<1x144xf32>
    %c4_170 = arith.constant 4 : index
    %c1280_171 = arith.constant 1280 : index
    %121 = vector.load %arg13[%c4_170, %c1280_171] : memref<8x2048xf32, #tpu.memory_space<vmem>>, vector<1x144xf32>
    tpu.vector_store %arg13[%c4_170, %c1280_171], %120 {strides = array<i32>} : memref<8x2048xf32, #tpu.memory_space<vmem>>, vector<1x144xf32>,
    %c0_172 = arith.constant 0 : index
    %c22 = arith.constant 22 : index
    %c0_173 = arith.constant 0 : index
    %122 = vector.load %arg1[%c0_172, %c22, %c0_173] : memref<1x36x144xf32, #tpu.memory_space<vmem>>, vector<1x1x144xf32>
    %123 = vector.shape_cast %122 : vector<1x1x144xf32> to vector<1x144xf32>
    %c4_174 = arith.constant 4 : index
    %c1536_175 = arith.constant 1536 : index
    %124 = vector.load %arg13[%c4_174, %c1536_175] : memref<8x2048xf32, #tpu.memory_space<vmem>>, vector<1x144xf32>
    tpu.vector_store %arg13[%c4_174, %c1536_175], %123 {strides = array<i32>} : memref<8x2048xf32, #tpu.memory_space<vmem>>, vector<1x144xf32>,
    %c0_176 = arith.constant 0 : index
    %c23 = arith.constant 23 : index
    %c0_177 = arith.constant 0 : index
    %125 = vector.load %arg1[%c0_176, %c23, %c0_177] : memref<1x36x144xf32, #tpu.memory_space<vmem>>, vector<1x1x144xf32>
    %126 = vector.shape_cast %125 : vector<1x1x144xf32> to vector<1x144xf32>
    %c4_178 = arith.constant 4 : index
    %c1792_179 = arith.constant 1792 : index
    %127 = vector.load %arg13[%c4_178, %c1792_179] : memref<8x2048xf32, #tpu.memory_space<vmem>>, vector<1x144xf32>
    tpu.vector_store %arg13[%c4_178, %c1792_179], %126 {strides = array<i32>} : memref<8x2048xf32, #tpu.memory_space<vmem>>, vector<1x144xf32>,
    %c0_180 = arith.constant 0 : index
    %c20_181 = arith.constant 20 : index
    %c0_182 = arith.constant 0 : index
    %128 = vector.load %arg1[%c0_180, %c20_181, %c0_182] : memref<1x36x144xf32, #tpu.memory_space<vmem>>, vector<1x1x144xf32>
    %129 = vector.shape_cast %128 : vector<1x1x144xf32> to vector<1x144xf32>
    %c5_183 = arith.constant 5 : index
    %c0_184 = arith.constant 0 : index
    %130 = vector.load %arg13[%c5_183, %c0_184] : memref<8x2048xf32, #tpu.memory_space<vmem>>, vector<1x144xf32>
    tpu.vector_store %arg13[%c5_183, %c0_184], %129 {strides = array<i32>} : memref<8x2048xf32, #tpu.memory_space<vmem>>, vector<1x144xf32>,
    %c0_185 = arith.constant 0 : index
    %c21_186 = arith.constant 21 : index
    %c0_187 = arith.constant 0 : index
    %131 = vector.load %arg1[%c0_185, %c21_186, %c0_187] : memref<1x36x144xf32, #tpu.memory_space<vmem>>, vector<1x1x144xf32>
    %132 = vector.shape_cast %131 : vector<1x1x144xf32> to vector<1x144xf32>
    %c5_188 = arith.constant 5 : index
    %c256_189 = arith.constant 256 : index
    %133 = vector.load %arg13[%c5_188, %c256_189] : memref<8x2048xf32, #tpu.memory_space<vmem>>, vector<1x144xf32>
    tpu.vector_store %arg13[%c5_188, %c256_189], %132 {strides = array<i32>} : memref<8x2048xf32, #tpu.memory_space<vmem>>, vector<1x144xf32>,
    %c0_190 = arith.constant 0 : index
    %c22_191 = arith.constant 22 : index
    %c0_192 = arith.constant 0 : index
    %134 = vector.load %arg1[%c0_190, %c22_191, %c0_192] : memref<1x36x144xf32, #tpu.memory_space<vmem>>, vector<1x1x144xf32>
    %135 = vector.shape_cast %134 : vector<1x1x144xf32> to vector<1x144xf32>
    %c5_193 = arith.constant 5 : index
    %c512_194 = arith.constant 512 : index
    %136 = vector.load %arg13[%c5_193, %c512_194] : memref<8x2048xf32, #tpu.memory_space<vmem>>, vector<1x144xf32>
    tpu.vector_store %arg13[%c5_193, %c512_194], %135 {strides = array<i32>} : memref<8x2048xf32, #tpu.memory_space<vmem>>, vector<1x144xf32>,
    %c0_195 = arith.constant 0 : index
    %c23_196 = arith.constant 23 : index
    %c0_197 = arith.constant 0 : index
    %137 = vector.load %arg1[%c0_195, %c23_196, %c0_197] : memref<1x36x144xf32, #tpu.memory_space<vmem>>, vector<1x1x144xf32>
    %138 = vector.shape_cast %137 : vector<1x1x144xf32> to vector<1x144xf32>
    %c5_198 = arith.constant 5 : index
    %c768_199 = arith.constant 768 : index
    %139 = vector.load %arg13[%c5_198, %c768_199] : memref<8x2048xf32, #tpu.memory_space<vmem>>, vector<1x144xf32>
    tpu.vector_store %arg13[%c5_198, %c768_199], %138 {strides = array<i32>} : memref<8x2048xf32, #tpu.memory_space<vmem>>, vector<1x144xf32>,
    %c0_200 = arith.constant 0 : index
    %c24 = arith.constant 24 : index
    %c0_201 = arith.constant 0 : index
    %140 = vector.load %arg1[%c0_200, %c24, %c0_201] : memref<1x36x144xf32, #tpu.memory_space<vmem>>, vector<1x1x144xf32>
    %141 = vector.shape_cast %140 : vector<1x1x144xf32> to vector<1x144xf32>
    %c5_202 = arith.constant 5 : index
    %c1024_203 = arith.constant 1024 : index
    %142 = vector.load %arg13[%c5_202, %c1024_203] : memref<8x2048xf32, #tpu.memory_space<vmem>>, vector<1x144xf32>
    tpu.vector_store %arg13[%c5_202, %c1024_203], %141 {strides = array<i32>} : memref<8x2048xf32, #tpu.memory_space<vmem>>, vector<1x144xf32>,
    %c0_204 = arith.constant 0 : index
    %c25 = arith.constant 25 : index
    %c0_205 = arith.constant 0 : index
    %143 = vector.load %arg1[%c0_204, %c25, %c0_205] : memref<1x36x144xf32, #tpu.memory_space<vmem>>, vector<1x1x144xf32>
    %144 = vector.shape_cast %143 : vector<1x1x144xf32> to vector<1x144xf32>
    %c5_206 = arith.constant 5 : index
    %c1280_207 = arith.constant 1280 : index
    %145 = vector.load %arg13[%c5_206, %c1280_207] : memref<8x2048xf32, #tpu.memory_space<vmem>>, vector<1x144xf32>
    tpu.vector_store %arg13[%c5_206, %c1280_207], %144 {strides = array<i32>} : memref<8x2048xf32, #tpu.memory_space<vmem>>, vector<1x144xf32>,
    %c0_208 = arith.constant 0 : index
    %c26 = arith.constant 26 : index
    %c0_209 = arith.constant 0 : index
    %146 = vector.load %arg1[%c0_208, %c26, %c0_209] : memref<1x36x144xf32, #tpu.memory_space<vmem>>, vector<1x1x144xf32>
    %147 = vector.shape_cast %146 : vector<1x1x144xf32> to vector<1x144xf32>
    %c5_210 = arith.constant 5 : index
    %c1536_211 = arith.constant 1536 : index
    %148 = vector.load %arg13[%c5_210, %c1536_211] : memref<8x2048xf32, #tpu.memory_space<vmem>>, vector<1x144xf32>
    tpu.vector_store %arg13[%c5_210, %c1536_211], %147 {strides = array<i32>} : memref<8x2048xf32, #tpu.memory_space<vmem>>, vector<1x144xf32>,
    %c0_212 = arith.constant 0 : index
    %c27 = arith.constant 27 : index
    %c0_213 = arith.constant 0 : index
    %149 = vector.load %arg1[%c0_212, %c27, %c0_213] : memref<1x36x144xf32, #tpu.memory_space<vmem>>, vector<1x1x144xf32>
    %150 = vector.shape_cast %149 : vector<1x1x144xf32> to vector<1x144xf32>
    %c5_214 = arith.constant 5 : index
    %c1792_215 = arith.constant 1792 : index
    %151 = vector.load %arg13[%c5_214, %c1792_215] : memref<8x2048xf32, #tpu.memory_space<vmem>>, vector<1x144xf32>
    tpu.vector_store %arg13[%c5_214, %c1792_215], %150 {strides = array<i32>} : memref<8x2048xf32, #tpu.memory_space<vmem>>, vector<1x144xf32>,
    %c0_216 = arith.constant 0 : index
    %c24_217 = arith.constant 24 : index
    %c0_218 = arith.constant 0 : index
    %152 = vector.load %arg1[%c0_216, %c24_217, %c0_218] : memref<1x36x144xf32, #tpu.memory_space<vmem>>, vector<1x1x144xf32>
    %153 = vector.shape_cast %152 : vector<1x1x144xf32> to vector<1x144xf32>
    %c6_219 = arith.constant 6 : index
    %c0_220 = arith.constant 0 : index
    %154 = vector.load %arg13[%c6_219, %c0_220] : memref<8x2048xf32, #tpu.memory_space<vmem>>, vector<1x144xf32>
    tpu.vector_store %arg13[%c6_219, %c0_220], %153 {strides = array<i32>} : memref<8x2048xf32, #tpu.memory_space<vmem>>, vector<1x144xf32>,
    %c0_221 = arith.constant 0 : index
    %c25_222 = arith.constant 25 : index
    %c0_223 = arith.constant 0 : index
    %155 = vector.load %arg1[%c0_221, %c25_222, %c0_223] : memref<1x36x144xf32, #tpu.memory_space<vmem>>, vector<1x1x144xf32>
    %156 = vector.shape_cast %155 : vector<1x1x144xf32> to vector<1x144xf32>
    %c6_224 = arith.constant 6 : index
    %c256_225 = arith.constant 256 : index
    %157 = vector.load %arg13[%c6_224, %c256_225] : memref<8x2048xf32, #tpu.memory_space<vmem>>, vector<1x144xf32>
    tpu.vector_store %arg13[%c6_224, %c256_225], %156 {strides = array<i32>} : memref<8x2048xf32, #tpu.memory_space<vmem>>, vector<1x144xf32>,
    %c0_226 = arith.constant 0 : index
    %c26_227 = arith.constant 26 : index
    %c0_228 = arith.constant 0 : index
    %158 = vector.load %arg1[%c0_226, %c26_227, %c0_228] : memref<1x36x144xf32, #tpu.memory_space<vmem>>, vector<1x1x144xf32>
    %159 = vector.shape_cast %158 : vector<1x1x144xf32> to vector<1x144xf32>
    %c6_229 = arith.constant 6 : index
    %c512_230 = arith.constant 512 : index
    %160 = vector.load %arg13[%c6_229, %c512_230] : memref<8x2048xf32, #tpu.memory_space<vmem>>, vector<1x144xf32>
    tpu.vector_store %arg13[%c6_229, %c512_230], %159 {strides = array<i32>} : memref<8x2048xf32, #tpu.memory_space<vmem>>, vector<1x144xf32>,
    %c0_231 = arith.constant 0 : index
    %c27_232 = arith.constant 27 : index
    %c0_233 = arith.constant 0 : index
    %161 = vector.load %arg1[%c0_231, %c27_232, %c0_233] : memref<1x36x144xf32, #tpu.memory_space<vmem>>, vector<1x1x144xf32>
    %162 = vector.shape_cast %161 : vector<1x1x144xf32> to vector<1x144xf32>
    %c6_234 = arith.constant 6 : index
    %c768_235 = arith.constant 768 : index
    %163 = vector.load %arg13[%c6_234, %c768_235] : memref<8x2048xf32, #tpu.memory_space<vmem>>, vector<1x144xf32>
    tpu.vector_store %arg13[%c6_234, %c768_235], %162 {strides = array<i32>} : memref<8x2048xf32, #tpu.memory_space<vmem>>, vector<1x144xf32>,
    %c0_236 = arith.constant 0 : index
    %c28 = arith.constant 28 : index
    %c0_237 = arith.constant 0 : index
    %164 = vector.load %arg1[%c0_236, %c28, %c0_237] : memref<1x36x144xf32, #tpu.memory_space<vmem>>, vector<1x1x144xf32>
    %165 = vector.shape_cast %164 : vector<1x1x144xf32> to vector<1x144xf32>
    %c6_238 = arith.constant 6 : index
    %c1024_239 = arith.constant 1024 : index
    %166 = vector.load %arg13[%c6_238, %c1024_239] : memref<8x2048xf32, #tpu.memory_space<vmem>>, vector<1x144xf32>
    tpu.vector_store %arg13[%c6_238, %c1024_239], %165 {strides = array<i32>} : memref<8x2048xf32, #tpu.memory_space<vmem>>, vector<1x144xf32>,
    %c0_240 = arith.constant 0 : index
    %c29 = arith.constant 29 : index
    %c0_241 = arith.constant 0 : index
    %167 = vector.load %arg1[%c0_240, %c29, %c0_241] : memref<1x36x144xf32, #tpu.memory_space<vmem>>, vector<1x1x144xf32>
    %168 = vector.shape_cast %167 : vector<1x1x144xf32> to vector<1x144xf32>
    %c6_242 = arith.constant 6 : index
    %c1280_243 = arith.constant 1280 : index
    %169 = vector.load %arg13[%c6_242, %c1280_243] : memref<8x2048xf32, #tpu.memory_space<vmem>>, vector<1x144xf32>
    tpu.vector_store %arg13[%c6_242, %c1280_243], %168 {strides = array<i32>} : memref<8x2048xf32, #tpu.memory_space<vmem>>, vector<1x144xf32>,
    %c0_244 = arith.constant 0 : index
    %c30 = arith.constant 30 : index
    %c0_245 = arith.constant 0 : index
    %170 = vector.load %arg1[%c0_244, %c30, %c0_245] : memref<1x36x144xf32, #tpu.memory_space<vmem>>, vector<1x1x144xf32>
    %171 = vector.shape_cast %170 : vector<1x1x144xf32> to vector<1x144xf32>
    %c6_246 = arith.constant 6 : index
    %c1536_247 = arith.constant 1536 : index
    %172 = vector.load %arg13[%c6_246, %c1536_247] : memref<8x2048xf32, #tpu.memory_space<vmem>>, vector<1x144xf32>
    tpu.vector_store %arg13[%c6_246, %c1536_247], %171 {strides = array<i32>} : memref<8x2048xf32, #tpu.memory_space<vmem>>, vector<1x144xf32>,
    %c0_248 = arith.constant 0 : index
    %c31 = arith.constant 31 : index
    %c0_249 = arith.constant 0 : index
    %173 = vector.load %arg1[%c0_248, %c31, %c0_249] : memref<1x36x144xf32, #tpu.memory_space<vmem>>, vector<1x1x144xf32>
    %174 = vector.shape_cast %173 : vector<1x1x144xf32> to vector<1x144xf32>
    %c6_250 = arith.constant 6 : index
    %c1792_251 = arith.constant 1792 : index
    %175 = vector.load %arg13[%c6_250, %c1792_251] : memref<8x2048xf32, #tpu.memory_space<vmem>>, vector<1x144xf32>
    tpu.vector_store %arg13[%c6_250, %c1792_251], %174 {strides = array<i32>} : memref<8x2048xf32, #tpu.memory_space<vmem>>, vector<1x144xf32>,
    %c0_252 = arith.constant 0 : index
    %c28_253 = arith.constant 28 : index
    %c0_254 = arith.constant 0 : index
    %176 = vector.load %arg1[%c0_252, %c28_253, %c0_254] : memref<1x36x144xf32, #tpu.memory_space<vmem>>, vector<1x1x144xf32>
    %177 = vector.shape_cast %176 : vector<1x1x144xf32> to vector<1x144xf32>
    %c7_255 = arith.constant 7 : index
    %c0_256 = arith.constant 0 : index
    %178 = vector.load %arg13[%c7_255, %c0_256] : memref<8x2048xf32, #tpu.memory_space<vmem>>, vector<1x144xf32>
    tpu.vector_store %arg13[%c7_255, %c0_256], %177 {strides = array<i32>} : memref<8x2048xf32, #tpu.memory_space<vmem>>, vector<1x144xf32>,
    %c0_257 = arith.constant 0 : index
    %c29_258 = arith.constant 29 : index
    %c0_259 = arith.constant 0 : index
    %179 = vector.load %arg1[%c0_257, %c29_258, %c0_259] : memref<1x36x144xf32, #tpu.memory_space<vmem>>, vector<1x1x144xf32>
    %180 = vector.shape_cast %179 : vector<1x1x144xf32> to vector<1x144xf32>
    %c7_260 = arith.constant 7 : index
    %c256_261 = arith.constant 256 : index
    %181 = vector.load %arg13[%c7_260, %c256_261] : memref<8x2048xf32, #tpu.memory_space<vmem>>, vector<1x144xf32>
    tpu.vector_store %arg13[%c7_260, %c256_261], %180 {strides = array<i32>} : memref<8x2048xf32, #tpu.memory_space<vmem>>, vector<1x144xf32>,
    %c0_262 = arith.constant 0 : index
    %c30_263 = arith.constant 30 : index
    %c0_264 = arith.constant 0 : index
    %182 = vector.load %arg1[%c0_262, %c30_263, %c0_264] : memref<1x36x144xf32, #tpu.memory_space<vmem>>, vector<1x1x144xf32>
    %183 = vector.shape_cast %182 : vector<1x1x144xf32> to vector<1x144xf32>
    %c7_265 = arith.constant 7 : index
    %c512_266 = arith.constant 512 : index
    %184 = vector.load %arg13[%c7_265, %c512_266] : memref<8x2048xf32, #tpu.memory_space<vmem>>, vector<1x144xf32>
    tpu.vector_store %arg13[%c7_265, %c512_266], %183 {strides = array<i32>} : memref<8x2048xf32, #tpu.memory_space<vmem>>, vector<1x144xf32>,
    %c0_267 = arith.constant 0 : index
    %c31_268 = arith.constant 31 : index
    %c0_269 = arith.constant 0 : index
    %185 = vector.load %arg1[%c0_267, %c31_268, %c0_269] : memref<1x36x144xf32, #tpu.memory_space<vmem>>, vector<1x1x144xf32>
    %186 = vector.shape_cast %185 : vector<1x1x144xf32> to vector<1x144xf32>
    %c7_270 = arith.constant 7 : index
    %c768_271 = arith.constant 768 : index
    %187 = vector.load %arg13[%c7_270, %c768_271] : memref<8x2048xf32, #tpu.memory_space<vmem>>, vector<1x144xf32>
    tpu.vector_store %arg13[%c7_270, %c768_271], %186 {strides = array<i32>} : memref<8x2048xf32, #tpu.memory_space<vmem>>, vector<1x144xf32>,
    %c0_272 = arith.constant 0 : index
    %c32 = arith.constant 32 : index
    %c0_273 = arith.constant 0 : index
    %188 = vector.load %arg1[%c0_272, %c32, %c0_273] : memref<1x36x144xf32, #tpu.memory_space<vmem>>, vector<1x1x144xf32>
    %189 = vector.shape_cast %188 : vector<1x1x144xf32> to vector<1x144xf32>
    %c7_274 = arith.constant 7 : index
    %c1024_275 = arith.constant 1024 : index
    %190 = vector.load %arg13[%c7_274, %c1024_275] : memref<8x2048xf32, #tpu.memory_space<vmem>>, vector<1x144xf32>
    tpu.vector_store %arg13[%c7_274, %c1024_275], %189 {strides = array<i32>} : memref<8x2048xf32, #tpu.memory_space<vmem>>, vector<1x144xf32>,
    %c0_276 = arith.constant 0 : index
    %c33 = arith.constant 33 : index
    %c0_277 = arith.constant 0 : index
    %191 = vector.load %arg1[%c0_276, %c33, %c0_277] : memref<1x36x144xf32, #tpu.memory_space<vmem>>, vector<1x1x144xf32>
    %192 = vector.shape_cast %191 : vector<1x1x144xf32> to vector<1x144xf32>
    %c7_278 = arith.constant 7 : index
    %c1280_279 = arith.constant 1280 : index
    %193 = vector.load %arg13[%c7_278, %c1280_279] : memref<8x2048xf32, #tpu.memory_space<vmem>>, vector<1x144xf32>
    tpu.vector_store %arg13[%c7_278, %c1280_279], %192 {strides = array<i32>} : memref<8x2048xf32, #tpu.memory_space<vmem>>, vector<1x144xf32>,
    %c0_280 = arith.constant 0 : index
    %c34 = arith.constant 34 : index
    %c0_281 = arith.constant 0 : index
    %194 = vector.load %arg1[%c0_280, %c34, %c0_281] : memref<1x36x144xf32, #tpu.memory_space<vmem>>, vector<1x1x144xf32>
    %195 = vector.shape_cast %194 : vector<1x1x144xf32> to vector<1x144xf32>
    %c7_282 = arith.constant 7 : index
    %c1536_283 = arith.constant 1536 : index
    %196 = vector.load %arg13[%c7_282, %c1536_283] : memref<8x2048xf32, #tpu.memory_space<vmem>>, vector<1x144xf32>
    tpu.vector_store %arg13[%c7_282, %c1536_283], %195 {strides = array<i32>} : memref<8x2048xf32, #tpu.memory_space<vmem>>, vector<1x144xf32>,
    %c0_284 = arith.constant 0 : index
    %c35 = arith.constant 35 : index
    %c0_285 = arith.constant 0 : index
    %197 = vector.load %arg1[%c0_284, %c35, %c0_285] : memref<1x36x144xf32, #tpu.memory_space<vmem>>, vector<1x1x144xf32>
    %198 = vector.shape_cast %197 : vector<1x1x144xf32> to vector<1x144xf32>
    %c7_286 = arith.constant 7 : index
    %c1792_287 = arith.constant 1792 : index
    %199 = vector.load %arg13[%c7_286, %c1792_287] : memref<8x2048xf32, #tpu.memory_space<vmem>>, vector<1x144xf32>
    tpu.vector_store %arg13[%c7_286, %c1792_287], %198 {strides = array<i32>} : memref<8x2048xf32, #tpu.memory_space<vmem>>, vector<1x144xf32>,
    %c0_288 = arith.constant 0 : index
    %c0_289 = arith.constant 0 : index
    %200 = vector.load %arg13[%c0_288, %c0_289] : memref<8x2048xf32, #tpu.memory_space<vmem>>, vector<8x2048xf32>
    %201 = arith.truncf %200 : vector<8x2048xf32> to vector<8x2048xbf16>
    %c0_290 = arith.constant 0 : index
    %c0_291 = arith.constant 0 : index
    %202 = vector.load %arg2[%c0_290, %c0_291] : memref<2048x256xbf16, #tpu.memory_space<vmem>>, vector<2048x256xbf16>
    %cst_292 = arith.constant dense<0.000000e+00> : vector<8x256xf32>
    %203 = tpu.matmul %201, %202, %cst_292 {dimension_numbers = #tpu.dot_dimension_numbers<[1], [0], [0], [1], [0, 0, 1, 1], [], []>} : vector<8x2048xbf16>, vector<2048x256xbf16>, vector<8x256xf32> -> vector<8x256xf32>
    %c0_293 = arith.constant 0 : index
    %c0_294 = arith.constant 0 : index
    %204 = vector.load %arg3[%c0_293, %c0_294] : memref<1x256xf32, #tpu.memory_space<vmem>>, vector<1x256xf32>
    %205 = vector.broadcast %204 : vector<1x256xf32> to vector<8x256xf32>
    %206 = arith.addf %203, %205 : vector<8x256xf32>
    %cst_295 = arith.constant 0.000000e+00 : f32
    %207 = vector.broadcast %cst_295 : f32 to vector<8x256xf32>
    %208 = arith.maximumf %206, %207 : vector<8x256xf32>
    %209 = vector.extract_strided_slice %208 {offsets = [0, 0], sizes = [1, 256], strides = [1, 1]} : vector<8x256xf32> to vector<1x256xf32>
    %c0_296 = arith.constant 0 : index
    %c0_297 = arith.constant 0 : index
    %210 = vector.load %arg14[%c0_296, %c0_297] : memref<8x1024xf32, #tpu.memory_space<vmem>>, vector<1x256xf32>
    tpu.vector_store %arg14[%c0_296, %c0_297], %209 {strides = array<i32>} : memref<8x1024xf32, #tpu.memory_space<vmem>>, vector<1x256xf32>,
    %211 = vector.extract_strided_slice %208 {offsets = [1, 0], sizes = [1, 256], strides = [1, 1]} : vector<8x256xf32> to vector<1x256xf32>
    %c0_298 = arith.constant 0 : index
    %c256_299 = arith.constant 256 : index
    %212 = vector.load %arg14[%c0_298, %c256_299] : memref<8x1024xf32, #tpu.memory_space<vmem>>, vector<1x256xf32>
    tpu.vector_store %arg14[%c0_298, %c256_299], %211 {strides = array<i32>} : memref<8x1024xf32, #tpu.memory_space<vmem>>, vector<1x256xf32>,
    %213 = vector.extract_strided_slice %208 {offsets = [2, 0], sizes = [1, 256], strides = [1, 1]} : vector<8x256xf32> to vector<1x256xf32>
    %c0_300 = arith.constant 0 : index
    %c512_301 = arith.constant 512 : index
    %214 = vector.load %arg14[%c0_300, %c512_301] : memref<8x1024xf32, #tpu.memory_space<vmem>>, vector<1x256xf32>
    tpu.vector_store %arg14[%c0_300, %c512_301], %213 {strides = array<i32>} : memref<8x1024xf32, #tpu.memory_space<vmem>>, vector<1x256xf32>,
    %215 = vector.extract_strided_slice %208 {offsets = [3, 0], sizes = [1, 256], strides = [1, 1]} : vector<8x256xf32> to vector<1x256xf32>
    %c0_302 = arith.constant 0 : index
    %c768_303 = arith.constant 768 : index
    %216 = vector.load %arg14[%c0_302, %c768_303] : memref<8x1024xf32, #tpu.memory_space<vmem>>, vector<1x256xf32>
    tpu.vector_store %arg14[%c0_302, %c768_303], %215 {strides = array<i32>} : memref<8x1024xf32, #tpu.memory_space<vmem>>, vector<1x256xf32>,
    %217 = vector.extract_strided_slice %208 {offsets = [2, 0], sizes = [1, 256], strides = [1, 1]} : vector<8x256xf32> to vector<1x256xf32>
    %c1_304 = arith.constant 1 : index
    %c0_305 = arith.constant 0 : index
    %218 = vector.load %arg14[%c1_304, %c0_305] : memref<8x1024xf32, #tpu.memory_space<vmem>>, vector<1x256xf32>
    tpu.vector_store %arg14[%c1_304, %c0_305], %217 {strides = array<i32>} : memref<8x1024xf32, #tpu.memory_space<vmem>>, vector<1x256xf32>,
    %219 = vector.extract_strided_slice %208 {offsets = [3, 0], sizes = [1, 256], strides = [1, 1]} : vector<8x256xf32> to vector<1x256xf32>
    %c1_306 = arith.constant 1 : index
    %c256_307 = arith.constant 256 : index
    %220 = vector.load %arg14[%c1_306, %c256_307] : memref<8x1024xf32, #tpu.memory_space<vmem>>, vector<1x256xf32>
    tpu.vector_store %arg14[%c1_306, %c256_307], %219 {strides = array<i32>} : memref<8x1024xf32, #tpu.memory_space<vmem>>, vector<1x256xf32>,
    %221 = vector.extract_strided_slice %208 {offsets = [4, 0], sizes = [1, 256], strides = [1, 1]} : vector<8x256xf32> to vector<1x256xf32>
    %c1_308 = arith.constant 1 : index
    %c512_309 = arith.constant 512 : index
    %222 = vector.load %arg14[%c1_308, %c512_309] : memref<8x1024xf32, #tpu.memory_space<vmem>>, vector<1x256xf32>
    tpu.vector_store %arg14[%c1_308, %c512_309], %221 {strides = array<i32>} : memref<8x1024xf32, #tpu.memory_space<vmem>>, vector<1x256xf32>,
    %223 = vector.extract_strided_slice %208 {offsets = [5, 0], sizes = [1, 256], strides = [1, 1]} : vector<8x256xf32> to vector<1x256xf32>
    %c1_310 = arith.constant 1 : index
    %c768_311 = arith.constant 768 : index
    %224 = vector.load %arg14[%c1_310, %c768_311] : memref<8x1024xf32, #tpu.memory_space<vmem>>, vector<1x256xf32>
    tpu.vector_store %arg14[%c1_310, %c768_311], %223 {strides = array<i32>} : memref<8x1024xf32, #tpu.memory_space<vmem>>, vector<1x256xf32>,
    %225 = vector.extract_strided_slice %208 {offsets = [4, 0], sizes = [1, 256], strides = [1, 1]} : vector<8x256xf32> to vector<1x256xf32>
    %c2_312 = arith.constant 2 : index
    %c0_313 = arith.constant 0 : index
    %226 = vector.load %arg14[%c2_312, %c0_313] : memref<8x1024xf32, #tpu.memory_space<vmem>>, vector<1x256xf32>
    tpu.vector_store %arg14[%c2_312, %c0_313], %225 {strides = array<i32>} : memref<8x1024xf32, #tpu.memory_space<vmem>>, vector<1x256xf32>,
    %227 = vector.extract_strided_slice %208 {offsets = [5, 0], sizes = [1, 256], strides = [1, 1]} : vector<8x256xf32> to vector<1x256xf32>
    %c2_314 = arith.constant 2 : index
    %c256_315 = arith.constant 256 : index
    %228 = vector.load %arg14[%c2_314, %c256_315] : memref<8x1024xf32, #tpu.memory_space<vmem>>, vector<1x256xf32>
    tpu.vector_store %arg14[%c2_314, %c256_315], %227 {strides = array<i32>} : memref<8x1024xf32, #tpu.memory_space<vmem>>, vector<1x256xf32>,
    %229 = vector.extract_strided_slice %208 {offsets = [6, 0], sizes = [1, 256], strides = [1, 1]} : vector<8x256xf32> to vector<1x256xf32>
    %c2_316 = arith.constant 2 : index
    %c512_317 = arith.constant 512 : index
    %230 = vector.load %arg14[%c2_316, %c512_317] : memref<8x1024xf32, #tpu.memory_space<vmem>>, vector<1x256xf32>
    tpu.vector_store %arg14[%c2_316, %c512_317], %229 {strides = array<i32>} : memref<8x1024xf32, #tpu.memory_space<vmem>>, vector<1x256xf32>,
    %231 = vector.extract_strided_slice %208 {offsets = [7, 0], sizes = [1, 256], strides = [1, 1]} : vector<8x256xf32> to vector<1x256xf32>
    %c2_318 = arith.constant 2 : index
    %c768_319 = arith.constant 768 : index
    %232 = vector.load %arg14[%c2_318, %c768_319] : memref<8x1024xf32, #tpu.memory_space<vmem>>, vector<1x256xf32>
    tpu.vector_store %arg14[%c2_318, %c768_319], %231 {strides = array<i32>} : memref<8x1024xf32, #tpu.memory_space<vmem>>, vector<1x256xf32>,
    %c0_320 = arith.constant 0 : index
    %c0_321 = arith.constant 0 : index
    %233 = vector.load %arg14[%c0_320, %c0_321] : memref<8x1024xf32, #tpu.memory_space<vmem>>, vector<8x1024xf32>
    %234 = arith.truncf %233 : vector<8x1024xf32> to vector<8x1024xbf16>
    %c0_322 = arith.constant 0 : index
    %c0_323 = arith.constant 0 : index
    %235 = vector.load %arg4[%c0_322, %c0_323] : memref<1024x192xbf16, #tpu.memory_space<vmem>>, vector<1024x192xbf16>
    %cst_324 = arith.constant dense<0.000000e+00> : vector<8x192xf32>
    %236 = tpu.matmul %234, %235, %cst_324 {dimension_numbers = #tpu.dot_dimension_numbers<[1], [0], [0], [1], [0, 0, 1, 1], [], []>} : vector<8x1024xbf16>, vector<1024x192xbf16>, vector<8x192xf32> -> vector<8x192xf32>
    %c0_325 = arith.constant 0 : index
    %c0_326 = arith.constant 0 : index
    %237 = vector.load %arg5[%c0_325, %c0_326] : memref<1x192xf32, #tpu.memory_space<vmem>>, vector<1x192xf32>
    %238 = vector.broadcast %237 : vector<1x192xf32> to vector<8x192xf32>
    %239 = arith.addf %236, %238 : vector<8x192xf32>
    %cst_327 = arith.constant 0.000000e+00 : f32
    %240 = vector.broadcast %cst_327 : f32 to vector<8x192xf32>
    %241 = arith.maximumf %239, %240 : vector<8x192xf32>
    %242 = vector.extract_strided_slice %241 {offsets = [0, 0], sizes = [1, 192], strides = [1, 1]} : vector<8x192xf32> to vector<1x192xf32>
    %c0_328 = arith.constant 0 : index
    %c0_329 = arith.constant 0 : index
    %243 = vector.load %arg15[%c0_328, %c0_329] : memref<8x768xf32, #tpu.memory_space<vmem>>, vector<1x192xf32>
    tpu.vector_store %arg15[%c0_328, %c0_329], %242 {strides = array<i32>} : memref<8x768xf32, #tpu.memory_space<vmem>>, vector<1x192xf32>,
    %244 = vector.extract_strided_slice %241 {offsets = [1, 0], sizes = [1, 192], strides = [1, 1]} : vector<8x192xf32> to vector<1x192xf32>
    %c0_330 = arith.constant 0 : index
    %c256_331 = arith.constant 256 : index
    %245 = vector.load %arg15[%c0_330, %c256_331] : memref<8x768xf32, #tpu.memory_space<vmem>>, vector<1x192xf32>
    tpu.vector_store %arg15[%c0_330, %c256_331], %244 {strides = array<i32>} : memref<8x768xf32, #tpu.memory_space<vmem>>, vector<1x192xf32>,
    %246 = vector.extract_strided_slice %241 {offsets = [2, 0], sizes = [1, 192], strides = [1, 1]} : vector<8x192xf32> to vector<1x192xf32>
    %c0_332 = arith.constant 0 : index
    %c512_333 = arith.constant 512 : index
    %247 = vector.load %arg15[%c0_332, %c512_333] : memref<8x768xf32, #tpu.memory_space<vmem>>, vector<1x192xf32>
    tpu.vector_store %arg15[%c0_332, %c512_333], %246 {strides = array<i32>} : memref<8x768xf32, #tpu.memory_space<vmem>>, vector<1x192xf32>,
    %c0_334 = arith.constant 0 : index
    %c0_335 = arith.constant 0 : index
    %248 = vector.load %arg15[%c0_334, %c0_335] : memref<8x768xf32, #tpu.memory_space<vmem>>, vector<8x768xf32>
    %249 = arith.truncf %248 : vector<8x768xf32> to vector<8x768xbf16>
    %c0_336 = arith.constant 0 : index
    %c0_337 = arith.constant 0 : index
    %250 = vector.load %arg6[%c0_336, %c0_337] : memref<768x64xbf16, #tpu.memory_space<vmem>>, vector<768x64xbf16>
    %cst_338 = arith.constant dense<0.000000e+00> : vector<8x64xf32>
    %251 = tpu.matmul %249, %250, %cst_338 {dimension_numbers = #tpu.dot_dimension_numbers<[1], [0], [0], [1], [0, 0, 1, 1], [], []>} : vector<8x768xbf16>, vector<768x64xbf16>, vector<8x64xf32> -> vector<8x64xf32>
    %c0_339 = arith.constant 0 : index
    %c0_340 = arith.constant 0 : index
    %252 = vector.load %arg7[%c0_339, %c0_340] : memref<1x64xf32, #tpu.memory_space<vmem>>, vector<1x64xf32>
    %253 = vector.broadcast %252 : vector<1x64xf32> to vector<8x64xf32>
    %254 = arith.addf %251, %253 : vector<8x64xf32>
    %cst_341 = arith.constant 0.000000e+00 : f32
    %255 = vector.broadcast %cst_341 : f32 to vector<8x64xf32>
    %256 = arith.maximumf %254, %255 : vector<8x64xf32>
    %257 = vector.extract_strided_slice %256 {offsets = [0, 0], sizes = [1, 64], strides = [1, 1]} : vector<8x64xf32> to vector<1x64xf32>
    %c0_342 = arith.constant 0 : index
    %c0_343 = arith.constant 0 : index
    %258 = vector.load %arg16[%c0_342, %c0_343] : memref<8x128xf32, #tpu.memory_space<vmem>>, vector<1x64xf32>
    tpu.vector_store %arg16[%c0_342, %c0_343], %257 {strides = array<i32>} : memref<8x128xf32, #tpu.memory_space<vmem>>, vector<1x64xf32>,
    %c0_344 = arith.constant 0 : index
    %c0_345 = arith.constant 0 : index
    %259 = vector.load %arg16[%c0_344, %c0_345] : memref<8x128xf32, #tpu.memory_space<vmem>>, vector<8x128xf32>
    %260 = arith.truncf %259 : vector<8x128xf32> to vector<8x128xbf16>
    %c0_346 = arith.constant 0 : index
    %c0_347 = arith.constant 0 : index
    %261 = vector.load %arg8[%c0_346, %c0_347] : memref<128x512xbf16, #tpu.memory_space<vmem>>, vector<128x512xbf16>
    %cst_348 = arith.constant dense<0.000000e+00> : vector<8x512xf32>
    %262 = tpu.matmul %260, %261, %cst_348 {dimension_numbers = #tpu.dot_dimension_numbers<[1], [0], [0], [1], [0, 0, 1, 1], [], []>} : vector<8x128xbf16>, vector<128x512xbf16>, vector<8x512xf32> -> vector<8x512xf32>
    %c0_349 = arith.constant 0 : index
    %c0_350 = arith.constant 0 : index
    %263 = vector.load %arg9[%c0_349, %c0_350] : memref<1x512xf32, #tpu.memory_space<vmem>>, vector<1x512xf32>
    %264 = vector.broadcast %263 : vector<1x512xf32> to vector<8x512xf32>
    %265 = arith.addf %262, %264 : vector<8x512xf32>
    %cst_351 = arith.constant 0.000000e+00 : f32
    %266 = vector.broadcast %cst_351 : f32 to vector<8x512xf32>
    %267 = arith.maximumf %265, %266 : vector<8x512xf32>
    %268 = arith.truncf %267 : vector<8x512xf32> to vector<8x512xbf16>
    %c0_352 = arith.constant 0 : index
    %c0_353 = arith.constant 0 : index
    %269 = vector.load %arg10[%c0_352, %c0_353] : memref<512x128xbf16, #tpu.memory_space<vmem>>, vector<512x128xbf16>
    %cst_354 = arith.constant dense<0.000000e+00> : vector<8x128xf32>
    %270 = tpu.matmul %268, %269, %cst_354 {dimension_numbers = #tpu.dot_dimension_numbers<[1], [0], [0], [1], [0, 0, 1, 1], [], []>} : vector<8x512xbf16>, vector<512x128xbf16>, vector<8x128xf32> -> vector<8x128xf32>
    %c0_355 = arith.constant 0 : index
    %c0_356 = arith.constant 0 : index
    %271 = vector.load %arg11[%c0_355, %c0_356] : memref<1x128xf32, #tpu.memory_space<vmem>>, vector<1x128xf32>
    %272 = vector.broadcast %271 : vector<1x128xf32> to vector<8x128xf32>
    %273 = arith.addf %270, %272 : vector<8x128xf32>
    %c0_357 = arith.constant 0 : index
    %c0_358 = arith.constant 0 : index
    %c0_359 = arith.constant 0 : index
    %274 = vector.load %arg12[%c0_357, %c0_358, %c0_359] : memref<1x8x128xf32, #tpu.memory_space<vmem>>, vector<1x8x128xf32>
    %275 = vector.shape_cast %274 : vector<1x8x128xf32> to vector<8x128xf32>
    %276 = vector.shape_cast %273 : vector<8x128xf32> to vector<1x8x128xf32>
    tpu.vector_store %arg12[%c0_357, %c0_358, %c0_359], %276 {strides = array<i32>} : memref<1x8x128xf32, #tpu.memory_space<vmem>>, vector<1x8x128xf32>,
    return
  }
  func.func @transform_0(%arg0: i32) -> (i32, i32, i32) {
    %c0_i32 = arith.constant 0 : i32
    %c0_i32_0 = arith.constant 0 : i32
    %c0_i32_1 = arith.constant 0 : i32
    return %arg0, %c0_i32, %c0_i32_0 : i32, i32, i32
  }
  func.func @transform_1(%arg0: i32) -> (i32, i32) {
    %c0_i32 = arith.constant 0 : i32
    %c0_i32_0 = arith.constant 0 : i32
    %c0_i32_1 = arith.constant 0 : i32
    return %c0_i32, %c0_i32_0 : i32, i32
  }
  func.func @transform_2(%arg0: i32) -> (i32, i32) {
    %c0_i32 = arith.constant 0 : i32
    %c0_i32_0 = arith.constant 0 : i32
    %c0_i32_1 = arith.constant 0 : i32
    return %c0_i32, %c0_i32_0 : i32, i32
  }
  func.func @transform_3(%arg0: i32) -> (i32, i32) {
    %c0_i32 = arith.constant 0 : i32
    %c0_i32_0 = arith.constant 0 : i32
    %c0_i32_1 = arith.constant 0 : i32
    return %c0_i32, %c0_i32_0 : i32, i32
  }
  func.func @transform_4(%arg0: i32) -> (i32, i32) {
    %c0_i32 = arith.constant 0 : i32
    %c0_i32_0 = arith.constant 0 : i32
    %c0_i32_1 = arith.constant 0 : i32
    return %c0_i32, %c0_i32_0 : i32, i32
  }
  func.func @transform_5(%arg0: i32) -> (i32, i32) {
    %c0_i32 = arith.constant 0 : i32
    %c0_i32_0 = arith.constant 0 : i32
    %c0_i32_1 = arith.constant 0 : i32
    return %c0_i32, %c0_i32_0 : i32, i32
  }
  func.func @transform_6(%arg0: i32) -> (i32, i32) {
    %c0_i32 = arith.constant 0 : i32
    %c0_i32_0 = arith.constant 0 : i32
    %c0_i32_1 = arith.constant 0 : i32
    return %c0_i32, %c0_i32_0 : i32, i32
  }
  func.func @transform_7(%arg0: i32) -> (i32, i32) {
    %c0_i32 = arith.constant 0 : i32
    %c0_i32_0 = arith.constant 0 : i32
    %c0_i32_1 = arith.constant 0 : i32
    return %c0_i32, %c0_i32_0 : i32, i32
  }
  func.func @transform_8(%arg0: i32) -> (i32, i32) {
    %c0_i32 = arith.constant 0 : i32
    %c0_i32_0 = arith.constant 0 : i32
    %c0_i32_1 = arith.constant 0 : i32
    return %c0_i32, %c0_i32_0 : i32, i32
  }
  func.func @transform_9(%arg0: i32) -> (i32, i32) {
    %c0_i32 = arith.constant 0 : i32
    %c0_i32_0 = arith.constant 0 : i32
    %c0_i32_1 = arith.constant 0 : i32
    return %c0_i32, %c0_i32_0 : i32, i32
  }
  func.func @transform_10(%arg0: i32) -> (i32, i32) {
    %c0_i32 = arith.constant 0 : i32
    %c0_i32_0 = arith.constant 0 : i32
    %c0_i32_1 = arith.constant 0 : i32
    return %c0_i32, %c0_i32_0 : i32, i32
  }
  func.func @transform_11(%arg0: i32) -> (i32, i32, i32) {
    %c0_i32 = arith.constant 0 : i32
    %c0_i32_0 = arith.constant 0 : i32
    %c0_i32_1 = arith.constant 0 : i32
    return %arg0, %c0_i32, %c0_i32_0 : i32, i32, i32
  }
}

</mosaic_0001>

<bundles_post_ra>
// kernel: network_forward.1
= control target key start
LH: loop header
LB: loop body
LE: loop exit
PB: predicated region body
PF: predicated region fallthrough
CT: control target
= control target key end

     0   :  { %s6458_s17 = smov 0   ;;  %s8247_s0 = inlined_call_operand.vmem [shape: f32[2,36,144], index: 0, kind: input, shape index: {}]   ;;  %s8248_s1 = inlined_call_operand.vmem [shape: bf16[2048,256], index: 1, kind: input, shape index: {}]   ;;  %s8249_s2 = inlined_call_operand.vmem [shape: f32[1,256], index: 2, kind: input, shape index: {}]   ;;  %s8250_s3 = inlined_call_operand.vmem [shape: bf16[1024,192], index: 3, kind: input, shape index: {}]   ;;  %s8251_s4 = inlined_call_operand.vmem [shape: f32[1,192], index: 4, kind: input, shape index: {}]   ;;  %s8252_s5 = inlined_call_operand.vmem [shape: bf16[768,64], index: 5, kind: input, shape index: {}]   ;;  %s8253_s6 = inlined_call_operand.vmem [shape: f32[1,64], index: 6, kind: input, shape index: {}]   ;;  %s8254_s7 = inlined_call_operand.vmem [shape: bf16[128,512], index: 7, kind: input, shape index: {}]   ;;  %s8255_s8 = inlined_call_operand.vmem [shape: f32[1,512], index: 8, kind: input, shape index: {}]   ;;  %s8256_s9 = inlined_call_operand.vmem [shape: bf16[512,128], index: 9, kind: input, shape index: {}]   ;;  %s8257_s10 = inlined_call_operand.vmem [shape: f32[1,128], index: 10, kind: input, shape index: {}]   ;;  %s8258_s11 = inlined_call_operand.vmem [shape: f32[2,8,128], index: 11, kind: output, shape index: {}]  }
   0x1 LB: > { %s4948_s18 = sadd.s32 4294967295, %s6393_s17   ;;  %p4952_p0 = scmp.ge.s32.totalorder %s6393_s17, 1  ;;  %s6393_s17 = sphi %s6458_s17, %s21_s17  }
   0x2   : > { %p337_p1 = scmp.lt.s32.totalorder %s6393_s17, 3 }
   0x4   : > { %p338_p2 = pnand %p4952_p0, %p337_p1 }
   0x5   : > { %v5684_v0 = vld [vmem:[%s8248_s1 + $0x4] ss:$8 sps:$4 sm:$0xff] (!%p338_p2)   ;;  %v5686_v1 = vld [vmem:[%s8248_s1] ss:$8 sps:$4 sm:$0xff] (!%p338_p2)   ;;  %v6395_v2 = vmov (!%p338_p2), 0.0   ;;  %p376_p3 = scmp.lt.s32.totalorder (!%p338_p2), %s4948_s18, 1  ;;  %v418_v11 = vlaneseq (!%p338_p2) }
   0x6   : > { %341 = sbr.rel (%p338_p2) target bundleno = 1944 (0x798), region = 64  ;;  %386 = vst [vmem:[#allocation2] sm:$0xff] (!%p338_p2), %v6395_v2  ;;  %387 = vst [vmem:[#allocation2 + $0x8] sm:$0xff] (!%p338_p2), %v6395_v2  ;;  %2291 = vmatprep.subr.bf16.mxu0 (!%p338_p2), %v5684_v0  ;;  %v5687_v3 = vld [vmem:[%s8248_s1 + $0x14] ss:$8 sps:$4 sm:$0xff] (!%p338_p2)   ;;  %vm4243_vm3 = vcmask (!%p338_p2), 516096  }
   0x7   : > { %388 = vst [vmem:[#allocation2 + $0x10] sm:$0xff] (!%p338_p2), %v6395_v2  ;;  %389 = vst [vmem:[#allocation2 + $0x18] sm:$0xff] (!%p338_p2), %v6395_v2  ;;  %2292 = vmatpush1.bf16.msra.mxu0 (!%p338_p2), %v5686_v1  ;;  %v5689_v4 = vld [vmem:[%s8248_s1 + $0x10] ss:$8 sps:$4 sm:$0xff] (!%p338_p2)   ;;  %v5690_v5 = vld [vmem:[%s8248_s1 + $0x24] ss:$8 sps:$4 sm:$0xff] (!%p338_p2)  }
   0x8   : > { %390 = vst [vmem:[#allocation2 + $0x20] sm:$0xff] (!%p338_p2), %v6395_v2  ;;  %391 = vst [vmem:[#allocation2 + $0x28] sm:$0xff] (!%p338_p2), %v6395_v2  ;;  %2293 = vmatprep.subr.bf16.mxu0 (!%p338_p2), %v5687_v3  ;;  %v5692_v6 = vld [vmem:[%s8248_s1 + $0x20] ss:$8 sps:$4 sm:$0xff] (!%p338_p2)   ;;  %v5693_v7 = vld [vmem:[%s8248_s1 + $0x34] ss:$8 sps:$4 sm:$0xff] (!%p338_p2)  }
   0x9   : > { %392 = vst [vmem:[#allocation2 + $0x30] sm:$0xff] (!%p338_p2), %v6395_v2  ;;  %393 = vst [vmem:[#allocation2 + $0x38] sm:$0xff] (!%p338_p2), %v6395_v2  ;;  %v5695_v8 = vld [vmem:[%s8248_s1 + $0x30] ss:$8 sps:$4 sm:$0xff] (!%p338_p2)   ;;  %v5696_v9 = vld [vmem:[%s8248_s1 + $0x44] ss:$8 sps:$4 sm:$0xff] (!%p338_p2)  }
   0xa   : > { %394 = vst [vmem:[#allocation2 + $0x40] sm:$0xff] (!%p338_p2), %v6395_v2  ;;  %395 = vst [vmem:[#allocation2 + $0x48] sm:$0xff] (!%p338_p2), %v6395_v2  ;;  %v5698_v10 = vld [vmem:[%s8248_s1 + $0x40] ss:$8 sps:$4 sm:$0xff] (!%p338_p2)   ;;  %v5699_v12 = vld [vmem:[%s8248_s1 + $0x54] ss:$8 sps:$4 sm:$0xff] (!%p338_p2)  }
   0xb   : > { %396 = vst [vmem:[#allocation2 + $0x50] sm:$0xff] (!%p338_p2), %v6395_v2  ;;  %397 = vst [vmem:[#allocation2 + $0x58] sm:$0xff] (!%p338_p2), %v6395_v2  ;;  %2294 = vmatpush1.bf16.msra.mxu0 (!%p338_p2), %v5689_v4  ;;  %v5701_v13 = vld [vmem:[%s8248_s1 + $0x50] ss:$8 sps:$4 sm:$0xff] (!%p338_p2)   ;;  %vm6515_vm0 = vcmp.lt.s32.totalorder (!%p338_p2), %v418_v11, 144  ;;  %vm7565_vm1 = vcmp.lt.s32.totalorder (!%p338_p2), %v418_v11, 256 }
   0xc   : > { %398 = vst [vmem:[#allocation2 + $0x60] sm:$0xff] (!%p338_p2), %v6395_v2  ;;  %399 = vst [vmem:[#allocation2 + $0x68] sm:$0xff] (!%p338_p2), %v6395_v2  ;;  %2295 = vmatprep.subr.bf16.mxu0 (!%p338_p2), %v5690_v5  ;;  %v5702_v15 = vld [vmem:[%s8248_s1 + $0x64] ss:$8 sps:$4 sm:$0xff] (!%p338_p2)   ;;  %v5704_v16 = vld [vmem:[%s8248_s1 + $0x60] ss:$8 sps:$4 sm:$0xff] (!%p338_p2)  }
   0xd   : > { %400 = vst [vmem:[#allocation2 + $0x70] sm:$0xff] %v6395_v2  ;;  %401 = vst [vmem:[#allocation2 + $0x78] sm:$0xff] %v6395_v2  ;;  %s8264_s18 = smov (!%p376_p3, %s4948_s18), 1  ;;  %v5705_v18 = vld [vmem:[%s8248_s1 + $0x74] ss:$8 sps:$4 sm:$0xff]   ;;  %vm3698_vm2 = vcmp.lt.s32.totalorder %v418_v11, 192 }
   0xe   : > { %402 = vst [vmem:[#allocation3] sm:$0xff] %v6395_v2  ;;  %403 = vst [vmem:[#allocation3 + $0x8] sm:$0xff] %v6395_v2  ;;  %s5672_s20 = smul.u32 80, %s8264_s18  ;;  %v5707_v26 = vld [vmem:[%s8248_s1 + $0x70] ss:$8 sps:$4 sm:$0xff]   ;;  %s4954_s29 = sshll.u32 %s8264_s18, 3 }
   0xf   : > { %404 = vst [vmem:[#allocation3 + $0x10] sm:$0xff] %v6395_v2  ;;  %405 = vst [vmem:[#allocation3 + $0x18] sm:$0xff] %v6395_v2  ;;  %2296 = vmatpush1.bf16.msra.mxu0 %v5692_v6  ;;  %v5708_v27 = vld [vmem:[%s8248_s1 + $0x84] ss:$8 sps:$4 sm:$0xff]   ;;  %v5710_v28 = vld [vmem:[%s8248_s1 + $0x80] ss:$8 sps:$4 sm:$0xff]   ;;  %s384_s13 = scalar_lea.vmem %s8258_s11, %s4954_s29 }
  0x10   : > { %406 = vst [vmem:[#allocation3 + $0x20] sm:$0xff] %v6395_v2  ;;  %407 = vst [vmem:[#allocation3 + $0x28] sm:$0xff] %v6395_v2  ;;  %2297 = vmatprep.subr.bf16.mxu0 %v5693_v7  ;;  %s6509_s27 = scalar_lea.vmem %s8247_s0, %s5672_s20  ;;  %v5711_v29 = vld [vmem:[%s8248_s1 + $0x94] ss:$8 sps:$4 sm:$0xff]   ;;  %v5713_v32 = vld [vmem:[%s8248_s1 + $0x90] ss:$8 sps:$4 sm:$0xff]  }
  0x11   : > { %408 = vst [vmem:[#allocation3 + $0x30] sm:$0xff] %v6395_v2  ;;  %409 = vst [vmem:[#allocation3 + $0x38] sm:$0xff] %v6395_v2  ;;  %v417_v17 = vld [vmem:[%s6509_s27] ss:$8 sm:$0x3] }
  0x12   : > { %410 = vst [vmem:[#allocation4] sm:$0xff] %v6395_v2  ;;  %411 = vst [vmem:[#allocation4 + $0x8] sm:$0xff] %v6395_v2  ;;  %v4962_v19 = vld [vmem:[%s6509_s27 + $0x4] ss:$8 sm:$0x3] }
  0x13   : > { %412 = vst [vmem:[#allocation4 + $0x10] sm:$0xff] %v6395_v2  ;;  %413 = vst [vmem:[#allocation4 + $0x18] sm:$0xff] %v6395_v2  ;;  %2298 = vmatpush1.bf16.msra.mxu0 %v5695_v8  ;;  %v4970_v20 = vld [vmem:[%s6509_s27 + $0x10] ss:$8 sm:$0x3] }
  0x14   : > { %414 = vst [vmem:[#allocation4 + $0x20] sm:$0xff] %v6395_v2  ;;  %415 = vst [vmem:[#allocation4 + $0x28] sm:$0xff] %v6395_v2  ;;  %2299 = vmatprep.subr.bf16.mxu0 %v5696_v9  ;;  %v4978_v21 = vld [vmem:[%s6509_s27 + $0x14] ss:$8 sm:$0x3] }
  0x15   : > { %416 = vst [vmem:[#allocation5] sm:$0xff] %v6395_v2  ;;  %422 = vst.msk [vmem:[#allocation2] ss:$8 sm:$0x3] %vm6515_vm0, %v417_v17  ;;  %v5714_v33 = vld [vmem:[%s8248_s1 + $0xa4] ss:$8 sps:$4 sm:$0xff]  }
  0x16   : > { %461 = vst.msk [vmem:[#allocation2 + $0x1] ss:$8 sm:$0x3] %vm6515_vm0, %v4962_v19  ;;  %497 = vst.msk [vmem:[#allocation2 + $0x2] ss:$8 sm:$0x3] %vm6515_vm0, %v4970_v20 }
  0x17   : > { %2300 = vmatpush1.bf16.msra.mxu0 %v5698_v10  ;;  %v4986_v22 = vld [vmem:[%s6509_s27 + $0x20] ss:$8 sm:$0x3]  ;;  %533 = vst.msk [vmem:[#allocation2 + $0x3] ss:$8 sm:$0x3] %vm6515_vm0, %v4978_v21 }
  0x18   : > { %2301 = vmatprep.subr.bf16.mxu0 %v5699_v12  ;;  %569 = vst.msk [vmem:[#allocation2 + $0x4] ss:$8 sm:$0x3] %vm6515_vm0, %v4986_v22  ;;  %v4994_v23 = vld [vmem:[%s6509_s27 + $0x24] ss:$8 sm:$0x3] }
  0x19   : > { %v5002_v24 = vld [vmem:[%s6509_s27 + $0x30] ss:$8 sm:$0x3]  ;;  %605 = vst.msk [vmem:[#allocation2 + $0x5] ss:$8 sm:$0x3] %vm6515_vm0, %v4994_v23 }
  0x1a   : > { %641 = vst.msk [vmem:[#allocation2 + $0x6] ss:$8 sm:$0x3] %vm6515_vm0, %v5002_v24  ;;  %v5010_v25 = vld [vmem:[%s6509_s27 + $0x34] ss:$8 sm:$0x3] }
  0x1b   : > { %2302 = vmatpush1.bf16.msra.mxu0 %v5701_v13  ;;  %677 = vst.msk [vmem:[#allocation2 + $0x7] ss:$8 sm:$0x3] %vm6515_vm0, %v5010_v25  ;;  %v5716_v34 = vld [vmem:[%s8248_s1 + $0xa0] ss:$8 sps:$4 sm:$0xff]  }
  0x1c   : > { %2303 = vmatprep.subr.bf16.mxu0 %v5702_v15  ;;  %v5717_v35 = vld [vmem:[%s8248_s1 + $0xb4] ss:$8 sps:$4 sm:$0xff]   ;;  %v5719_v36 = vld [vmem:[%s8248_s1 + $0xb0] ss:$8 sps:$4 sm:$0xff]   ;;  %v5720_v37 = vld [vmem:[%s8248_s1 + $0xc4] ss:$8 sps:$4 sm:$0xff]  }
  0x1d   : > { %v5722_v38 = vld [vmem:[%s8248_s1 + $0xc0] ss:$8 sps:$4 sm:$0xff]   ;;  %v5723_v39 = vld [vmem:[%s8248_s1 + $0xd4] ss:$8 sps:$4 sm:$0xff]   ;;  %v5725_v48 = vld [vmem:[%s8248_s1 + $0xd0] ss:$8 sps:$4 sm:$0xff]  }
  0x1e   : > { %v4955_v40 = vld [vmem:[%s6509_s27 + $0x1] ss:$8 sm:$0x3]  ;;  %v4963_v41 = vld [vmem:[%s6509_s27 + $0x5] ss:$8 sm:$0x3] }
  0x1f   : > { %2304 = vmatpush1.bf16.msra.mxu0 %v5704_v16  ;;  %427 = vst.msk [vmem:[#allocation2 + $0x10] ss:$8 sm:$0x3] %vm6515_vm0, %v4955_v40  ;;  %465 = vst.msk [vmem:[#allocation2 + $0x11] ss:$8 sm:$0x3] %vm6515_vm0, %v4963_v41 }
  0x20   : > { %2305 = vmatprep.subr.bf16.mxu0 %v5705_v18  ;;  %v4971_v42 = vld [vmem:[%s6509_s27 + $0x11] ss:$8 sm:$0x3]  ;;  %v4979_v43 = vld [vmem:[%s6509_s27 + $0x15] ss:$8 sm:$0x3] }
  0x21   : > { %501 = vst.msk [vmem:[#allocation2 + $0x12] ss:$8 sm:$0x3] %vm6515_vm0, %v4971_v42  ;;  %537 = vst.msk [vmem:[#allocation2 + $0x13] ss:$8 sm:$0x3] %vm6515_vm0, %v4979_v43 }
  0x22   : > { %v712_v30 = vld [vmem:[#allocation2 + $0x8] sm:$0xff]  ;;  %v5003_v46 = vld [vmem:[%s6509_s27 + $0x31] ss:$8 sm:$0x3]  ;;  %v5729_v51 = vld [vmem:[%s8248_s1 + $0xf4] ss:$8 sps:$4 sm:$0xff]  }
  0x23   : > { %2306 = vmatpush1.bf16.msra.mxu0 %v5707_v26  ;;  %v728_v31 = vpack.c.bf16 %v712_v30, %v712_v30  ;;  %v4987_v44 = vld [vmem:[%s6509_s27 + $0x21] ss:$8 sm:$0x3]  ;;  %v4995_v45 = vld [vmem:[%s6509_s27 + $0x25] ss:$8 sm:$0x3] }
  0x24   : > { %2307 = vmatprep.subr.bf16.mxu0 %v5708_v27  ;;  %573 = vst.msk [vmem:[#allocation2 + $0x14] ss:$8 sm:$0x3] %vm6515_vm0, %v4987_v44  ;;  %609 = vst.msk [vmem:[#allocation2 + $0x15] ss:$8 sm:$0x3] %vm6515_vm0, %v4995_v45 }
  0x25   : > { %2323 = vmatprep.mubr.bf16.mxu0 %v728_v31  ;;  %v5011_v47 = vld [vmem:[%s6509_s27 + $0x35] ss:$8 sm:$0x3]  ;;  %645 = vst.msk [vmem:[#allocation2 + $0x16] ss:$8 sm:$0x3] %vm6515_vm0, %v5003_v46 }
  0x26   : > { %681 = vst.msk [vmem:[#allocation2 + $0x17] ss:$8 sm:$0x3] %vm6515_vm0, %v5011_v47  ;;  %v5726_v49 = vld [vmem:[%s8248_s1 + $0xe4] ss:$8 sps:$4 sm:$0xff]  }
  0x27   : > { %2308 = vmatpush1.bf16.msra.mxu0 %v5710_v28  ;;  %v5728_v50 = vld [vmem:[%s8248_s1 + $0xe0] ss:$8 sps:$4 sm:$0xff]   ;;  %v5731_v52 = vld [vmem:[%s8248_s1 + $0xf0] ss:$8 sps:$4 sm:$0xff]   ;;  %v5734_v54 = vld [vmem:[%s8248_s1 + $0x104] ss:$8 sps:$4 sm:$0xff]  }
  0x28   : > { %2309 = vmatprep.subr.bf16.mxu0 %v5711_v29  ;;  %v711_v53 = vld [vmem:[#allocation2] sm:$0xff]  ;;  %v5737_v59 = vld [vmem:[%s8248_s1 + $0x114] ss:$8 sps:$4 sm:$0xff]   ;;  %v5735_v60 = vld [vmem:[%s8248_s1 + $0x110] ss:$8 sps:$4 sm:$0xff]  }
  0x29   : > { %v727_v56 = vpack.c.bf16 %v711_v53, %v711_v53  ;;  %v5732_v57 = vld [vmem:[%s8248_s1 + $0x100] ss:$8 sps:$4 sm:$0xff]   ;;  %v5740_v61 = vld [vmem:[%s8248_s1 + $0x124] ss:$8 sps:$4 sm:$0xff]   ;;  %v5743_v63 = vld [vmem:[%s8248_s1 + $0x134] ss:$8 sps:$4 sm:$0xff]  }
  0x2a   : > { %v5738_v62 = vld [vmem:[%s8248_s1 + $0x120] ss:$8 sps:$4 sm:$0xff]   ;;  %v5741_v0 = vld [vmem:[%s8248_s1 + $0x130] ss:$8 sps:$4 sm:$0xff]   ;;  %v5746_v3 = vld [vmem:[%s8248_s1 + $0x144] ss:$8 sps:$4 sm:$0xff]  }
  0x2b   : > { %2310 = vmatpush1.bf16.msra.mxu0 %v5713_v32  ;;  %v4956_v1 = vld [vmem:[%s6509_s27 + $0x2] ss:$8 sm:$0x3]  ;;  %v4964_v2 = vld [vmem:[%s6509_s27 + $0x6] ss:$8 sm:$0x3] }
  0x2c   : > { %2311 = vmatprep.subr.bf16.mxu0 %v5714_v33  ;;  %432 = vst.msk [vmem:[#allocation2 + $0x20] ss:$8 sm:$0x3] %vm6515_vm0, %v4956_v1  ;;  %469 = vst.msk [vmem:[#allocation2 + $0x21] ss:$8 sm:$0x3] %vm6515_vm0, %v4964_v2 }
  0x2d   : > { %v714_v55 = vld [vmem:[#allocation2 + $0x18] sm:$0xff]  ;;  %v4988_v6 = vld [vmem:[%s6509_s27 + $0x22] ss:$8 sm:$0x3]  ;;  %v5752_v15 = vld [vmem:[%s8248_s1 + $0x164] ss:$8 sps:$4 sm:$0xff]  }
  0x2e   : > { %v730_v58 = vpack.c.bf16 %v714_v55, %v714_v55  ;;  %v4972_v4 = vld [vmem:[%s6509_s27 + $0x12] ss:$8 sm:$0x3]  ;;  %v4980_v5 = vld [vmem:[%s6509_s27 + $0x16] ss:$8 sm:$0x3] }
  0x2f   : > { %2312 = vmatpush1.bf16.msra.mxu0 %v5716_v34  ;;  %505 = vst.msk [vmem:[#allocation2 + $0x22] ss:$8 sm:$0x3] %vm6515_vm0, %v4972_v4  ;;  %541 = vst.msk [vmem:[#allocation2 + $0x23] ss:$8 sm:$0x3] %vm6515_vm0, %v4980_v5 }
  0x30   : > { %2313 = vmatprep.subr.bf16.mxu0 %v5717_v35  ;;  %v4996_v7 = vld [vmem:[%s6509_s27 + $0x26] ss:$8 sm:$0x3]  ;;  %577 = vst.msk [vmem:[#allocation2 + $0x24] ss:$8 sm:$0x3] %vm6515_vm0, %v4988_v6 }
  0x31   : > { %613 = vst.msk [vmem:[#allocation2 + $0x25] ss:$8 sm:$0x3] %vm6515_vm0, %v4996_v7  ;;  %v5004_v8 = vld [vmem:[%s6509_s27 + $0x32] ss:$8 sm:$0x3] }
  0x32   : > { %v5012_v9 = vld [vmem:[%s6509_s27 + $0x36] ss:$8 sm:$0x3]  ;;  %649 = vst.msk [vmem:[#allocation2 + $0x26] ss:$8 sm:$0x3] %vm6515_vm0, %v5004_v8 }
  0x33   : > { %2314 = vmatpush1.bf16.msra.mxu0 %v5719_v36  ;;  %685 = vst.msk [vmem:[#allocation2 + $0x27] ss:$8 sm:$0x3] %vm6515_vm0, %v5012_v9  ;;  %v5744_v10 = vld [vmem:[%s8248_s1 + $0x140] ss:$8 sps:$4 sm:$0xff]   ;;  %v713_v42 = vld [vmem:[#allocation2 + $0x10] sm:$0xff] }
  0x34   : > { %2315 = vmatprep.subr.bf16.mxu0 %v5720_v37  ;;  %v5749_v12 = vld [vmem:[%s8248_s1 + $0x154] ss:$8 sps:$4 sm:$0xff]   ;;  %v5747_v13 = vld [vmem:[%s8248_s1 + $0x150] ss:$8 sps:$4 sm:$0xff]   ;;  %v5750_v16 = vld [vmem:[%s8248_s1 + $0x160] ss:$8 sps:$4 sm:$0xff]   ;;  %v729_v46 = vpack.c.bf16 %v713_v42, %v713_v42 }
  0x35   : > { %v5755_v17 = vld [vmem:[%s8248_s1 + $0x174] ss:$8 sps:$4 sm:$0xff]   ;;  %v5753_v18 = vld [vmem:[%s8248_s1 + $0x170] ss:$8 sps:$4 sm:$0xff]   ;;  %v5758_v19 = vld [vmem:[%s8248_s1 + $0x184] ss:$8 sps:$4 sm:$0xff]  }
  0x36   : > { %v5756_v20 = vld [vmem:[%s8248_s1 + $0x180] ss:$8 sps:$4 sm:$0xff]   ;;  %v5761_v21 = vld [vmem:[%s8248_s1 + $0x194] ss:$8 sps:$4 sm:$0xff]   ;;  %v5759_v22 = vld [vmem:[%s8248_s1 + $0x190] ss:$8 sps:$4 sm:$0xff]  }
  0x37   : > { %2316 = vmatpush1.bf16.msra.mxu0 %v5722_v38  ;;  %v5764_v23 = vld [vmem:[%s8248_s1 + $0x1a4] ss:$8 sps:$4 sm:$0xff]   ;;  %v5762_v24 = vld [vmem:[%s8248_s1 + $0x1a0] ss:$8 sps:$4 sm:$0xff]   ;;  %v5767_v25 = vld [vmem:[%s8248_s1 + $0x1b4] ss:$8 sps:$4 sm:$0xff]  }
  0x38   : > { %2317 = vmatprep.subr.bf16.mxu0 %v5723_v39  ;;  %v5765_v26 = vld [vmem:[%s8248_s1 + $0x1b0] ss:$8 sps:$4 sm:$0xff]   ;;  %v5770_v27 = vld [vmem:[%s8248_s1 + $0x1c4] ss:$8 sps:$4 sm:$0xff]   ;;  %v5768_v28 = vld [vmem:[%s8248_s1 + $0x1c0] ss:$8 sps:$4 sm:$0xff]  }
  0x39   : > { %v5773_v29 = vld [vmem:[%s8248_s1 + $0x1d4] ss:$8 sps:$4 sm:$0xff]   ;;  %v5771_v30 = vld [vmem:[%s8248_s1 + $0x1d0] ss:$8 sps:$4 sm:$0xff]   ;;  %v5776_v31 = vld [vmem:[%s8248_s1 + $0x1e4] ss:$8 sps:$4 sm:$0xff]  }
  0x3a   : > { %v5774_v32 = vld [vmem:[%s8248_s1 + $0x1e0] ss:$8 sps:$4 sm:$0xff]   ;;  %v5779_v33 = vld [vmem:[%s8248_s1 + $0x1f4] ss:$8 sps:$4 sm:$0xff]   ;;  %v5777_v36 = vld [vmem:[%s8248_s1 + $0x1f0] ss:$8 sps:$4 sm:$0xff]  }
  0x3b   : > { %2318 = vmatpush1.bf16.msra.mxu0 %v5725_v48  ;;  %v4957_v34 = vld [vmem:[%s6509_s27 + $0x3] ss:$8 sm:$0x3]  ;;  %v4965_v35 = vld [vmem:[%s6509_s27 + $0x7] ss:$8 sm:$0x3] }
  0x3c   : > { %2319 = vmatprep.subr.bf16.mxu0 %v5726_v49  ;;  %437 = vst.msk [vmem:[#allocation2 + $0x30] ss:$8 sm:$0x3] %vm6515_vm0, %v4957_v34  ;;  %473 = vst.msk [vmem:[#allocation2 + $0x31] ss:$8 sm:$0x3] %vm6515_vm0, %v4965_v35 }
  0x3d   : > { %v4973_v37 = vld [vmem:[%s6509_s27 + $0x13] ss:$8 sm:$0x3]  ;;  %v4981_v38 = vld [vmem:[%s6509_s27 + $0x17] ss:$8 sm:$0x3] }
  0x3e   : > { %v5782_v39 = vld [vmem:[%s8248_s1 + $0x204] ss:$8 sps:$4 sm:$0xff]   ;;  %509 = vst.msk [vmem:[#allocation2 + $0x32] ss:$8 sm:$0x3] %vm6515_vm0, %v4973_v37 }
  0x3f   : > { %2320 = vmatpush1.bf16.msra.mxu0 %v5728_v50  ;;  %545 = vst.msk [vmem:[#allocation2 + $0x33] ss:$8 sm:$0x3] %vm6515_vm0, %v4981_v38  ;;  %v4989_v40 = vld [vmem:[%s6509_s27 + $0x23] ss:$8 sm:$0x3] }
  0x40   : > { %2321 = vmatprep.subr.bf16.mxu0 %v5729_v51  ;;  %v4997_v41 = vld [vmem:[%s6509_s27 + $0x27] ss:$8 sm:$0x3]  ;;  %581 = vst.msk [vmem:[#allocation2 + $0x34] ss:$8 sm:$0x3] %vm6515_vm0, %v4989_v40 }
  0x41   : > { %v716_v43 = vld [vmem:[#allocation2 + $0x28] sm:$0xff]  ;;  %617 = vst.msk [vmem:[#allocation2 + $0x35] ss:$8 sm:$0x3] %vm6515_vm0, %v4997_v41  ;;  %v5785_v48 = vld [vmem:[%s8248_s1 + $0x214] ss:$8 sps:$4 sm:$0xff]  }
  0x42   : > { %v5005_v44 = vld [vmem:[%s6509_s27 + $0x33] ss:$8 sm:$0x3]  ;;  %v5013_v45 = vld [vmem:[%s6509_s27 + $0x37] ss:$8 sm:$0x3]  ;;  %v732_v49 = vpack.c.bf16 %v716_v43, %v716_v43 }
  0x43   : > { %2322 = vmatpush1.bf16.msra.mxu0 %v5731_v52  ;;  %653 = vst.msk [vmem:[#allocation2 + $0x36] ss:$8 sm:$0x3] %vm6515_vm0, %v5005_v44  ;;  %689 = vst.msk [vmem:[#allocation2 + $0x37] ss:$8 sm:$0x3] %vm6515_vm0, %v5013_v45 }
  0x44   : > { %2332 = vmatprep.subr.bf16.mxu0 %v5734_v54  ;;  %v5780_v47 = vld [vmem:[%s8248_s1 + $0x200] ss:$8 sps:$4 sm:$0xff]   ;;  %v5783_v50 = vld [vmem:[%s8248_s1 + $0x210] ss:$8 sps:$4 sm:$0xff]   ;;  %v5788_v51 = vld [vmem:[%s8248_s1 + $0x224] ss:$8 sps:$4 sm:$0xff]  }
  0x45   : > { %v5786_v52 = vld [vmem:[%s8248_s1 + $0x220] ss:$8 sps:$4 sm:$0xff]   ;;  %v5791_v53 = vld [vmem:[%s8248_s1 + $0x234] ss:$8 sps:$4 sm:$0xff]   ;;  %v5789_v54 = vld [vmem:[%s8248_s1 + $0x230] ss:$8 sps:$4 sm:$0xff]  }
  0x46   : > { %2324 = vmatmul.mubr.bf16.vlgmr.msra.gmra.mrb[0].mxu0 %v727_v56  ;;  %v5794_v55 = vld [vmem:[%s8248_s1 + $0x244] ss:$8 sps:$4 sm:$0xff]   ;;  %v5792_v56 = vld [vmem:[%s8248_s1 + $0x240] ss:$8 sps:$4 sm:$0xff]   ;;  %v5809_v1 = vld [vmem:[%s8248_s1 + $0x294] ss:$8 sps:$4 sm:$0xff]  }
  0x47   : > { %2333 = vmatpush1.bf16.msra.mxu0 %v5732_v57  ;;  %2364 = vmatprep.mubr.bf16.mxu0 %v730_v58  ;;  %v5797_v57 = vld [vmem:[%s8248_s1 + $0x254] ss:$8 sps:$4 sm:$0xff]   ;;  %v5795_v58 = vld [vmem:[%s8248_s1 + $0x250] ss:$8 sps:$4 sm:$0xff]   ;;  %v5810_v4 = vld [vmem:[%s8248_s1 + $0x2a0] ss:$8 sps:$4 sm:$0xff]  }
  0x48   : > { %2334 = vmatprep.subr.bf16.mxu0 %v5737_v59  ;;  %v5800_v59 = vld [vmem:[%s8248_s1 + $0x264] ss:$8 sps:$4 sm:$0xff]   ;;  %v5807_v2 = vld [vmem:[%s8248_s1 + $0x290] ss:$8 sps:$4 sm:$0xff]   ;;  %v5815_v5 = vld [vmem:[%s8248_s1 + $0x2b4] ss:$8 sps:$4 sm:$0xff]  }
  0x49   : > { %v5813_v6 = vld [vmem:[%s8248_s1 + $0x2b0] ss:$8 sps:$4 sm:$0xff]   ;;  %v5818_v7 = vld [vmem:[%s8248_s1 + $0x2c4] ss:$8 sps:$4 sm:$0xff]   ;;  %v5816_v8 = vld [vmem:[%s8248_s1 + $0x2c0] ss:$8 sps:$4 sm:$0xff]  }
  0x4a   : > { %v5821_v9 = vld [vmem:[%s8248_s1 + $0x2d4] ss:$8 sps:$4 sm:$0xff]   ;;  %v5834_v34 = vld [vmem:[%s8248_s1 + $0x320] ss:$8 sps:$4 sm:$0xff]   ;;  %v5842_v37 = vld [vmem:[%s8248_s1 + $0x344] ss:$8 sps:$4 sm:$0xff]  }
  0x4b   : > { %2335 = vmatpush1.bf16.msra.mxu0 %v5735_v60  ;;  %v5798_v60 = vld [vmem:[%s8248_s1 + $0x260] ss:$8 sps:$4 sm:$0xff]   ;;  %v5839_v35 = vld [vmem:[%s8248_s1 + $0x334] ss:$8 sps:$4 sm:$0xff]   ;;  %v5843_v40 = vld [vmem:[%s8248_s1 + $0x350] ss:$8 sps:$4 sm:$0xff]  }
  0x4c   : > { %2336 = vmatprep.subr.bf16.mxu0 %v5740_v61  ;;  %v5803_v61 = vld [vmem:[%s8248_s1 + $0x274] ss:$8 sps:$4 sm:$0xff]   ;;  %v5840_v38 = vld [vmem:[%s8248_s1 + $0x340] ss:$8 sps:$4 sm:$0xff]   ;;  %v5848_v41 = vld [vmem:[%s8248_s1 + $0x364] ss:$8 sps:$4 sm:$0xff]  }
  0x4d   : > { %v5846_v42 = vld [vmem:[%s8248_s1 + $0x360] ss:$8 sps:$4 sm:$0xff]   ;;  %v5851_v43 = vld [vmem:[%s8248_s1 + $0x374] ss:$8 sps:$4 sm:$0xff]   ;;  %v5849_v44 = vld [vmem:[%s8248_s1 + $0x370] ss:$8 sps:$4 sm:$0xff]  }
  0x4e   : > { %v5854_v45 = vld [vmem:[%s8248_s1 + $0x384] ss:$8 sps:$4 sm:$0xff]  }
  0x4f   : > { %2337 = vmatpush1.bf16.msra.mxu0 %v5738_v62  ;;  %v5801_v62 = vld [vmem:[%s8248_s1 + $0x270] ss:$8 sps:$4 sm:$0xff]   ;;  %v6068_v14 = vld [vmem:[%s8250_s3 + $0x4] ss:$8 sps:$4 sm:$0xff]  }
  0x50   : > { %2338 = vmatprep.subr.bf16.mxu0 %v5743_v63  ;;  %v5806_v63 = vld [vmem:[%s8248_s1 + $0x284] ss:$8 sps:$4 sm:$0xff]   ;;  %3514 = vmatprep.subr.bf16.mxu1 %v6068_v14  ;;  %v6037_v14 = vld [vmem:[%s8248_s1 + $0x754] ss:$8 sps:$4 sm:$0xff]  }
  0x53   : > { %2339 = vmatpush1.bf16.msra.mxu0 %v5741_v0  ;;  %v5804_v0 = vld [vmem:[%s8248_s1 + $0x280] ss:$8 sps:$4 sm:$0xff]  }
  0x54   : > { %2340 = vmatprep.subr.bf16.mxu0 %v5746_v3  ;;  %v5812_v3 = vld [vmem:[%s8248_s1 + $0x2a4] ss:$8 sps:$4 sm:$0xff]  }
  0x57   : > { %2341 = vmatpush1.bf16.msra.mxu0 %v5744_v10  ;;  %v5819_v10 = vld [vmem:[%s8248_s1 + $0x2d0] ss:$8 sps:$4 sm:$0xff]  }
  0x58   : > { %2342 = vmatprep.subr.bf16.mxu0 %v5749_v12  ;;  %v5824_v12 = vld [vmem:[%s8248_s1 + $0x2e4] ss:$8 sps:$4 sm:$0xff]  }
  0x5b   : > { %2343 = vmatpush1.bf16.msra.mxu0 %v5747_v13  ;;  %v5822_v13 = vld [vmem:[%s8248_s1 + $0x2e0] ss:$8 sps:$4 sm:$0xff]  }
  0x5c   : > { %2344 = vmatprep.subr.bf16.mxu0 %v5752_v15  ;;  %v5827_v15 = vld [vmem:[%s8248_s1 + $0x2f4] ss:$8 sps:$4 sm:$0xff]  }
  0x5f   : > { %2345 = vmatpush1.bf16.msra.mxu0 %v5750_v16  ;;  %v4958_v16 = vld [vmem:[%s6509_s27 + $0x4] ss:$8 sm:$0x3] }
  0x60   : > { %2346 = vmatprep.subr.bf16.mxu0 %v5755_v17  ;;  %v4966_v17 = vld [vmem:[%s6509_s27 + $0x10] ss:$8 sm:$0x3]  ;;  %442 = vst.msk [vmem:[#allocation2 + $0x40] ss:$8 sm:$0x3] %vm6515_vm0, %v4958_v16 }
  0x61   : > { %478 = vst.msk [vmem:[#allocation2 + $0x41] ss:$8 sm:$0x3] %vm6515_vm0, %v4966_v17  ;;  %v5882_v16 = vld [vmem:[%s8248_s1 + $0x420] ss:$8 sps:$4 sm:$0xff]  }
  0x62   : > { %v5887_v17 = vld [vmem:[%s8248_s1 + $0x434] ss:$8 sps:$4 sm:$0xff]  }
  0x63   : > { %2347 = vmatpush1.bf16.msra.mxu0 %v5753_v18  ;;  %v5825_v18 = vld [vmem:[%s8248_s1 + $0x2f0] ss:$8 sps:$4 sm:$0xff]  }
  0x64   : > { %2348 = vmatprep.subr.bf16.mxu0 %v5758_v19  ;;  %v4974_v19 = vld [vmem:[%s6509_s27 + $0x14] ss:$8 sm:$0x3] }
  0x65   : > { %514 = vst.msk [vmem:[#allocation2 + $0x42] ss:$8 sm:$0x3] %vm6515_vm0, %v4974_v19  ;;  %v5890_v19 = vld [vmem:[%s8248_s1 + $0x444] ss:$8 sps:$4 sm:$0xff]  }
  0x67   : > { %2349 = vmatpush1.bf16.msra.mxu0 %v5756_v20  ;;  %v4982_v20 = vld [vmem:[%s6509_s27 + $0x20] ss:$8 sm:$0x3] }
  0x68   : > { %2350 = vmatprep.subr.bf16.mxu0 %v5761_v21  ;;  %v5830_v21 = vld [vmem:[%s8248_s1 + $0x304] ss:$8 sps:$4 sm:$0xff]   ;;  %550 = vst.msk [vmem:[#allocation2 + $0x43] ss:$8 sm:$0x3] %vm6515_vm0, %v4982_v20 }
  0x69   : > { %v5888_v20 = vld [vmem:[%s8248_s1 + $0x440] ss:$8 sps:$4 sm:$0xff]  }
  0x6b   : > { %2351 = vmatpush1.bf16.msra.mxu0 %v5759_v22  ;;  %v4990_v22 = vld [vmem:[%s6509_s27 + $0x24] ss:$8 sm:$0x3] }
  0x6c   : > { %2352 = vmatprep.subr.bf16.mxu0 %v5764_v23  ;;  %v4998_v23 = vld [vmem:[%s6509_s27 + $0x30] ss:$8 sm:$0x3]  ;;  %586 = vst.msk [vmem:[#allocation2 + $0x44] ss:$8 sm:$0x3] %vm6515_vm0, %v4990_v22 }
  0x6d   : > { %622 = vst.msk [vmem:[#allocation2 + $0x45] ss:$8 sm:$0x3] %vm6515_vm0, %v4998_v23  ;;  %v5891_v22 = vld [vmem:[%s8248_s1 + $0x450] ss:$8 sps:$4 sm:$0xff]  }
  0x6e   : > { %v5896_v23 = vld [vmem:[%s8248_s1 + $0x464] ss:$8 sps:$4 sm:$0xff]  }
  0x6f   : > { %2353 = vmatpush1.bf16.msra.mxu0 %v5762_v24  ;;  %v715_v24 = vld [vmem:[#allocation2 + $0x20] sm:$0xff] }
  0x70   : > { %2354 = vmatprep.subr.bf16.mxu0 %v5767_v25  ;;  %v718_v25 = vld [vmem:[#allocation2 + $0x38] sm:$0xff] }
  0x73   : > { %2355 = vmatpush1.bf16.msra.mxu0 %v5765_v26  ;;  %v5006_v26 = vld [vmem:[%s6509_s27 + $0x34] ss:$8 sm:$0x3] }
  0x74   : > { %2356 = vmatprep.subr.bf16.mxu0 %v5770_v27  ;;  %v5014_v27 = vld [vmem:[%s6509_s27 + $0x40] ss:$8 sm:$0x3]  ;;  %658 = vst.msk [vmem:[#allocation2 + $0x46] ss:$8 sm:$0x3] %vm6515_vm0, %v5006_v26 }
  0x75   : > { %694 = vst.msk [vmem:[#allocation2 + $0x47] ss:$8 sm:$0x3] %vm6515_vm0, %v5014_v27  ;;  %v5897_v26 = vld [vmem:[%s8248_s1 + $0x470] ss:$8 sps:$4 sm:$0xff]  }
  0x76   : > { %v5902_v27 = vld [vmem:[%s8248_s1 + $0x484] ss:$8 sps:$4 sm:$0xff]  }
  0x77   : > { %2357 = vmatpush1.bf16.msra.mxu0 %v5768_v28  ;;  %v731_v28 = vpack.c.bf16 %v715_v24, %v715_v24  ;;  %v5894_v24 = vld [vmem:[%s8248_s1 + $0x460] ss:$8 sps:$4 sm:$0xff]  }
  0x78   : > { %2358 = vmatprep.subr.bf16.mxu0 %v5773_v29  ;;  %v5828_v29 = vld [vmem:[%s8248_s1 + $0x300] ss:$8 sps:$4 sm:$0xff]  }
  0x7b   : > { %2359 = vmatpush1.bf16.msra.mxu0 %v5771_v30  ;;  %v5833_v30 = vld [vmem:[%s8248_s1 + $0x314] ss:$8 sps:$4 sm:$0xff]  }
  0x7c   : > { %2360 = vmatprep.subr.bf16.mxu0 %v5776_v31  ;;  %v734_v31 = vpack.c.bf16 %v718_v25, %v718_v25  ;;  %v5899_v25 = vld [vmem:[%s8248_s1 + $0x474] ss:$8 sps:$4 sm:$0xff]  }
  0x7f   : > { %2361 = vmatpush1.bf16.msra.mxu0 %v5774_v32  ;;  %v5831_v32 = vld [vmem:[%s8248_s1 + $0x310] ss:$8 sps:$4 sm:$0xff]  }
  0x80   : > { %2362 = vmatprep.subr.bf16.mxu0 %v5779_v33  ;;  %v5836_v33 = vld [vmem:[%s8248_s1 + $0x324] ss:$8 sps:$4 sm:$0xff]  }
  0x83   : > { %2363 = vmatpush1.bf16.msra.mxu0 %v5777_v36  ;;  %v5837_v36 = vld [vmem:[%s8248_s1 + $0x330] ss:$8 sps:$4 sm:$0xff]  }
  0x84   : > { %2373 = vmatprep.subr.bf16.mxu0 %v5782_v39  ;;  %v5845_v39 = vld [vmem:[%s8248_s1 + $0x354] ss:$8 sps:$4 sm:$0xff]  }
  0x86   : > { %2365 = vmatmul.mubr.bf16.vlgmr.msra.gmra.mrb[0].mxu0 %v729_v46  ;;  %v5852_v46 = vld [vmem:[%s8248_s1 + $0x380] ss:$8 sps:$4 sm:$0xff]  }
  0x87   : > { %2374 = vmatpush1.bf16.msra.mxu0 %v5780_v47  ;;  %2405 = vmatprep.mubr.bf16.mxu0 %v732_v49  ;;  %v5857_v47 = vld [vmem:[%s8248_s1 + $0x394] ss:$8 sps:$4 sm:$0xff]   ;;  %v5860_v49 = vld [vmem:[%s8248_s1 + $0x3a4] ss:$8 sps:$4 sm:$0xff]  }
  0x88   : > { %2375 = vmatprep.subr.bf16.mxu0 %v5785_v48  ;;  %v5855_v48 = vld [vmem:[%s8248_s1 + $0x390] ss:$8 sps:$4 sm:$0xff]  }
  0x8b   : > { %2376 = vmatpush1.bf16.msra.mxu0 %v5783_v50  ;;  %v5858_v50 = vld [vmem:[%s8248_s1 + $0x3a0] ss:$8 sps:$4 sm:$0xff]  }
  0x8c   : > { %2377 = vmatprep.subr.bf16.mxu0 %v5788_v51  ;;  %v5863_v51 = vld [vmem:[%s8248_s1 + $0x3b4] ss:$8 sps:$4 sm:$0xff]  }
  0x8f   : > { %2378 = vmatpush1.bf16.msra.mxu0 %v5786_v52  ;;  %v5861_v52 = vld [vmem:[%s8248_s1 + $0x3b0] ss:$8 sps:$4 sm:$0xff]  }
  0x90   : > { %2379 = vmatprep.subr.bf16.mxu0 %v5791_v53  ;;  %v5866_v53 = vld [vmem:[%s8248_s1 + $0x3c4] ss:$8 sps:$4 sm:$0xff]  }
  0x93   : > { %2380 = vmatpush1.bf16.msra.mxu0 %v5789_v54  ;;  %v5864_v54 = vld [vmem:[%s8248_s1 + $0x3c0] ss:$8 sps:$4 sm:$0xff]  }
  0x94   : > { %2381 = vmatprep.subr.bf16.mxu0 %v5794_v55  ;;  %v5869_v55 = vld [vmem:[%s8248_s1 + $0x3d4] ss:$8 sps:$4 sm:$0xff]  }
  0x97   : > { %2382 = vmatpush1.bf16.msra.mxu0 %v5792_v56  ;;  %v5867_v56 = vld [vmem:[%s8248_s1 + $0x3d0] ss:$8 sps:$4 sm:$0xff]  }
  0x98   : > { %2383 = vmatprep.subr.bf16.mxu0 %v5797_v57  ;;  %v5872_v57 = vld [vmem:[%s8248_s1 + $0x3e4] ss:$8 sps:$4 sm:$0xff]  }
  0x9b   : > { %2384 = vmatpush1.bf16.msra.mxu0 %v5795_v58  ;;  %v5870_v58 = vld [vmem:[%s8248_s1 + $0x3e0] ss:$8 sps:$4 sm:$0xff]  }
  0x9c   : > { %2385 = vmatprep.subr.bf16.mxu0 %v5800_v59  ;;  %v5875_v59 = vld [vmem:[%s8248_s1 + $0x3f4] ss:$8 sps:$4 sm:$0xff]  }
  0x9f   : > { %2386 = vmatpush1.bf16.msra.mxu0 %v5798_v60  ;;  %v4959_v60 = vld [vmem:[%s6509_s27 + $0x5] ss:$8 sm:$0x3] }
  0xa0   : > { %2387 = vmatprep.subr.bf16.mxu0 %v5803_v61  ;;  %v4967_v61 = vld [vmem:[%s6509_s27 + $0x11] ss:$8 sm:$0x3]  ;;  %447 = vst.msk [vmem:[#allocation2 + $0x50] ss:$8 sm:$0x3] %vm6515_vm0, %v4959_v60 }
  0xa1   : > { %483 = vst.msk [vmem:[#allocation2 + $0x51] ss:$8 sm:$0x3] %vm6515_vm0, %v4967_v61  ;;  %v5930_v60 = vld [vmem:[%s8248_s1 + $0x520] ss:$8 sps:$4 sm:$0xff]  }
  0xa2   : > { %v5935_v61 = vld [vmem:[%s8248_s1 + $0x534] ss:$8 sps:$4 sm:$0xff]  }
  0xa3   : > { %2388 = vmatpush1.bf16.msra.mxu0 %v5801_v62  ;;  %v5873_v62 = vld [vmem:[%s8248_s1 + $0x3f0] ss:$8 sps:$4 sm:$0xff]  }
  0xa4   : > { %2389 = vmatprep.subr.bf16.mxu0 %v5806_v63  ;;  %v4975_v63 = vld [vmem:[%s6509_s27 + $0x15] ss:$8 sm:$0x3] }
  0xa5   : > { %519 = vst.msk [vmem:[#allocation2 + $0x52] ss:$8 sm:$0x3] %vm6515_vm0, %v4975_v63  ;;  %v5938_v63 = vld [vmem:[%s8248_s1 + $0x544] ss:$8 sps:$4 sm:$0xff]  }
  0xa7   : > { %2390 = vmatpush1.bf16.msra.mxu0 %v5804_v0  ;;  %v4983_v0 = vld [vmem:[%s6509_s27 + $0x21] ss:$8 sm:$0x3] }
  0xa8   : > { %2391 = vmatprep.subr.bf16.mxu0 %v5809_v1  ;;  %v5878_v1 = vld [vmem:[%s8248_s1 + $0x404] ss:$8 sps:$4 sm:$0xff]   ;;  %555 = vst.msk [vmem:[#allocation2 + $0x53] ss:$8 sm:$0x3] %vm6515_vm0, %v4983_v0 }
  0xa9   : > { %v5936_v0 = vld [vmem:[%s8248_s1 + $0x540] ss:$8 sps:$4 sm:$0xff]  }
  0xab   : > { %2392 = vmatpush1.bf16.msra.mxu0 %v5807_v2  ;;  %v4991_v2 = vld [vmem:[%s6509_s27 + $0x25] ss:$8 sm:$0x3] }
  0xac   : > { %2393 = vmatprep.subr.bf16.mxu0 %v5812_v3  ;;  %v4999_v3 = vld [vmem:[%s6509_s27 + $0x31] ss:$8 sm:$0x3]  ;;  %591 = vst.msk [vmem:[#allocation2 + $0x54] ss:$8 sm:$0x3] %vm6515_vm0, %v4991_v2 }
  0xad   : > { %627 = vst.msk [vmem:[#allocation2 + $0x55] ss:$8 sm:$0x3] %vm6515_vm0, %v4999_v3  ;;  %v5939_v2 = vld [vmem:[%s8248_s1 + $0x550] ss:$8 sps:$4 sm:$0xff]  }
  0xae   : > { %v5944_v3 = vld [vmem:[%s8248_s1 + $0x564] ss:$8 sps:$4 sm:$0xff]  }
  0xaf   : > { %2394 = vmatpush1.bf16.msra.mxu0 %v5810_v4  ;;  %v717_v4 = vld [vmem:[#allocation2 + $0x30] sm:$0xff] }
  0xb0   : > { %2395 = vmatprep.subr.bf16.mxu0 %v5815_v5  ;;  %v720_v5 = vld [vmem:[#allocation2 + $0x48] sm:$0xff] }
  0xb3   : > { %2396 = vmatpush1.bf16.msra.mxu0 %v5813_v6  ;;  %v5007_v6 = vld [vmem:[%s6509_s27 + $0x35] ss:$8 sm:$0x3] }
  0xb4   : > { %2397 = vmatprep.subr.bf16.mxu0 %v5818_v7  ;;  %v5015_v7 = vld [vmem:[%s6509_s27 + $0x41] ss:$8 sm:$0x3]  ;;  %663 = vst.msk [vmem:[#allocation2 + $0x56] ss:$8 sm:$0x3] %vm6515_vm0, %v5007_v6 }
  0xb5   : > { %699 = vst.msk [vmem:[#allocation2 + $0x57] ss:$8 sm:$0x3] %vm6515_vm0, %v5015_v7  ;;  %v5945_v6 = vld [vmem:[%s8248_s1 + $0x570] ss:$8 sps:$4 sm:$0xff]  }
  0xb6   : > { %v5950_v7 = vld [vmem:[%s8248_s1 + $0x584] ss:$8 sps:$4 sm:$0xff]  }
  0xb7   : > { %2398 = vmatpush1.bf16.msra.mxu0 %v5816_v8  ;;  %v733_v8 = vpack.c.bf16 %v717_v4, %v717_v4  ;;  %v5942_v4 = vld [vmem:[%s8248_s1 + $0x560] ss:$8 sps:$4 sm:$0xff]  }
  0xb8   : > { %2399 = vmatprep.subr.bf16.mxu0 %v5821_v9  ;;  %v5876_v9 = vld [vmem:[%s8248_s1 + $0x400] ss:$8 sps:$4 sm:$0xff]  }
  0xbb   : > { %2400 = vmatpush1.bf16.msra.mxu0 %v5819_v10  ;;  %v5881_v10 = vld [vmem:[%s8248_s1 + $0x414] ss:$8 sps:$4 sm:$0xff]  }
  0xbc   : > { %2401 = vmatprep.subr.bf16.mxu0 %v5824_v12  ;;  %v736_v12 = vpack.c.bf16 %v720_v5, %v720_v5  ;;  %v5947_v5 = vld [vmem:[%s8248_s1 + $0x574] ss:$8 sps:$4 sm:$0xff]  }
  0xbf   : > { %2402 = vmatpush1.bf16.msra.mxu0 %v5822_v13  ;;  %v5879_v13 = vld [vmem:[%s8248_s1 + $0x410] ss:$8 sps:$4 sm:$0xff]  }
  0xc0   : > { %2403 = vmatprep.subr.bf16.mxu0 %v5827_v15  ;;  %v5884_v15 = vld [vmem:[%s8248_s1 + $0x424] ss:$8 sps:$4 sm:$0xff]  }
  0xc3   : > { %2404 = vmatpush1.bf16.msra.mxu0 %v5825_v18  ;;  %v5885_v18 = vld [vmem:[%s8248_s1 + $0x430] ss:$8 sps:$4 sm:$0xff]  }
  0xc4   : > { %2414 = vmatprep.subr.bf16.mxu0 %v5830_v21  ;;  %v5893_v21 = vld [vmem:[%s8248_s1 + $0x454] ss:$8 sps:$4 sm:$0xff]  }
  0xc6   : > { %2406 = vmatmul.mubr.bf16.vlgmr.msra.gmra.mrb[0].mxu0 %v731_v28  ;;  %v5900_v28 = vld [vmem:[%s8248_s1 + $0x480] ss:$8 sps:$4 sm:$0xff]  }
  0xc7   : > { %2415 = vmatpush1.bf16.msra.mxu0 %v5828_v29  ;;  %2446 = vmatprep.mubr.bf16.mxu0 %v734_v31  ;;  %v5905_v29 = vld [vmem:[%s8248_s1 + $0x494] ss:$8 sps:$4 sm:$0xff]   ;;  %v5908_v31 = vld [vmem:[%s8248_s1 + $0x4a4] ss:$8 sps:$4 sm:$0xff]  }
  0xc8   : > { %2416 = vmatprep.subr.bf16.mxu0 %v5833_v30  ;;  %v5903_v30 = vld [vmem:[%s8248_s1 + $0x490] ss:$8 sps:$4 sm:$0xff]  }
  0xcb   : > { %2417 = vmatpush1.bf16.msra.mxu0 %v5831_v32  ;;  %v5906_v32 = vld [vmem:[%s8248_s1 + $0x4a0] ss:$8 sps:$4 sm:$0xff]  }
  0xcc   : > { %2418 = vmatprep.subr.bf16.mxu0 %v5836_v33  ;;  %v5911_v33 = vld [vmem:[%s8248_s1 + $0x4b4] ss:$8 sps:$4 sm:$0xff]  }
  0xcf   : > { %2419 = vmatpush1.bf16.msra.mxu0 %v5834_v34  ;;  %v5909_v34 = vld [vmem:[%s8248_s1 + $0x4b0] ss:$8 sps:$4 sm:$0xff]  }
  0xd0   : > { %2420 = vmatprep.subr.bf16.mxu0 %v5839_v35  ;;  %v5914_v35 = vld [vmem:[%s8248_s1 + $0x4c4] ss:$8 sps:$4 sm:$0xff]  }
  0xd3   : > { %2421 = vmatpush1.bf16.msra.mxu0 %v5837_v36  ;;  %v5912_v36 = vld [vmem:[%s8248_s1 + $0x4c0] ss:$8 sps:$4 sm:$0xff]  }
  0xd4   : > { %2422 = vmatprep.subr.bf16.mxu0 %v5842_v37  ;;  %v5917_v37 = vld [vmem:[%s8248_s1 + $0x4d4] ss:$8 sps:$4 sm:$0xff]  }
  0xd7   : > { %2423 = vmatpush1.bf16.msra.mxu0 %v5840_v38  ;;  %v5915_v38 = vld [vmem:[%s8248_s1 + $0x4d0] ss:$8 sps:$4 sm:$0xff]  }
  0xd8   : > { %2424 = vmatprep.subr.bf16.mxu0 %v5845_v39  ;;  %v5920_v39 = vld [vmem:[%s8248_s1 + $0x4e4] ss:$8 sps:$4 sm:$0xff]  }
  0xdb   : > { %2425 = vmatpush1.bf16.msra.mxu0 %v5843_v40  ;;  %v5918_v40 = vld [vmem:[%s8248_s1 + $0x4e0] ss:$8 sps:$4 sm:$0xff]  }
  0xdc   : > { %2426 = vmatprep.subr.bf16.mxu0 %v5848_v41  ;;  %v5923_v41 = vld [vmem:[%s8248_s1 + $0x4f4] ss:$8 sps:$4 sm:$0xff]  }
  0xdf   : > { %2427 = vmatpush1.bf16.msra.mxu0 %v5846_v42  ;;  %v4960_v42 = vld [vmem:[%s6509_s27 + $0x6] ss:$8 sm:$0x3] }
  0xe0   : > { %2428 = vmatprep.subr.bf16.mxu0 %v5851_v43  ;;  %v4968_v43 = vld [vmem:[%s6509_s27 + $0x12] ss:$8 sm:$0x3]  ;;  %452 = vst.msk [vmem:[#allocation2 + $0x60] ss:$8 sm:$0x3] %vm6515_vm0, %v4960_v42 }
  0xe1   : > { %488 = vst.msk [vmem:[#allocation2 + $0x61] ss:$8 sm:$0x3] %vm6515_vm0, %v4968_v43  ;;  %v6071_v42 = vld [vmem:[%s8250_s3 + $0x14] ss:$8 sps:$4 sm:$0xff]  }
  0xe2   : > { %v5980_v43 = vld [vmem:[%s8248_s1 + $0x624] ss:$8 sps:$4 sm:$0xff]  }
  0xe3   : > { %2429 = vmatpush1.bf16.msra.mxu0 %v5849_v44  ;;  %v5921_v44 = vld [vmem:[%s8248_s1 + $0x4f0] ss:$8 sps:$4 sm:$0xff]  }
  0xe4   : > { %2430 = vmatprep.subr.bf16.mxu0 %v5854_v45  ;;  %v4976_v45 = vld [vmem:[%s6509_s27 + $0x16] ss:$8 sm:$0x3] }
  0xe5   : > { %524 = vst.msk [vmem:[#allocation2 + $0x62] ss:$8 sm:$0x3] %vm6515_vm0, %v4976_v45  ;;  %v6074_v45 = vld [vmem:[%s8250_s3 + $0x24] ss:$8 sps:$4 sm:$0xff]  }
  0xe7   : > { %2431 = vmatpush1.bf16.msra.mxu0 %v5852_v46  ;;  %v4984_v46 = vld [vmem:[%s6509_s27 + $0x22] ss:$8 sm:$0x3] }
  0xe8   : > { %2432 = vmatprep.subr.bf16.mxu0 %v5857_v47  ;;  %560 = vst.msk [vmem:[#allocation2 + $0x63] ss:$8 sm:$0x3] %vm6515_vm0, %v4984_v46  ;;  %v4992_v47 = vld [vmem:[%s6509_s27 + $0x26] ss:$8 sm:$0x3] }
  0xe9   : > { %596 = vst.msk [vmem:[#allocation2 + $0x64] ss:$8 sm:$0x3] %vm6515_vm0, %v4992_v47  ;;  %v5978_v46 = vld [vmem:[%s8248_s1 + $0x620] ss:$8 sps:$4 sm:$0xff]  }
  0xea   : > { %v5983_v47 = vld [vmem:[%s8248_s1 + $0x634] ss:$8 sps:$4 sm:$0xff]  }
  0xeb   : > { %2433 = vmatpush1.bf16.msra.mxu0 %v5855_v48  ;;  %v5000_v48 = vld [vmem:[%s6509_s27 + $0x32] ss:$8 sm:$0x3] }
  0xec   : > { %2434 = vmatprep.subr.bf16.mxu0 %v5860_v49  ;;  %v5926_v49 = vld [vmem:[%s8248_s1 + $0x504] ss:$8 sps:$4 sm:$0xff]   ;;  %632 = vst.msk [vmem:[#allocation2 + $0x65] ss:$8 sm:$0x3] %vm6515_vm0, %v5000_v48 }
  0xed   : > { %v6076_v48 = vld [vmem:[%s8250_s3 + $0x20] ss:$8 sps:$4 sm:$0xff]  }
  0xef   : > { %2435 = vmatpush1.bf16.msra.mxu0 %v5858_v50  ;;  %v719_v50 = vld [vmem:[#allocation2 + $0x40] sm:$0xff] }
  0xf0   : > { %2436 = vmatprep.subr.bf16.mxu0 %v5863_v51  ;;  %v722_v51 = vld [vmem:[#allocation2 + $0x58] sm:$0xff] }
  0xf3   : > { %2437 = vmatpush1.bf16.msra.mxu0 %v5861_v52  ;;  %v5008_v52 = vld [vmem:[%s6509_s27 + $0x36] ss:$8 sm:$0x3] }
  0xf4   : > { %2438 = vmatprep.subr.bf16.mxu0 %v5866_v53  ;;  %v5016_v53 = vld [vmem:[%s6509_s27 + $0x42] ss:$8 sm:$0x3]  ;;  %668 = vst.msk [vmem:[#allocation2 + $0x66] ss:$8 sm:$0x3] %vm6515_vm0, %v5008_v52 }
  0xf5   : > { %704 = vst.msk [vmem:[#allocation2 + $0x67] ss:$8 sm:$0x3] %vm6515_vm0, %v5016_v53  ;;  %v6079_v52 = vld [vmem:[%s8250_s3 + $0x30] ss:$8 sps:$4 sm:$0xff]  }
  0xf6   : > { %v6080_v53 = vld [vmem:[%s8250_s3 + $0x44] ss:$8 sps:$4 sm:$0xff]  }
  0xf7   : > { %2439 = vmatpush1.bf16.msra.mxu0 %v5864_v54  ;;  %v735_v54 = vpack.c.bf16 %v719_v50, %v719_v50  ;;  %v5981_v50 = vld [vmem:[%s8248_s1 + $0x630] ss:$8 sps:$4 sm:$0xff]  }
  0xf8   : > { %2440 = vmatprep.subr.bf16.mxu0 %v5869_v55  ;;  %v5924_v55 = vld [vmem:[%s8248_s1 + $0x500] ss:$8 sps:$4 sm:$0xff]  }
  0xfb   : > { %2441 = vmatpush1.bf16.msra.mxu0 %v5867_v56  ;;  %v738_v56 = vpack.c.bf16 %v722_v51, %v722_v51  ;;  %v5986_v51 = vld [vmem:[%s8248_s1 + $0x644] ss:$8 sps:$4 sm:$0xff]  }
  0xfc   : > { %2442 = vmatprep.subr.bf16.mxu0 %v5872_v57  ;;  %v5929_v57 = vld [vmem:[%s8248_s1 + $0x514] ss:$8 sps:$4 sm:$0xff]  }
  0xff   : > { %2443 = vmatpush1.bf16.msra.mxu0 %v5870_v58  ;;  %v5927_v58 = vld [vmem:[%s8248_s1 + $0x510] ss:$8 sps:$4 sm:$0xff]  }
 0x100   : > { %2444 = vmatprep.subr.bf16.mxu0 %v5875_v59  ;;  %v5932_v59 = vld [vmem:[%s8248_s1 + $0x524] ss:$8 sps:$4 sm:$0xff]  }
 0x103   : > { %2445 = vmatpush1.bf16.msra.mxu0 %v5873_v62  ;;  %v5933_v62 = vld [vmem:[%s8248_s1 + $0x530] ss:$8 sps:$4 sm:$0xff]  }
 0x104   : > { %2455 = vmatprep.subr.bf16.mxu0 %v5878_v1  ;;  %v5941_v1 = vld [vmem:[%s8248_s1 + $0x554] ss:$8 sps:$4 sm:$0xff]  }
 0x106   : > { %2447 = vmatmul.mubr.bf16.vlgmr.msra.gmra.mrb[0].mxu0 %v733_v8  ;;  %v5948_v8 = vld [vmem:[%s8248_s1 + $0x580] ss:$8 sps:$4 sm:$0xff]  }
 0x107   : > { %2456 = vmatpush1.bf16.msra.mxu0 %v5876_v9  ;;  %2487 = vmatprep.mubr.bf16.mxu0 %v736_v12  ;;  %v5953_v9 = vld [vmem:[%s8248_s1 + $0x594] ss:$8 sps:$4 sm:$0xff]   ;;  %v5956_v12 = vld [vmem:[%s8248_s1 + $0x5a4] ss:$8 sps:$4 sm:$0xff]  }
 0x108   : > { %2457 = vmatprep.subr.bf16.mxu0 %v5881_v10  ;;  %v5951_v10 = vld [vmem:[%s8248_s1 + $0x590] ss:$8 sps:$4 sm:$0xff]  }
 0x10b   : > { %2458 = vmatpush1.bf16.msra.mxu0 %v5879_v13  ;;  %v5954_v13 = vld [vmem:[%s8248_s1 + $0x5a0] ss:$8 sps:$4 sm:$0xff]  }
 0x10c   : > { %2459 = vmatprep.subr.bf16.mxu0 %v5884_v15  ;;  %v5959_v15 = vld [vmem:[%s8248_s1 + $0x5b4] ss:$8 sps:$4 sm:$0xff]  }
 0x10f   : > { %2460 = vmatpush1.bf16.msra.mxu0 %v5882_v16  ;;  %v5957_v16 = vld [vmem:[%s8248_s1 + $0x5b0] ss:$8 sps:$4 sm:$0xff]  }
 0x110   : > { %2461 = vmatprep.subr.bf16.mxu0 %v5887_v17  ;;  %v5962_v17 = vld [vmem:[%s8248_s1 + $0x5c4] ss:$8 sps:$4 sm:$0xff]  }
 0x113   : > { %2462 = vmatpush1.bf16.msra.mxu0 %v5885_v18  ;;  %v5960_v18 = vld [vmem:[%s8248_s1 + $0x5c0] ss:$8 sps:$4 sm:$0xff]  }
 0x114   : > { %2463 = vmatprep.subr.bf16.mxu0 %v5890_v19  ;;  %v5965_v19 = vld [vmem:[%s8248_s1 + $0x5d4] ss:$8 sps:$4 sm:$0xff]  }
 0x117   : > { %2464 = vmatpush1.bf16.msra.mxu0 %v5888_v20  ;;  %v5963_v20 = vld [vmem:[%s8248_s1 + $0x5d0] ss:$8 sps:$4 sm:$0xff]  }
 0x118   : > { %2465 = vmatprep.subr.bf16.mxu0 %v5893_v21  ;;  %v5968_v21 = vld [vmem:[%s8248_s1 + $0x5e4] ss:$8 sps:$4 sm:$0xff]  }
 0x11b   : > { %2466 = vmatpush1.bf16.msra.mxu0 %v5891_v22  ;;  %v4961_v22 = vld [vmem:[%s6509_s27 + $0x7] ss:$8 sm:$0x3] }
 0x11c   : > { %2467 = vmatprep.subr.bf16.mxu0 %v5896_v23  ;;  %v4969_v23 = vld [vmem:[%s6509_s27 + $0x13] ss:$8 sm:$0x3]  ;;  %457 = vst.msk [vmem:[#allocation2 + $0x70] ss:$8 sm:$0x3] %vm6515_vm0, %v4961_v22 }
 0x11d   : > { %493 = vst.msk [vmem:[#allocation2 + $0x71] ss:$8 sm:$0x3] %vm6515_vm0, %v4969_v23  ;;  %v6016_v22 = vld [vmem:[%s8248_s1 + $0x6e4] ss:$8 sps:$4 sm:$0xff]  }
 0x11e   : > { %v6014_v23 = vld [vmem:[%s8248_s1 + $0x6e0] ss:$8 sps:$4 sm:$0xff]  }
 0x11f   : > { %2468 = vmatpush1.bf16.msra.mxu0 %v5894_v24  ;;  %v5966_v24 = vld [vmem:[%s8248_s1 + $0x5e0] ss:$8 sps:$4 sm:$0xff]  }
 0x120   : > { %2469 = vmatprep.subr.bf16.mxu0 %v5899_v25  ;;  %v5971_v25 = vld [vmem:[%s8248_s1 + $0x5f4] ss:$8 sps:$4 sm:$0xff]  }
 0x123   : > { %2470 = vmatpush1.bf16.msra.mxu0 %v5897_v26  ;;  %v4977_v26 = vld [vmem:[%s6509_s27 + $0x17] ss:$8 sm:$0x3] }
 0x124   : > { %2471 = vmatprep.subr.bf16.mxu0 %v5902_v27  ;;  %v4985_v27 = vld [vmem:[%s6509_s27 + $0x23] ss:$8 sm:$0x3]  ;;  %529 = vst.msk [vmem:[#allocation2 + $0x72] ss:$8 sm:$0x3] %vm6515_vm0, %v4977_v26 }
 0x125   : > { %565 = vst.msk [vmem:[#allocation2 + $0x73] ss:$8 sm:$0x3] %vm6515_vm0, %v4985_v27  ;;  %v723_v26 = vld [vmem:[#allocation2 + $0x60] sm:$0xff] }
 0x126   : > { %v6022_v27 = vld [vmem:[%s8248_s1 + $0x704] ss:$8 sps:$4 sm:$0xff]  }
 0x127   : > { %2472 = vmatpush1.bf16.msra.mxu0 %v5900_v28  ;;  %v4993_v28 = vld [vmem:[%s6509_s27 + $0x27] ss:$8 sm:$0x3] }
 0x128   : > { %2473 = vmatprep.subr.bf16.mxu0 %v5905_v29  ;;  %v5001_v29 = vld [vmem:[%s6509_s27 + $0x33] ss:$8 sm:$0x3]  ;;  %601 = vst.msk [vmem:[#allocation2 + $0x74] ss:$8 sm:$0x3] %vm6515_vm0, %v4993_v28 }
 0x129   : > { %637 = vst.msk [vmem:[#allocation2 + $0x75] ss:$8 sm:$0x3] %vm6515_vm0, %v5001_v29  ;;  %v739_v29 = vpack.c.bf16 %v723_v26, %v723_v26 }
 0x12b   : > { %2474 = vmatpush1.bf16.msra.mxu0 %v5903_v30  ;;  %v5009_v30 = vld [vmem:[%s6509_s27 + $0x37] ss:$8 sm:$0x3] }
 0x12c   : > { %2475 = vmatprep.subr.bf16.mxu0 %v5908_v31  ;;  %v5017_v31 = vld [vmem:[%s6509_s27 + $0x43] ss:$8 sm:$0x3]  ;;  %673 = vst.msk [vmem:[#allocation2 + $0x76] ss:$8 sm:$0x3] %vm6515_vm0, %v5009_v30 }
 0x12d   : > { %709 = vst.msk [vmem:[#allocation2 + $0x77] ss:$8 sm:$0x3] %vm6515_vm0, %v5017_v31  ;;  %v6020_v30 = vld [vmem:[%s8248_s1 + $0x700] ss:$8 sps:$4 sm:$0xff]  }
 0x12f   : > { %2476 = vmatpush1.bf16.msra.mxu0 %v5906_v32  ;;  %v5969_v32 = vld [vmem:[%s8248_s1 + $0x5f0] ss:$8 sps:$4 sm:$0xff]  }
 0x130   : > { %2477 = vmatprep.subr.bf16.mxu0 %v5911_v33  ;;  %v721_v33 = vld [vmem:[#allocation2 + $0x50] sm:$0xff] }
 0x133   : > { %2478 = vmatpush1.bf16.msra.mxu0 %v5909_v34  ;;  %v5974_v34 = vld [vmem:[%s8248_s1 + $0x604] ss:$8 sps:$4 sm:$0xff]  }
 0x134   : > { %2479 = vmatprep.subr.bf16.mxu0 %v5914_v35  ;;  %v724_v35 = vld [vmem:[#allocation2 + $0x68] sm:$0xff]  ;;  %v726_v28 = vld [vmem:[#allocation2 + $0x78] sm:$0xff] }
 0x135   : > { %v742_v31 = vpack.c.bf16 %v726_v28, %v726_v28 }
 0x137   : > { %2480 = vmatpush1.bf16.msra.mxu0 %v5912_v36  ;;  %v737_v36 = vpack.c.bf16 %v721_v33, %v721_v33  ;;  %v6023_v33 = vld [vmem:[%s8248_s1 + $0x710] ss:$8 sps:$4 sm:$0xff]  }
 0x138   : > { %2481 = vmatprep.subr.bf16.mxu0 %v5917_v37  ;;  %v5972_v37 = vld [vmem:[%s8248_s1 + $0x600] ss:$8 sps:$4 sm:$0xff]  }
 0x13b   : > { %2482 = vmatpush1.bf16.msra.mxu0 %v5915_v38  ;;  %v740_v38 = vpack.c.bf16 %v724_v35, %v724_v35  ;;  %v6026_v35 = vld [vmem:[%s8248_s1 + $0x720] ss:$8 sps:$4 sm:$0xff]  }
 0x13c   : > { %2483 = vmatprep.subr.bf16.mxu0 %v5920_v39  ;;  %v5977_v39 = vld [vmem:[%s8248_s1 + $0x614] ss:$8 sps:$4 sm:$0xff]  }
 0x13f   : > { %2484 = vmatpush1.bf16.msra.mxu0 %v5918_v40  ;;  %v5975_v40 = vld [vmem:[%s8248_s1 + $0x610] ss:$8 sps:$4 sm:$0xff]  }
 0x140   : > { %2485 = vmatprep.subr.bf16.mxu0 %v5923_v41  ;;  %v6070_v41 = vld [vmem:[%s8250_s3] ss:$8 sps:$4 sm:$0xff]  }
 0x141   : > { %3515 = vmatpush1.bf16.msra.mxu1 %v6070_v41  ;;  %v6040_v41 = vld [vmem:[%s8248_s1 + $0x764] ss:$8 sps:$4 sm:$0xff]  }
 0x142   : > { %3516 = vmatprep.subr.bf16.mxu1 %v6071_v42  ;;  %v6038_v42 = vld [vmem:[%s8248_s1 + $0x760] ss:$8 sps:$4 sm:$0xff]  }
 0x143   : > { %2486 = vmatpush1.bf16.msra.mxu0 %v5921_v44  ;;  %v6073_v44 = vld [vmem:[%s8250_s3 + $0x10] ss:$8 sps:$4 sm:$0xff]  }
 0x144   : > { %2496 = vmatprep.subr.bf16.mxu0 %v5926_v49  ;;  %v6077_v49 = vld [vmem:[%s8250_s3 + $0x34] ss:$8 sps:$4 sm:$0xff]  }
 0x145   : > { %3517 = vmatpush1.bf16.msra.mxu1 %v6073_v44  ;;  %v6041_v44 = vld [vmem:[%s8248_s1 + $0x770] ss:$8 sps:$4 sm:$0xff]  }
 0x146   : > { %2488 = vmatmul.mubr.bf16.vlgmr.msra.gmra.mrb[0].mxu0 %v735_v54  ;;  %3518 = vmatprep.subr.bf16.mxu1 %v6074_v45  ;;  %v5984_v54 = vld [vmem:[%s8248_s1 + $0x640] ss:$8 sps:$4 sm:$0xff]   ;;  %v6046_v45 = vld [vmem:[%s8248_s1 + $0x784] ss:$8 sps:$4 sm:$0xff]  }
 0x147   : > { %2497 = vmatpush1.bf16.msra.mxu0 %v5924_v55  ;;  %2528 = vmatprep.mubr.bf16.mxu0 %v738_v56  ;;  %v5989_v55 = vld [vmem:[%s8248_s1 + $0x654] ss:$8 sps:$4 sm:$0xff]   ;;  %v6082_v56 = vld [vmem:[%s8250_s3 + $0x40] ss:$8 sps:$4 sm:$0xff]  }
 0x148   : > { %2498 = vmatprep.subr.bf16.mxu0 %v5929_v57  ;;  %v6083_v57 = vld [vmem:[%s8250_s3 + $0x54] ss:$8 sps:$4 sm:$0xff]  }
 0x149   : > { %3519 = vmatpush1.bf16.msra.mxu1 %v6076_v48  ;;  %v6047_v48 = vld [vmem:[%s8248_s1 + $0x790] ss:$8 sps:$4 sm:$0xff]  }
 0x14a   : > { %3520 = vmatprep.subr.bf16.mxu1 %v6077_v49  ;;  %v6052_v49 = vld [vmem:[%s8248_s1 + $0x7a4] ss:$8 sps:$4 sm:$0xff]  }
 0x14b   : > { %2499 = vmatpush1.bf16.msra.mxu0 %v5927_v58  ;;  %v5987_v58 = vld [vmem:[%s8248_s1 + $0x650] ss:$8 sps:$4 sm:$0xff]  }
 0x14c   : > { %2500 = vmatprep.subr.bf16.mxu0 %v5932_v59  ;;  %v5992_v59 = vld [vmem:[%s8248_s1 + $0x664] ss:$8 sps:$4 sm:$0xff]  }
 0x14d   : > { %3521 = vmatpush1.bf16.msra.mxu1 %v6079_v52  ;;  %v6053_v52 = vld [vmem:[%s8248_s1 + $0x7b0] ss:$8 sps:$4 sm:$0xff]  }
 0x14e   : > { %3522 = vmatprep.subr.bf16.mxu1 %v6080_v53  ;;  %v6058_v53 = vld [vmem:[%s8248_s1 + $0x7c4] ss:$8 sps:$4 sm:$0xff]  }
 0x14f   : > { %2501 = vmatpush1.bf16.msra.mxu0 %v5930_v60  ;;  %v6085_v60 = vld [vmem:[%s8250_s3 + $0x50] ss:$8 sps:$4 sm:$0xff]  }
 0x150   : > { %2502 = vmatprep.subr.bf16.mxu0 %v5935_v61  ;;  %v6086_v61 = vld [vmem:[%s8250_s3 + $0x64] ss:$8 sps:$4 sm:$0xff]  }
 0x151   : > { %3523 = vmatpush1.bf16.msra.mxu1 %v6082_v56  ;;  %v6059_v56 = vld [vmem:[%s8248_s1 + $0x7d0] ss:$8 sps:$4 sm:$0xff]  }
 0x152   : > { %3524 = vmatprep.subr.bf16.mxu1 %v6083_v57  ;;  %v6064_v57 = vld [vmem:[%s8248_s1 + $0x7e4] ss:$8 sps:$4 sm:$0xff]  }
 0x153   : > { %2503 = vmatpush1.bf16.msra.mxu0 %v5933_v62  ;;  %v5990_v62 = vld [vmem:[%s8248_s1 + $0x660] ss:$8 sps:$4 sm:$0xff]  }
 0x154   : > { %2504 = vmatprep.subr.bf16.mxu0 %v5938_v63  ;;  %v5995_v63 = vld [vmem:[%s8248_s1 + $0x674] ss:$8 sps:$4 sm:$0xff]  }
 0x155   : > { %3525 = vmatpush1.bf16.msra.mxu1 %v6085_v60  ;;  %v6065_v60 = vld [vmem:[%s8248_s1 + $0x7f0] ss:$8 sps:$4 sm:$0xff]  }
 0x156   : > { %3526 = vmatprep.subr.bf16.mxu1 %v6086_v61  ;;  %v725_v61 = vld [vmem:[#allocation2 + $0x70] sm:$0xff] }
 0x157   : > { %2505 = vmatpush1.bf16.msra.mxu0 %v5936_v0  ;;  %v6088_v0 = vld [vmem:[%s8250_s3 + $0x60] ss:$8 sps:$4 sm:$0xff]  }
 0x158   : > { %2506 = vmatprep.subr.bf16.mxu0 %v5941_v1  ;;  %v6089_v1 = vld [vmem:[%s8250_s3 + $0x74] ss:$8 sps:$4 sm:$0xff]  }
 0x159   : > { %3527 = vmatpush1.bf16.msra.mxu1 %v6088_v0  ;;  %v2755_v0 = vld [vmem:[%s8250_s3 + $0xa8] sm:$0xff] }
 0x15a   : > { %3528 = vmatprep.subr.bf16.mxu1 %v6089_v1  ;;  %v6098_v1 = vld [vmem:[%s8250_s3 + $0xa4] ss:$8 sps:$4 sm:$0xff]  }
 0x15b   : > { %2507 = vmatpush1.bf16.msra.mxu0 %v5939_v2  ;;  %v5993_v2 = vld [vmem:[%s8248_s1 + $0x670] ss:$8 sps:$4 sm:$0xff]  }
 0x15c   : > { %2508 = vmatprep.subr.bf16.mxu0 %v5944_v3  ;;  %v5998_v3 = vld [vmem:[%s8248_s1 + $0x684] ss:$8 sps:$4 sm:$0xff]  }
 0x15f   : > { %2509 = vmatpush1.bf16.msra.mxu0 %v5942_v4  ;;  %v6091_v4 = vld [vmem:[%s8250_s3 + $0x70] ss:$8 sps:$4 sm:$0xff]  }
 0x160   : > { %2510 = vmatprep.subr.bf16.mxu0 %v5947_v5  ;;  %v6092_v5 = vld [vmem:[%s8250_s3 + $0x84] ss:$8 sps:$4 sm:$0xff]   ;;  %3529 = vmatpush1.bf16.msra.mxu1 %v6091_v4  ;;  %v6102_v4 = vld [vmem:[%s8250_s3 + $0xb0] ss:$8 sps:$4 sm:$0xff]  }
 0x161   : > { %3530 = vmatprep.subr.bf16.mxu1 %v6092_v5  ;;  %v6103_v5 = vld [vmem:[%s8250_s3 + $0xc4] ss:$8 sps:$4 sm:$0xff]  }
 0x163   : > { %2511 = vmatpush1.bf16.msra.mxu0 %v5945_v6  ;;  %v5996_v6 = vld [vmem:[%s8248_s1 + $0x680] ss:$8 sps:$4 sm:$0xff]  }
 0x164   : > { %2512 = vmatprep.subr.bf16.mxu0 %v5950_v7  ;;  %v6001_v7 = vld [vmem:[%s8248_s1 + $0x694] ss:$8 sps:$4 sm:$0xff]  }
 0x167   : > { %2513 = vmatpush1.bf16.msra.mxu0 %v5948_v8  ;;  %v6094_v8 = vld [vmem:[%s8250_s3 + $0x80] ss:$8 sps:$4 sm:$0xff]  }
 0x168   : > { %2514 = vmatprep.subr.bf16.mxu0 %v5953_v9  ;;  %v6095_v9 = vld [vmem:[%s8250_s3 + $0x94] ss:$8 sps:$4 sm:$0xff]   ;;  %3531 = vmatpush1.bf16.msra.mxu1 %v6094_v8  ;;  %v6108_v8 = vld [vmem:[%s8250_s3 + $0xd0] ss:$8 sps:$4 sm:$0xff]  }
 0x169   : > { %3532 = vmatprep.subr.bf16.mxu1 %v6095_v9  ;;  %v6109_v9 = vld [vmem:[%s8250_s3 + $0xe4] ss:$8 sps:$4 sm:$0xff]  }
 0x16b   : > { %2515 = vmatpush1.bf16.msra.mxu0 %v5951_v10  ;;  %v5999_v10 = vld [vmem:[%s8248_s1 + $0x690] ss:$8 sps:$4 sm:$0xff]  }
 0x16c   : > { %2516 = vmatprep.subr.bf16.mxu0 %v5956_v12  ;;  %v6004_v12 = vld [vmem:[%s8248_s1 + $0x6a4] ss:$8 sps:$4 sm:$0xff]  }
 0x16f   : > { %2517 = vmatpush1.bf16.msra.mxu0 %v5954_v13  ;;  %v6097_v13 = vld [vmem:[%s8250_s3 + $0x90] ss:$8 sps:$4 sm:$0xff]  }
 0x170   : > { %2518 = vmatprep.subr.bf16.mxu0 %v5959_v15  ;;  %v6002_v15 = vld [vmem:[%s8248_s1 + $0x6a0] ss:$8 sps:$4 sm:$0xff]   ;;  %3533 = vmatpush1.bf16.msra.mxu1 %v6097_v13  ;;  %v6114_v13 = vld [vmem:[%s8250_s3 + $0xf0] ss:$8 sps:$4 sm:$0xff]  }
 0x171   : > { %3534 = vmatprep.subr.bf16.mxu1 %v6098_v1  ;;  %v6135_v1 = vld [vmem:[%s8250_s3 + $0x164] ss:$8 sps:$4 sm:$0xff]  }
 0x173   : > { %2519 = vmatpush1.bf16.msra.mxu0 %v5957_v16  ;;  %v6007_v16 = vld [vmem:[%s8248_s1 + $0x6b4] ss:$8 sps:$4 sm:$0xff]  }
 0x174   : > { %2520 = vmatprep.subr.bf16.mxu0 %v5962_v17  ;;  %v6005_v17 = vld [vmem:[%s8248_s1 + $0x6b0] ss:$8 sps:$4 sm:$0xff]  }
 0x177   : > { %2521 = vmatpush1.bf16.msra.mxu0 %v5960_v18  ;;  %v6010_v18 = vld [vmem:[%s8248_s1 + $0x6c4] ss:$8 sps:$4 sm:$0xff]  }
 0x178   : > { %2522 = vmatprep.subr.bf16.mxu0 %v5965_v19  ;;  %v6008_v19 = vld [vmem:[%s8248_s1 + $0x6c0] ss:$8 sps:$4 sm:$0xff]  }
 0x17b   : > { %2523 = vmatpush1.bf16.msra.mxu0 %v5963_v20  ;;  %v6013_v20 = vld [vmem:[%s8248_s1 + $0x6d4] ss:$8 sps:$4 sm:$0xff]  }
 0x17c   : > { %2524 = vmatprep.subr.bf16.mxu0 %v5968_v21  ;;  %v6011_v21 = vld [vmem:[%s8248_s1 + $0x6d0] ss:$8 sps:$4 sm:$0xff]  }
 0x17f   : > { %2525 = vmatpush1.bf16.msra.mxu0 %v5966_v24  ;;  %v6019_v24 = vld [vmem:[%s8248_s1 + $0x6f4] ss:$8 sps:$4 sm:$0xff]  }
 0x180   : > { %2526 = vmatprep.subr.bf16.mxu0 %v5971_v25  ;;  %v6017_v25 = vld [vmem:[%s8248_s1 + $0x6f0] ss:$8 sps:$4 sm:$0xff]  }
 0x183   : > { %2527 = vmatpush1.bf16.msra.mxu0 %v5969_v32  ;;  %v6025_v32 = vld [vmem:[%s8248_s1 + $0x714] ss:$8 sps:$4 sm:$0xff]  }
 0x184   : > { %2537 = vmatprep.subr.bf16.mxu0 %v5974_v34  ;;  %v6028_v34 = vld [vmem:[%s8248_s1 + $0x724] ss:$8 sps:$4 sm:$0xff]  }
 0x186   : > { %2529 = vmatmul.mubr.bf16.vlgmr.msra.gmra.mrb[0].mxu0 %v737_v36  ;;  %v6031_v36 = vld [vmem:[%s8248_s1 + $0x734] ss:$8 sps:$4 sm:$0xff]  }
 0x187   : > { %2538 = vmatpush1.bf16.msra.mxu0 %v5972_v37  ;;  %2569 = vmatprep.mubr.bf16.mxu0 %v740_v38  ;;  %v6029_v37 = vld [vmem:[%s8248_s1 + $0x730] ss:$8 sps:$4 sm:$0xff]   ;;  %v6034_v38 = vld [vmem:[%s8248_s1 + $0x744] ss:$8 sps:$4 sm:$0xff]  }
 0x188   : > { %2539 = vmatprep.subr.bf16.mxu0 %v5977_v39  ;;  %v6032_v39 = vld [vmem:[%s8248_s1 + $0x740] ss:$8 sps:$4 sm:$0xff]  }
 0x18b   : > { %2540 = vmatpush1.bf16.msra.mxu0 %v5975_v40  ;;  %v6035_v40 = vld [vmem:[%s8248_s1 + $0x750] ss:$8 sps:$4 sm:$0xff]  }
 0x18c   : > { %2541 = vmatprep.subr.bf16.mxu0 %v5980_v43  ;;  %v6043_v43 = vld [vmem:[%s8248_s1 + $0x774] ss:$8 sps:$4 sm:$0xff]  }
 0x18f   : > { %2542 = vmatpush1.bf16.msra.mxu0 %v5978_v46  ;;  %v6044_v46 = vld [vmem:[%s8248_s1 + $0x780] ss:$8 sps:$4 sm:$0xff]  }
 0x190   : > { %2543 = vmatprep.subr.bf16.mxu0 %v5983_v47  ;;  %v6049_v47 = vld [vmem:[%s8248_s1 + $0x794] ss:$8 sps:$4 sm:$0xff]  }
 0x193   : > { %2544 = vmatpush1.bf16.msra.mxu0 %v5981_v50  ;;  %v6050_v50 = vld [vmem:[%s8248_s1 + $0x7a0] ss:$8 sps:$4 sm:$0xff]  }
 0x194   : > { %2545 = vmatprep.subr.bf16.mxu0 %v5986_v51  ;;  %v6055_v51 = vld [vmem:[%s8248_s1 + $0x7b4] ss:$8 sps:$4 sm:$0xff]  }
 0x197   : > { %2546 = vmatpush1.bf16.msra.mxu0 %v5984_v54  ;;  %v6056_v54 = vld [vmem:[%s8248_s1 + $0x7c0] ss:$8 sps:$4 sm:$0xff]  }
 0x198   : > { %2547 = vmatprep.subr.bf16.mxu0 %v5989_v55  ;;  %v6061_v55 = vld [vmem:[%s8248_s1 + $0x7d4] ss:$8 sps:$4 sm:$0xff]  }
 0x19b   : > { %2548 = vmatpush1.bf16.msra.mxu0 %v5987_v58  ;;  %v6062_v58 = vld [vmem:[%s8248_s1 + $0x7e0] ss:$8 sps:$4 sm:$0xff]  }
 0x19c   : > { %2549 = vmatprep.subr.bf16.mxu0 %v5992_v59  ;;  %v6067_v59 = vld [vmem:[%s8248_s1 + $0x7f4] ss:$8 sps:$4 sm:$0xff]  }
 0x19f   : > { %2550 = vmatpush1.bf16.msra.mxu0 %v5990_v62  ;;  %v741_v62 = vpack.c.bf16 %v725_v61, %v725_v61  ;;  %v6129_v61 = vld [vmem:[%s8250_s3 + $0x144] ss:$8 sps:$4 sm:$0xff]  }
 0x1a0   : > { %2551 = vmatprep.subr.bf16.mxu0 %v5995_v63  ;;  %v2754_v63 = vld [vmem:[%s8250_s3 + $0xa0] sm:$0xff] }
 0x1a3   : > { %2552 = vmatpush1.bf16.msra.mxu0 %v5993_v2  ;;  %v5294_v2 = vcombine.low %v2754_v63, %v2755_v0  ;;  %v6132_v63 = vld [vmem:[%s8250_s3 + $0x154] ss:$8 sps:$4 sm:$0xff]   ;;  %v6130_v0 = vld [vmem:[%s8250_s3 + $0x150] ss:$8 sps:$4 sm:$0xff]  }
 0x1a4   : > { %2553 = vmatprep.subr.bf16.mxu0 %v5998_v3  ;;  %v6100_v3 = vld [vmem:[%s8250_s3 + $0xb4] ss:$8 sps:$4 sm:$0xff]  }
 0x1a5   : > { %3535 = vmatpush1.bf16.msra.mxu1 %v5294_v2  ;;  %v6133_v2 = vld [vmem:[%s8250_s3 + $0x160] ss:$8 sps:$4 sm:$0xff]  }
 0x1a6   : > { %3536 = vmatprep.subr.bf16.mxu1 %v6100_v3  ;;  %v6138_v3 = vld [vmem:[%s8250_s3 + $0x174] ss:$8 sps:$4 sm:$0xff]  }
 0x1a7   : > { %2554 = vmatpush1.bf16.msra.mxu0 %v5996_v6  ;;  %v6105_v6 = vld [vmem:[%s8250_s3 + $0xc0] ss:$8 sps:$4 sm:$0xff]  }
 0x1a8   : > { %2555 = vmatprep.subr.bf16.mxu0 %v6001_v7  ;;  %v6106_v7 = vld [vmem:[%s8250_s3 + $0xd4] ss:$8 sps:$4 sm:$0xff]  }
 0x1a9   : > { %3537 = vmatpush1.bf16.msra.mxu1 %v6102_v4  ;;  %v6136_v4 = vld [vmem:[%s8250_s3 + $0x170] ss:$8 sps:$4 sm:$0xff]  }
 0x1aa   : > { %3538 = vmatprep.subr.bf16.mxu1 %v6103_v5  ;;  %v6141_v5 = vld [vmem:[%s8250_s3 + $0x184] ss:$8 sps:$4 sm:$0xff]  }
 0x1ab   : > { %2556 = vmatpush1.bf16.msra.mxu0 %v5999_v10  ;;  %v6111_v10 = vld [vmem:[%s8250_s3 + $0xe0] ss:$8 sps:$4 sm:$0xff]  }
 0x1ac   : > { %2557 = vmatprep.subr.bf16.mxu0 %v6004_v12  ;;  %v6112_v12 = vld [vmem:[%s8250_s3 + $0xf4] ss:$8 sps:$4 sm:$0xff]  }
 0x1ad   : > { %3539 = vmatpush1.bf16.msra.mxu1 %v6105_v6  ;;  %v6139_v6 = vld [vmem:[%s8250_s3 + $0x180] ss:$8 sps:$4 sm:$0xff]  }
 0x1ae   : > { %3540 = vmatprep.subr.bf16.mxu1 %v6106_v7  ;;  %v6144_v7 = vld [vmem:[%s8250_s3 + $0x194] ss:$8 sps:$4 sm:$0xff]  }
 0x1af   : > { %2558 = vmatpush1.bf16.msra.mxu0 %v6002_v15  ;;  %v6117_v15 = vld [vmem:[%s8250_s3 + $0x104] ss:$8 sps:$4 sm:$0xff]  }
 0x1b0   : > { %2559 = vmatprep.subr.bf16.mxu0 %v6007_v16  ;;  %v7546_v16 = vshrl.u32 %v418_v11, 7  ;;  %v6277_v11 = vld [vmem:[%s8252_s5 + $0xc8] sm:$0xff]  }
 0x1b1   : > { %3541 = vmatpush1.bf16.msra.mxu1 %v6108_v8  ;;  %v6142_v8 = vld [vmem:[%s8250_s3 + $0x190] ss:$8 sps:$4 sm:$0xff]  }
 0x1b2   : > { %3542 = vmatprep.subr.bf16.mxu1 %v6109_v9  ;;  %v6147_v9 = vld [vmem:[%s8250_s3 + $0x1a4] ss:$8 sps:$4 sm:$0xff]  }
 0x1b3   : > { %2560 = vmatpush1.bf16.msra.mxu0 %v6005_v17  ;;  %v7549_v17 = vsub.s32 0, %v7546_v16 }
 0x1b4   : > { %2561 = vmatprep.subr.bf16.mxu0 %v6010_v18  ;;  %v999_v18 = vld [vmem:[%s8249_s2] sm:$0x3] }
 0x1b5   : > { %3543 = vmatpush1.bf16.msra.mxu1 %v6111_v10  ;;  %v6145_v10 = vld [vmem:[%s8250_s3 + $0x1a0] ss:$8 sps:$4 sm:$0xff]  }
 0x1b6   : > { %3544 = vmatprep.subr.bf16.mxu1 %v6112_v12  ;;  %v6150_v12 = vld [vmem:[%s8250_s3 + $0x1b4] ss:$8 sps:$4 sm:$0xff]  }
 0x1b7   : > { %2562 = vmatpush1.bf16.msra.mxu0 %v6008_v19  ;;  %v7555_v19 = vsub.s32 1, %v7546_v16 }
 0x1b8   : > { %2563 = vmatprep.subr.bf16.mxu0 %v6013_v20  ;;  %v6396_v20 = vmov 1966171168  }
 0x1b9   : > { %3545 = vmatpush1.bf16.msra.mxu1 %v6114_v13  ;;  %v6148_v13 = vld [vmem:[%s8250_s3 + $0x1b0] ss:$8 sps:$4 sm:$0xff]  }
 0x1ba   : > { %3555 = vmatprep.subr.bf16.mxu1 %v6117_v15  ;;  %v6153_v15 = vld [vmem:[%s8250_s3 + $0x1c4] ss:$8 sps:$4 sm:$0xff]  }
 0x1bb   : > { %2564 = vmatpush1.bf16.msra.mxu0 %v6011_v21  ;;  %v2625_v21 = vunpack.c.l.s4 %v6396_v20  ;;  %v6156_v20 = vld [vmem:[%s8250_s3 + $0x1d4] ss:$8 sps:$4 sm:$0xff]  }
 0x1bc   : > { %2565 = vmatprep.subr.bf16.mxu0 %v6016_v22  ;;  %v1004_v22 = vrot.slane %v999_v18, %v7549_v17 }
 0x1bf   : > { %2566 = vmatpush1.bf16.msra.mxu0 %v6014_v23  ;;  %v1008_v23 = vrot.slane %v999_v18, %v7555_v19  ;;  %v6151_v18 = vld [vmem:[%s8250_s3 + $0x1c0] ss:$8 sps:$4 sm:$0xff]  }
 0x1c0   : > { %2567 = vmatprep.subr.bf16.mxu0 %v6019_v24 }
 0x1c3   : > { %2568 = vmatpush1.bf16.msra.mxu0 %v6017_v25  ;;  %v2626_v25 = vunpack.c.0.s8 %v2625_v21  ;;  %v6154_v21 = vld [vmem:[%s8250_s3 + $0x1d0] ss:$8 sps:$4 sm:$0xff]  }
 0x1c4   : > { %2578 = vmatprep.subr.bf16.mxu0 %v6022_v27 }
 0x1c6   : > { %2570 = vmatmul.mubr.bf16.vlgmr.msra.gmra.mrb[0].mxu0 %v739_v29 }
 0x1c7   : > { %2579 = vmatpush1.bf16.msra.mxu0 %v6020_v30  ;;  %2610 = vmatprep.mubr.bf16.mxu0 %v742_v31 }
 0x1c8   : > { %2580 = vmatprep.subr.bf16.mxu0 %v6025_v32  ;;  %v7560_v32 = vsub.s32 %v2626_v25, %v7546_v16  ;;  %v6160_v25 = vld [vmem:[%s8250_s3 + $0x1f0] ss:$8 sps:$4 sm:$0xff]  }
 0x1cb   : > { %2581 = vmatpush1.bf16.msra.mxu0 %v6023_v33 }
 0x1cc   : > { %2582 = vmatprep.subr.bf16.mxu0 %v6028_v34 }
 0x1cf   : > { %2583 = vmatpush1.bf16.msra.mxu0 %v6026_v35 }
 0x1d0   : > { %2584 = vmatprep.subr.bf16.mxu0 %v6031_v36 }
 0x1d3   : > { %2585 = vmatpush1.bf16.msra.mxu0 %v6029_v37 }
 0x1d4   : > { %2586 = vmatprep.subr.bf16.mxu0 %v6034_v38  ;;  %v6172_v38 = vld [vmem:[%s8250_s3 + $0x230] ss:$8 sps:$4 sm:$0xff]  }
 0x1d7   : > { %2587 = vmatpush1.bf16.msra.mxu0 %v6032_v39 }
 0x1d8   : > { %2588 = vmatprep.subr.bf16.mxu0 %v6037_v14 }
 0x1db   : > { %2589 = vmatpush1.bf16.msra.mxu0 %v6035_v40 }
 0x1dc   : > { %2590 = vmatprep.subr.bf16.mxu0 %v6040_v41 }
 0x1df   : > { %2591 = vmatpush1.bf16.msra.mxu0 %v6038_v42 }
 0x1e0   : > { %2592 = vmatprep.subr.bf16.mxu0 %v6043_v43 }
 0x1e3   : > { %2593 = vmatpush1.bf16.msra.mxu0 %v6041_v44 }
 0x1e4   : > { %2594 = vmatprep.subr.bf16.mxu0 %v6046_v45 }
 0x1e7   : > { %2595 = vmatpush1.bf16.msra.mxu0 %v6044_v46 }
 0x1e8   : > { %2596 = vmatprep.subr.bf16.mxu0 %v6049_v47 }
 0x1eb   : > { %2597 = vmatpush1.bf16.msra.mxu0 %v6047_v48 }
 0x1ec   : > { %2598 = vmatprep.subr.bf16.mxu0 %v6052_v49 }
 0x1ef   : > { %2599 = vmatpush1.bf16.msra.mxu0 %v6050_v50 }
 0x1f0   : > { %2600 = vmatprep.subr.bf16.mxu0 %v6055_v51  ;;  %v6115_v51 = vld [vmem:[%s8250_s3 + $0x100] ss:$8 sps:$4 sm:$0xff]  }
 0x1f3   : > { %2601 = vmatpush1.bf16.msra.mxu0 %v6053_v52 }
 0x1f4   : > { %2602 = vmatprep.subr.bf16.mxu0 %v6058_v53 }
 0x1f7   : > { %2603 = vmatpush1.bf16.msra.mxu0 %v6056_v54  ;;  %v6120_v54 = vld [vmem:[%s8250_s3 + $0x114] ss:$8 sps:$4 sm:$0xff]  }
 0x1f8   : > { %2604 = vmatprep.subr.bf16.mxu0 %v6061_v55 }
 0x1fb   : > { %2605 = vmatpush1.bf16.msra.mxu0 %v6059_v56  ;;  %v6118_v56 = vld [vmem:[%s8250_s3 + $0x110] ss:$8 sps:$4 sm:$0xff]  }
 0x1fc   : > { %2606 = vmatprep.subr.bf16.mxu0 %v6064_v57  ;;  %v6123_v57 = vld [vmem:[%s8250_s3 + $0x124] ss:$8 sps:$4 sm:$0xff]  }
 0x1ff   : > { %2607 = vmatpush1.bf16.msra.mxu0 %v6062_v58  ;;  %v6121_v58 = vld [vmem:[%s8250_s3 + $0x120] ss:$8 sps:$4 sm:$0xff]  }
 0x200   : > { %2608 = vmatprep.subr.bf16.mxu0 %v6067_v59  ;;  %v6126_v59 = vld [vmem:[%s8250_s3 + $0x134] ss:$8 sps:$4 sm:$0xff]  }
 0x203   : > { %2609 = vmatpush1.bf16.msra.mxu0 %v6065_v60  ;;  %v6124_v60 = vld [vmem:[%s8250_s3 + $0x130] ss:$8 sps:$4 sm:$0xff]  }
 0x206   : > { %2611 = vmatmul.mubr.bf16.vlgmr.msra.gmra.mrb[0].mxu0 %v741_v62  ;;  %v6127_v62 = vld [vmem:[%s8250_s3 + $0x140] ss:$8 sps:$4 sm:$0xff]  }
 0x2d9   : > { %v2612_v24 = vpop.f32.mrb[0].mxu0 }
 0x2da   : > { %v5628_v26 = vadd.f32 %v2612_v24, %v1004_v22  ;;  %v2614_v27 = vpop.f32.mrb[1].mxu0  ;;  %v6159_v22 = vld [vmem:[%s8250_s3 + $0x1e4] ss:$8 sps:$4 sm:$0xff]   ;;  %v6162_v24 = vld [vmem:[%s8250_s3 + $0x1f4] ss:$8 sps:$4 sm:$0xff]  }
 0x2db   : > { %v5629_v28 = vadd.f32 %v2614_v27, %v1008_v23  ;;  %v2616_v29 = vpop.f32.mrb[2].mxu0  ;;  %v6157_v23 = vld [vmem:[%s8250_s3 + $0x1e0] ss:$8 sps:$4 sm:$0xff]  }
 0x2dc   : > { %v2619_v30 = vmax.f32 %v5628_v26, 0.0  ;;  %v2617_v31 = vpop.f32.mrb[3].mxu0  ;;  %v6165_v26 = vld [vmem:[%s8250_s3 + $0x204] ss:$8 sps:$4 sm:$0xff]   ;;  %v6163_v29 = vld [vmem:[%s8250_s3 + $0x200] ss:$8 sps:$4 sm:$0xff]  }
 0x2dd   : > { %v2620_v33 = vmax.f32 %v5629_v28, 0.0  ;;  %v6168_v31 = vld [vmem:[%s8250_s3 + $0x214] ss:$8 sps:$4 sm:$0xff]  }
 0x2df   : > { %v2623_v34 = vcombine.low %v2619_v30, %v2620_v33  ;;  %v2671_v35 = vcombine.high %v2619_v30, %v2620_v33 }
 0x2e1   : > { %v2630_v36 = vrot.slane %v2623_v34, %v7560_v32  ;;  %v2678_v37 = vrot.slane %v2671_v35, %v7560_v32  ;;  %v6166_v34 = vld [vmem:[%s8250_s3 + $0x210] ss:$8 sps:$4 sm:$0xff]   ;;  %v6171_v35 = vld [vmem:[%s8250_s3 + $0x224] ss:$8 sps:$4 sm:$0xff]  }
 0x2e3   : > { %v2637_v39 = vrot.slane %v2630_v36, %v7560_v32  ;;  %v2643_v14 = vcombine.high %v2630_v36, %v2630_v36  ;;  %v2685_v40 = vrot.slane %v2678_v37, %v7560_v32  ;;  %v2690_v41 = vcombine.high %v2678_v37, %v2678_v37  ;;  %v6169_v36 = vld [vmem:[%s8250_s3 + $0x220] ss:$8 sps:$4 sm:$0xff]   ;;  %v6174_v37 = vld [vmem:[%s8250_s3 + $0x234] ss:$8 sps:$4 sm:$0xff]  }
 0x2e5   : > { %2641 = vst.msk [vmem:[#allocation3] ss:$8 sm:$0x3] %vm7565_vm1, %v2637_v39  ;;  %v2650_v42 = vrot.slane %v2643_v14, %v7560_v32  ;;  %v2655_v43 = vcombine.high %v2637_v39, %v2637_v39  ;;  %2688 = vst.msk [vmem:[#allocation3 + $0x21] ss:$8 sm:$0x3] %vm7565_vm1, %v2685_v40  ;;  %v2697_v44 = vrot.slane %v2690_v41, %v7560_v32 }
 0x2e6   : > { %2703 = vst.msk [vmem:[#allocation3 + $0x2] ss:$8 sm:$0x3] %vm7565_vm1, %v2685_v40  ;;  %v2708_v45 = vcombine.high %v2685_v40, %v2685_v40  ;;  %v6177_v39 = vld [vmem:[%s8250_s3 + $0x244] ss:$8 sps:$4 sm:$0xff]  }
 0x2e7   : > { %2653 = vst.msk [vmem:[#allocation3 + $0x10] ss:$8 sm:$0x3] %vm7565_vm1, %v2650_v42  ;;  %2658 = vst.msk [vmem:[#allocation3 + $0x20] ss:$8 sm:$0x3] %vm7565_vm1, %v2655_v43  ;;  %v2660_v46 = vcombine.high %v2650_v42, %v2650_v42  ;;  %v2713_v47 = vcombine.high %v2697_v44, %v2697_v44 }
 0x2e8   : > { %2666 = vst.msk [vmem:[#allocation3 + $0x1] ss:$8 sm:$0x3] %vm7565_vm1, %v2655_v43  ;;  %2700 = vst.msk [vmem:[#allocation3 + $0x31] ss:$8 sm:$0x3] %vm7565_vm1, %v2697_v44 }
 0x2e9   : > { %2706 = vst.msk [vmem:[#allocation3 + $0x12] ss:$8 sm:$0x3] %vm7565_vm1, %v2697_v44  ;;  %2711 = vst.msk [vmem:[#allocation3 + $0x22] ss:$8 sm:$0x3] %vm7565_vm1, %v2708_v45 }
 0x2ea   : > { %2663 = vst.msk [vmem:[#allocation3 + $0x30] ss:$8 sm:$0x3] %vm7565_vm1, %v2660_v46  ;;  %2669 = vst.msk [vmem:[#allocation3 + $0x11] ss:$8 sm:$0x3] %vm7565_vm1, %v2660_v46 }
 0x2eb   : > { %2716 = vst.msk [vmem:[#allocation3 + $0x32] ss:$8 sm:$0x3] %vm7565_vm1, %v2713_v47  ;;  %v6175_v14 = vld [vmem:[%s8250_s3 + $0x240] ss:$8 sps:$4 sm:$0xff]  }
 0x2ec   : > { %v6180_v40 = vld [vmem:[%s8250_s3 + $0x254] ss:$8 sps:$4 sm:$0xff]   ;;  %v6178_v41 = vld [vmem:[%s8250_s3 + $0x250] ss:$8 sps:$4 sm:$0xff]   ;;  %v6183_v42 = vld [vmem:[%s8250_s3 + $0x264] ss:$8 sps:$4 sm:$0xff]  }
 0x2ed   : > { %v6181_v43 = vld [vmem:[%s8250_s3 + $0x260] ss:$8 sps:$4 sm:$0xff]   ;;  %v6186_v44 = vld [vmem:[%s8250_s3 + $0x274] ss:$8 sps:$4 sm:$0xff]   ;;  %v6184_v45 = vld [vmem:[%s8250_s3 + $0x270] ss:$8 sps:$4 sm:$0xff]  }
 0x2ee   : > { %v6189_v46 = vld [vmem:[%s8250_s3 + $0x284] ss:$8 sps:$4 sm:$0xff]   ;;  %v6187_v47 = vld [vmem:[%s8250_s3 + $0x280] ss:$8 sps:$4 sm:$0xff]  }
 0x2ef   : > { %v2719_v48 = vld [vmem:[#allocation3 + $0x8] sm:$0xff]  ;;  %v2718_v49 = vld [vmem:[#allocation3] sm:$0xff] }
 0x2f0   : > { %v2727_v50 = vpack.c.bf16 %v2719_v48, %v2719_v48  ;;  %v2726_v52 = vpack.c.bf16 %v2718_v49, %v2718_v49  ;;  %v2723_v28 = vld [vmem:[#allocation3 + $0x28] sm:$0xff]  ;;  %v6192_v48 = vld [vmem:[%s8250_s3 + $0x294] ss:$8 sps:$4 sm:$0xff]   ;;  %v6190_v49 = vld [vmem:[%s8250_s3 + $0x290] ss:$8 sps:$4 sm:$0xff]  }
 0x2f1   : > { %v2721_v53 = vld [vmem:[#allocation3 + $0x18] sm:$0xff]  ;;  %v2720_v27 = vld [vmem:[#allocation3 + $0x10] sm:$0xff]  ;;  %v2731_v33 = vpack.c.bf16 %v2723_v28, %v2723_v28  ;;  %v6241_v28 = vld [vmem:[%s8250_s3 + $0x3a0] ss:$8 sps:$4 sm:$0xff]  }
 0x2f2   : > { %3546 = vmatprep.mubr.bf16.mxu1 %v2727_v50  ;;  %v2729_v55 = vpack.c.bf16 %v2721_v53, %v2721_v53  ;;  %v2728_v30 = vpack.c.bf16 %v2720_v27, %v2720_v27  ;;  %v6195_v50 = vld [vmem:[%s8250_s3 + $0x2a4] ss:$8 sps:$4 sm:$0xff]   ;;  %v6196_v53 = vld [vmem:[%s8250_s3 + $0x2b0] ss:$8 sps:$4 sm:$0xff]  }
 0x2f3   : > { %3547 = vmatmul.mubr.bf16.vlgmr.msra.gmra.mrb[0].mxu1 %v2726_v52  ;;  %v6198_v52 = vld [vmem:[%s8250_s3 + $0x2b4] ss:$8 sps:$4 sm:$0xff]   ;;  %v6243_v27 = vld [vmem:[%s8250_s3 + $0x3a4] ss:$8 sps:$4 sm:$0xff]  }
 0x2f4   : > { %3556 = vmatpush1.bf16.msra.mxu1 %v6115_v51  ;;  %3587 = vmatprep.mubr.bf16.mxu1 %v2729_v55  ;;  %v6193_v51 = vld [vmem:[%s8250_s3 + $0x2a0] ss:$8 sps:$4 sm:$0xff]  }
 0x2f5   : > { %3557 = vmatprep.subr.bf16.mxu1 %v6120_v54  ;;  %v6201_v54 = vld [vmem:[%s8250_s3 + $0x2c4] ss:$8 sps:$4 sm:$0xff]   ;;  %v6199_v55 = vld [vmem:[%s8250_s3 + $0x2c0] ss:$8 sps:$4 sm:$0xff]  }
 0x2f8   : > { %3558 = vmatpush1.bf16.msra.mxu1 %v6118_v56  ;;  %v6204_v56 = vld [vmem:[%s8250_s3 + $0x2d4] ss:$8 sps:$4 sm:$0xff]  }
 0x2f9   : > { %3559 = vmatprep.subr.bf16.mxu1 %v6123_v57  ;;  %v6202_v57 = vld [vmem:[%s8250_s3 + $0x2d0] ss:$8 sps:$4 sm:$0xff]  }
 0x2fc   : > { %3560 = vmatpush1.bf16.msra.mxu1 %v6121_v58  ;;  %v6207_v58 = vld [vmem:[%s8250_s3 + $0x2e4] ss:$8 sps:$4 sm:$0xff]  }
 0x2fd   : > { %3561 = vmatprep.subr.bf16.mxu1 %v6126_v59  ;;  %v6205_v59 = vld [vmem:[%s8250_s3 + $0x2e0] ss:$8 sps:$4 sm:$0xff]  }
 0x300   : > { %3562 = vmatpush1.bf16.msra.mxu1 %v6124_v60  ;;  %v6210_v60 = vld [vmem:[%s8250_s3 + $0x2f4] ss:$8 sps:$4 sm:$0xff]  }
 0x301   : > { %3563 = vmatprep.subr.bf16.mxu1 %v6129_v61  ;;  %v6208_v61 = vld [vmem:[%s8250_s3 + $0x2f0] ss:$8 sps:$4 sm:$0xff]  }
 0x304   : > { %3564 = vmatpush1.bf16.msra.mxu1 %v6127_v62  ;;  %v6213_v62 = vld [vmem:[%s8250_s3 + $0x304] ss:$8 sps:$4 sm:$0xff]  }
 0x305   : > { %3565 = vmatprep.subr.bf16.mxu1 %v6132_v63  ;;  %v2722_v63 = vld [vmem:[#allocation3 + $0x20] sm:$0xff] }
 0x308   : > { %3566 = vmatpush1.bf16.msra.mxu1 %v6130_v0  ;;  %v2725_v0 = vld [vmem:[#allocation3 + $0x38] sm:$0xff] }
 0x309   : > { %3567 = vmatprep.subr.bf16.mxu1 %v6135_v1  ;;  %v6211_v1 = vld [vmem:[%s8250_s3 + $0x300] ss:$8 sps:$4 sm:$0xff]  }
 0x30c   : > { %3568 = vmatpush1.bf16.msra.mxu1 %v6133_v2  ;;  %v2730_v2 = vpack.c.bf16 %v2722_v63, %v2722_v63 }
 0x30d   : > { %3569 = vmatprep.subr.bf16.mxu1 %v6138_v3  ;;  %v6216_v3 = vld [vmem:[%s8250_s3 + $0x314] ss:$8 sps:$4 sm:$0xff]  }
 0x310   : > { %3570 = vmatpush1.bf16.msra.mxu1 %v6136_v4  ;;  %v2733_v4 = vpack.c.bf16 %v2725_v0, %v2725_v0 }
 0x311   : > { %3571 = vmatprep.subr.bf16.mxu1 %v6141_v5  ;;  %v6214_v5 = vld [vmem:[%s8250_s3 + $0x310] ss:$8 sps:$4 sm:$0xff]  }
 0x314   : > { %3572 = vmatpush1.bf16.msra.mxu1 %v6139_v6  ;;  %v6219_v6 = vld [vmem:[%s8250_s3 + $0x324] ss:$8 sps:$4 sm:$0xff]  }
 0x315   : > { %3573 = vmatprep.subr.bf16.mxu1 %v6144_v7  ;;  %v6217_v7 = vld [vmem:[%s8250_s3 + $0x320] ss:$8 sps:$4 sm:$0xff]  }
 0x318   : > { %3574 = vmatpush1.bf16.msra.mxu1 %v6142_v8  ;;  %v6222_v8 = vld [vmem:[%s8250_s3 + $0x334] ss:$8 sps:$4 sm:$0xff]  }
 0x319   : > { %3575 = vmatprep.subr.bf16.mxu1 %v6147_v9  ;;  %v6220_v9 = vld [vmem:[%s8250_s3 + $0x330] ss:$8 sps:$4 sm:$0xff]  }
 0x31c   : > { %3576 = vmatpush1.bf16.msra.mxu1 %v6145_v10  ;;  %v6225_v10 = vld [vmem:[%s8250_s3 + $0x344] ss:$8 sps:$4 sm:$0xff]  }
 0x31d   : > { %3577 = vmatprep.subr.bf16.mxu1 %v6150_v12  ;;  %v6223_v12 = vld [vmem:[%s8250_s3 + $0x340] ss:$8 sps:$4 sm:$0xff]  }
 0x320   : > { %3578 = vmatpush1.bf16.msra.mxu1 %v6148_v13  ;;  %v6228_v13 = vld [vmem:[%s8250_s3 + $0x354] ss:$8 sps:$4 sm:$0xff]  }
 0x321   : > { %3579 = vmatprep.subr.bf16.mxu1 %v6153_v15  ;;  %v6226_v15 = vld [vmem:[%s8250_s3 + $0x350] ss:$8 sps:$4 sm:$0xff]  }
 0x324   : > { %3580 = vmatpush1.bf16.msra.mxu1 %v6151_v18  ;;  %v6231_v18 = vld [vmem:[%s8250_s3 + $0x364] ss:$8 sps:$4 sm:$0xff]  }
 0x325   : > { %3581 = vmatprep.subr.bf16.mxu1 %v6156_v20  ;;  %v6229_v20 = vld [vmem:[%s8250_s3 + $0x360] ss:$8 sps:$4 sm:$0xff]  }
 0x328   : > { %3582 = vmatpush1.bf16.msra.mxu1 %v6154_v21  ;;  %v6234_v21 = vld [vmem:[%s8250_s3 + $0x374] ss:$8 sps:$4 sm:$0xff]  }
 0x329   : > { %3583 = vmatprep.subr.bf16.mxu1 %v6159_v22  ;;  %v6232_v22 = vld [vmem:[%s8250_s3 + $0x370] ss:$8 sps:$4 sm:$0xff]  }
 0x32c   : > { %3584 = vmatpush1.bf16.msra.mxu1 %v6157_v23  ;;  %v6237_v23 = vld [vmem:[%s8250_s3 + $0x384] ss:$8 sps:$4 sm:$0xff]  }
 0x32d   : > { %3585 = vmatprep.subr.bf16.mxu1 %v6162_v24  ;;  %v6235_v24 = vld [vmem:[%s8250_s3 + $0x380] ss:$8 sps:$4 sm:$0xff]  }
 0x330   : > { %3586 = vmatpush1.bf16.msra.mxu1 %v6160_v25  ;;  %v6240_v25 = vld [vmem:[%s8250_s3 + $0x394] ss:$8 sps:$4 sm:$0xff]  }
 0x331   : > { %3596 = vmatprep.subr.bf16.mxu1 %v6165_v26  ;;  %v6238_v26 = vld [vmem:[%s8250_s3 + $0x390] ss:$8 sps:$4 sm:$0xff]  }
 0x333   : > { %3588 = vmatmul.mubr.bf16.vlgmr.msra.gmra.mrb[0].mxu1 %v2728_v30  ;;  %v6244_v30 = vld [vmem:[%s8250_s3 + $0x3b0] ss:$8 sps:$4 sm:$0xff]  }
 0x334   : > { %3597 = vmatpush1.bf16.msra.mxu1 %v6163_v29  ;;  %3628 = vmatprep.mubr.bf16.mxu1 %v2731_v33  ;;  %v6246_v29 = vld [vmem:[%s8250_s3 + $0x3b4] ss:$8 sps:$4 sm:$0xff]   ;;  %v6247_v33 = vld [vmem:[%s8250_s3 + $0x3c0] ss:$8 sps:$4 sm:$0xff]  }
 0x335   : > { %3598 = vmatprep.subr.bf16.mxu1 %v6168_v31  ;;  %v6249_v31 = vld [vmem:[%s8250_s3 + $0x3c4] ss:$8 sps:$4 sm:$0xff]  }
 0x338   : > { %3599 = vmatpush1.bf16.msra.mxu1 %v6166_v34  ;;  %v6252_v34 = vld [vmem:[%s8250_s3 + $0x3d4] ss:$8 sps:$4 sm:$0xff]  }
 0x339   : > { %3600 = vmatprep.subr.bf16.mxu1 %v6171_v35  ;;  %v6250_v35 = vld [vmem:[%s8250_s3 + $0x3d0] ss:$8 sps:$4 sm:$0xff]  }
 0x33c   : > { %3601 = vmatpush1.bf16.msra.mxu1 %v6169_v36  ;;  %v6255_v36 = vld [vmem:[%s8250_s3 + $0x3e4] ss:$8 sps:$4 sm:$0xff]  }
 0x33d   : > { %3602 = vmatprep.subr.bf16.mxu1 %v6174_v37  ;;  %v6253_v37 = vld [vmem:[%s8250_s3 + $0x3e0] ss:$8 sps:$4 sm:$0xff]  }
 0x340   : > { %3603 = vmatpush1.bf16.msra.mxu1 %v6172_v38  ;;  %v6258_v38 = vld [vmem:[%s8250_s3 + $0x3f4] ss:$8 sps:$4 sm:$0xff]  }
 0x341   : > { %3604 = vmatprep.subr.bf16.mxu1 %v6177_v39  ;;  %v6256_v39 = vld [vmem:[%s8250_s3 + $0x3f0] ss:$8 sps:$4 sm:$0xff]  }
 0x344   : > { %3605 = vmatpush1.bf16.msra.mxu1 %v6175_v14  ;;  %v6259_v14 = vld [vmem:[%s8252_s5 + $0x40] sm:$0xff]  }
 0x345   : > { %3606 = vmatprep.subr.bf16.mxu1 %v6180_v40  ;;  %v2724_v40 = vld [vmem:[#allocation3 + $0x30] sm:$0xff] }
 0x348   : > { %3607 = vmatpush1.bf16.msra.mxu1 %v6178_v41  ;;  %v6260_v41 = vld [vmem:[%s8252_s5] sm:$0xff]  }
 0x349   : > { %3608 = vmatprep.subr.bf16.mxu1 %v6183_v42  ;;  %v2732_v42 = vpack.c.bf16 %v2724_v40, %v2724_v40  ;;  %v6293_v40 = vld [vmem:[%s8252_s5 + $0x148] sm:$0xff]  }
 0x34c   : > { %3609 = vmatpush1.bf16.msra.mxu1 %v6181_v43  ;;  %v6261_v43 = vld [vmem:[%s8252_s5 + $0x48] sm:$0xff]  }
 0x34d   : > { %3610 = vmatprep.subr.bf16.mxu1 %v6186_v44  ;;  %v6262_v44 = vld [vmem:[%s8252_s5 + $0x8] sm:$0xff]  }
 0x350   : > { %3611 = vmatpush1.bf16.msra.mxu1 %v6184_v45  ;;  %v6263_v45 = vld [vmem:[%s8252_s5 + $0x50] sm:$0xff]  }
 0x351   : > { %3612 = vmatprep.subr.bf16.mxu1 %v6189_v46  ;;  %v6264_v46 = vld [vmem:[%s8252_s5 + $0x10] sm:$0xff]  }
 0x354   : > { %3613 = vmatpush1.bf16.msra.mxu1 %v6187_v47  ;;  %v6265_v47 = vld [vmem:[%s8252_s5 + $0x58] sm:$0xff]  }
 0x355   : > { %3614 = vmatprep.subr.bf16.mxu1 %v6192_v48  ;;  %v6266_v48 = vld [vmem:[%s8252_s5 + $0x18] sm:$0xff]  }
 0x358   : > { %3615 = vmatpush1.bf16.msra.mxu1 %v6190_v49  ;;  %v6267_v49 = vld [vmem:[%s8252_s5 + $0x60] sm:$0xff]  }
 0x359   : > { %3616 = vmatprep.subr.bf16.mxu1 %v6195_v50  ;;  %v6268_v50 = vld [vmem:[%s8252_s5 + $0x20] sm:$0xff]  }
 0x35c   : > { %3617 = vmatpush1.bf16.msra.mxu1 %v6193_v51  ;;  %v6269_v51 = vld [vmem:[%s8252_s5 + $0x68] sm:$0xff]  }
 0x35d   : > { %3618 = vmatprep.subr.bf16.mxu1 %v6198_v52  ;;  %v6270_v52 = vld [vmem:[%s8252_s5 + $0x28] sm:$0xff]  }
 0x360   : > { %3619 = vmatpush1.bf16.msra.mxu1 %v6196_v53  ;;  %v6271_v53 = vld [vmem:[%s8252_s5 + $0x70] sm:$0xff]  }
 0x361   : > { %3620 = vmatprep.subr.bf16.mxu1 %v6201_v54  ;;  %v6272_v54 = vld [vmem:[%s8252_s5 + $0x30] sm:$0xff]  }
 0x364   : > { %3621 = vmatpush1.bf16.msra.mxu1 %v6199_v55  ;;  %v6273_v55 = vld [vmem:[%s8252_s5 + $0x78] sm:$0xff]  }
 0x365   : > { %3622 = vmatprep.subr.bf16.mxu1 %v6204_v56  ;;  %v6274_v56 = vld [vmem:[%s8252_s5 + $0x38] sm:$0xff]  }
 0x368   : > { %3623 = vmatpush1.bf16.msra.mxu1 %v6202_v57  ;;  %v6275_v57 = vld [vmem:[%s8252_s5 + $0xc0] sm:$0xff]  }
 0x369   : > { %3624 = vmatprep.subr.bf16.mxu1 %v6207_v58  ;;  %v2862_v58 = vld [vmem:[%s8251_s4] sm:$0x3] }
 0x36c   : > { %3625 = vmatpush1.bf16.msra.mxu1 %v6205_v59  ;;  %v2867_v59 = vrot.slane %v2862_v58, %v7549_v17 }
 0x36d   : > { %3626 = vmatprep.subr.bf16.mxu1 %v6210_v60  ;;  %v2871_v60 = vrot.slane %v2862_v58, %v7555_v19  ;;  %v6309_v58 = vld [vmem:[%s8254_s7 + $0x4] ss:$16 sps:$4 sm:$0xff]  }
 0x370   : > { %3627 = vmatpush1.bf16.msra.mxu1 %v6208_v61 }
 0x371   : > { %3637 = vmatprep.subr.bf16.mxu1 %v6213_v62 }
 0x373   : > { %3629 = vmatmul.mubr.bf16.vlgmr.msra.gmra.mrb[0].mxu1 %v2730_v2 }
 0x374   : > { %3638 = vmatpush1.bf16.msra.mxu1 %v6211_v1  ;;  %3669 = vmatprep.mubr.bf16.mxu1 %v2733_v4 }
 0x375   : > { %3639 = vmatprep.subr.bf16.mxu1 %v6216_v3 }
 0x378   : > { %3640 = vmatpush1.bf16.msra.mxu1 %v6214_v5 }
 0x379   : > { %3641 = vmatprep.subr.bf16.mxu1 %v6219_v6 }
 0x37c   : > { %3642 = vmatpush1.bf16.msra.mxu1 %v6217_v7 }
 0x37d   : > { %3643 = vmatprep.subr.bf16.mxu1 %v6222_v8 }
 0x380   : > { %3644 = vmatpush1.bf16.msra.mxu1 %v6220_v9 }
 0x381   : > { %3645 = vmatprep.subr.bf16.mxu1 %v6225_v10 }
 0x384   : > { %3646 = vmatpush1.bf16.msra.mxu1 %v6223_v12 }
 0x385   : > { %3647 = vmatprep.subr.bf16.mxu1 %v6228_v13 }
 0x388   : > { %3648 = vmatpush1.bf16.msra.mxu1 %v6226_v15 }
 0x389   : > { %3649 = vmatprep.subr.bf16.mxu1 %v6231_v18 }
 0x38c   : > { %3650 = vmatpush1.bf16.msra.mxu1 %v6229_v20  ;;  %v6276_v20 = vld [vmem:[%s8252_s5 + $0x80] sm:$0xff]  }
 0x38d   : > { %3651 = vmatprep.subr.bf16.mxu1 %v6234_v21 }
 0x390   : > { %3652 = vmatpush1.bf16.msra.mxu1 %v6232_v22 }
 0x391   : > { %3653 = vmatprep.subr.bf16.mxu1 %v6237_v23  ;;  %v6279_v23 = vld [vmem:[%s8252_s5 + $0xd0] sm:$0xff]  }
 0x394   : > { %3654 = vmatpush1.bf16.msra.mxu1 %v6235_v24  ;;  %v6280_v24 = vld [vmem:[%s8252_s5 + $0x90] sm:$0xff]  }
 0x395   : > { %3655 = vmatprep.subr.bf16.mxu1 %v6240_v25  ;;  %v6281_v25 = vld [vmem:[%s8252_s5 + $0xd8] sm:$0xff]  }
 0x398   : > { %3656 = vmatpush1.bf16.msra.mxu1 %v6238_v26  ;;  %v6282_v26 = vld [vmem:[%s8252_s5 + $0x98] sm:$0xff]  }
 0x399   : > { %3657 = vmatprep.subr.bf16.mxu1 %v6243_v27  ;;  %v6283_v27 = vld [vmem:[%s8252_s5 + $0xe0] sm:$0xff]  }
 0x39c   : > { %3658 = vmatpush1.bf16.msra.mxu1 %v6241_v28  ;;  %v6284_v28 = vld [vmem:[%s8252_s5 + $0xa0] sm:$0xff]  }
 0x39d   : > { %3659 = vmatprep.subr.bf16.mxu1 %v6246_v29  ;;  %v6285_v29 = vld [vmem:[%s8252_s5 + $0xe8] sm:$0xff]  }
 0x3a0   : > { %3660 = vmatpush1.bf16.msra.mxu1 %v6244_v30  ;;  %v6286_v30 = vld [vmem:[%s8252_s5 + $0xa8] sm:$0xff]  }
 0x3a1   : > { %3661 = vmatprep.subr.bf16.mxu1 %v6249_v31  ;;  %v6287_v31 = vld [vmem:[%s8252_s5 + $0xf0] sm:$0xff]  }
 0x3a4   : > { %3662 = vmatpush1.bf16.msra.mxu1 %v6247_v33  ;;  %v6288_v33 = vld [vmem:[%s8252_s5 + $0xb0] sm:$0xff]  }
 0x3a5   : > { %3663 = vmatprep.subr.bf16.mxu1 %v6252_v34  ;;  %v6289_v34 = vld [vmem:[%s8252_s5 + $0xf8] sm:$0xff]  }
 0x3a8   : > { %3664 = vmatpush1.bf16.msra.mxu1 %v6250_v35  ;;  %v6290_v35 = vld [vmem:[%s8252_s5 + $0xb8] sm:$0xff]  }
 0x3a9   : > { %3665 = vmatprep.subr.bf16.mxu1 %v6255_v36  ;;  %v6291_v36 = vld [vmem:[%s8252_s5 + $0x140] sm:$0xff]  }
 0x3ac   : > { %3666 = vmatpush1.bf16.msra.mxu1 %v6253_v37 }
 0x3ad   : > { %3667 = vmatprep.subr.bf16.mxu1 %v6258_v38 }
 0x3b0   : > { %3668 = vmatpush1.bf16.msra.mxu1 %v6256_v39  ;;  %v6292_v39 = vld [vmem:[%s8252_s5 + $0x100] sm:$0xff]  }
 0x3b1   : > { %5518 = vmatprep.subr.bf16.mxu1 %v6259_v14 }
 0x3b3   : > { %3670 = vmatmul.mubr.bf16.vlgmr.msra.gmra.mrb[0].mxu1 %v2732_v42  ;;  %v6294_v42 = vld [vmem:[%s8252_s5 + $0x108] sm:$0xff]  }
 0x3b4   : > { %5519 = vmatpush3.bf16.msra.mxu1 %v6260_v41 }
 0x3b5   : > { %5520 = vmatprep.subr.bf16.mxu1 %v6261_v43  ;;  %v6295_v43 = vld [vmem:[%s8252_s5 + $0x150] sm:$0xff]  }
 0x3b8   : > { %5521 = vmatpush3.bf16.msra.mxu1 %v6262_v44  ;;  %v6296_v44 = vld [vmem:[%s8252_s5 + $0x110] sm:$0xff]  }
 0x3b9   : > { %5522 = vmatprep.subr.bf16.mxu1 %v6263_v45  ;;  %v6297_v45 = vld [vmem:[%s8252_s5 + $0x158] sm:$0xff]  }
 0x3bc   : > { %5523 = vmatpush3.bf16.msra.mxu1 %v6264_v46  ;;  %v6298_v46 = vld [vmem:[%s8252_s5 + $0x118] sm:$0xff]  }
 0x3bd   : > { %5524 = vmatprep.subr.bf16.mxu1 %v6265_v47  ;;  %v6299_v47 = vld [vmem:[%s8252_s5 + $0x160] sm:$0xff]  }
 0x3c0   : > { %5525 = vmatpush3.bf16.msra.mxu1 %v6266_v48  ;;  %v6300_v48 = vld [vmem:[%s8252_s5 + $0x120] sm:$0xff]  }
 0x3c1   : > { %5526 = vmatprep.subr.bf16.mxu1 %v6267_v49  ;;  %v6301_v49 = vld [vmem:[%s8252_s5 + $0x168] sm:$0xff]  }
 0x3c4   : > { %5527 = vmatpush3.bf16.msra.mxu1 %v6268_v50  ;;  %v6302_v50 = vld [vmem:[%s8252_s5 + $0x128] sm:$0xff]  }
 0x3c5   : > { %5528 = vmatprep.subr.bf16.mxu1 %v6269_v51  ;;  %v6303_v51 = vld [vmem:[%s8252_s5 + $0x170] sm:$0xff]  }
 0x3c8   : > { %5529 = vmatpush3.bf16.msra.mxu1 %v6270_v52  ;;  %v6304_v52 = vld [vmem:[%s8252_s5 + $0x130] sm:$0xff]  }
 0x3c9   : > { %5530 = vmatprep.subr.bf16.mxu1 %v6271_v53  ;;  %v6305_v53 = vld [vmem:[%s8252_s5 + $0x178] sm:$0xff]  }
 0x3cc   : > { %5531 = vmatpush3.bf16.msra.mxu1 %v6272_v54  ;;  %v6306_v54 = vld [vmem:[%s8252_s5 + $0x138] sm:$0xff]  }
 0x3cd   : > { %5532 = vmatprep.subr.bf16.mxu1 %v6273_v55 }
 0x3d0   : > { %5533 = vmatpush3.bf16.msra.mxu1 %v6274_v56 }
 0x3d1   : > { %5540 = vmatprep.subr.bf16.mxu1 %v6275_v57  ;;  %v6307_v57 = vld [vmem:[%s8254_s7] ss:$16 sps:$4 sm:$0xff]  }
 0x486   : > { %v3671_v61 = vpop.f32.mrb[0].mxu1 }
 0x487   : > { %v5630_v62 = vadd.f32 %v3671_v61, %v2867_v59  ;;  %v3673_v63 = vpop.f32.mrb[1].mxu1  ;;  %v6312_v59 = vld [vmem:[%s8254_s7 + $0x24] ss:$16 sps:$4 sm:$0xff]  }
 0x488   : > { %v5631_v0 = vadd.f32 %v3673_v63, %v2871_v60  ;;  %v3675_v1 = vpop.f32.mrb[2].mxu1  ;;  %v6310_v60 = vld [vmem:[%s8254_s7 + $0x20] ss:$16 sps:$4 sm:$0xff]   ;;  %v6315_v61 = vld [vmem:[%s8254_s7 + $0x44] ss:$16 sps:$4 sm:$0xff]  }
 0x489   : > { %v3678_v2 = vmax.f32 %v5630_v62, 0.0  ;;  %v3676_v3 = vpop.f32.mrb[3].mxu1  ;;  %v6313_v62 = vld [vmem:[%s8254_s7 + $0x40] ss:$16 sps:$4 sm:$0xff]   ;;  %v6318_v63 = vld [vmem:[%s8254_s7 + $0x64] ss:$16 sps:$4 sm:$0xff]  }
 0x48a   : > { %v3679_v4 = vmax.f32 %v5631_v0, 0.0  ;;  %v6316_v0 = vld [vmem:[%s8254_s7 + $0x60] ss:$16 sps:$4 sm:$0xff]   ;;  %v6321_v1 = vld [vmem:[%s8254_s7 + $0x84] ss:$16 sps:$4 sm:$0xff]  }
 0x48b   : > { %v6324_v3 = vld [vmem:[%s8254_s7 + $0xa4] ss:$16 sps:$4 sm:$0xff]  }
 0x48c   : > { %v3682_v5 = vcombine.low %v3678_v2, %v3679_v4  ;;  %v6319_v2 = vld [vmem:[%s8254_s7 + $0x80] ss:$16 sps:$4 sm:$0xff]  }
 0x48d   : > { %v6322_v4 = vld [vmem:[%s8254_s7 + $0xa0] ss:$16 sps:$4 sm:$0xff]  }
 0x48e   : > { %v3689_v6 = vrot.slane %v3682_v5, %v7560_v32  ;;  %v6327_v5 = vld [vmem:[%s8254_s7 + $0xc4] ss:$16 sps:$4 sm:$0xff]  }
 0x490   : > { %v3696_v7 = vrot.slane %v3689_v6, %v7560_v32  ;;  %v3702_v8 = vcombine.high %v3689_v6, %v3689_v6  ;;  %v6325_v6 = vld [vmem:[%s8254_s7 + $0xc0] ss:$16 sps:$4 sm:$0xff]  }
 0x492   : > { %3700 = vst.msk [vmem:[#allocation4] ss:$8 sm:$0x3] %vm3698_vm2, %v3696_v7  ;;  %v3709_v9 = vrot.slane %v3702_v8, %v7560_v32  ;;  %v3714_v10 = vcombine.high %v3696_v7, %v3696_v7  ;;  %v6278_v32 = vld [vmem:[%s8252_s5 + $0x88] sm:$0xff]   ;;  %v6330_v7 = vld [vmem:[%s8254_s7 + $0xe4] ss:$16 sps:$4 sm:$0xff]  }
 0x493   : > { %v6328_v8 = vld [vmem:[%s8254_s7 + $0xe0] ss:$16 sps:$4 sm:$0xff]  }
 0x494   : > { %3712 = vst.msk [vmem:[#allocation4 + $0x10] ss:$8 sm:$0x3] %vm3698_vm2, %v3709_v9  ;;  %3717 = vst.msk [vmem:[#allocation4 + $0x20] ss:$8 sm:$0x3] %vm3698_vm2, %v3714_v10 }
 0x495   : > { %v6397_v9 = vmov 0   ;;  %v6333_v10 = vld [vmem:[%s8254_s7 + $0xc] ss:$16 sps:$4 sm:$0xff]  }
 0x499   : > { %v3720_v12 = vld [vmem:[#allocation4 + $0x8] sm:$0xff]  ;;  %v3719_v13 = vld [vmem:[#allocation4] sm:$0xff] }
 0x49a   : > { %v3726_v15 = vpack.c.bf16 %v3720_v12, %v3720_v12  ;;  %v3725_v18 = vpack.c.bf16 %v3719_v13, %v3719_v13 }
 0x49b   : > { %v3722_v21 = vld [vmem:[#allocation4 + $0x18] sm:$0xff]  ;;  %v3721_v37 = vld [vmem:[#allocation4 + $0x10] sm:$0xff]  ;;  %v3724_v38 = vld [vmem:[#allocation4 + $0x28] sm:$0xff] }
 0x49c   : > { %4154 = vmatprep.mubr.bf16.mxu1 %v3726_v15  ;;  %v3728_v22 = vpack.c.bf16 %v3722_v21, %v3722_v21  ;;  %v3727_v14 = vpack.c.bf16 %v3721_v37, %v3721_v37  ;;  %v3730_v41 = vpack.c.bf16 %v3724_v38, %v3724_v38  ;;  %v3723_v55 = vld [vmem:[#allocation4 + $0x20] sm:$0xff]  ;;  %v6336_v38 = vld [vmem:[%s8254_s7 + $0x2c] ss:$16 sps:$4 sm:$0xff]  }
 0x49d   : > { %4155 = vmatmul.mubr.bf16.vlgmr.msra.gmra.mrb[4].mxu1 %v3725_v18  ;;  %v3729_v56 = vpack.c.bf16 %v3723_v55, %v3723_v55  ;;  %v5402_v21 = vld [vmem:[%s8253_s6] ss:$0 sm:$0xff]  ;;  %v6359_v55 = vld [vmem:[%s8256_s9 + $0x50] sm:$0xff]  }
 0x49e   : > { %5541 = vmatpush3.bf16.msra.mxu1 %v6276_v20  ;;  %4194 = vmatprep.mubr.bf16.mxu1 %v3728_v22 }
 0x49f   : > { %5542 = vmatprep.subr.bf16.mxu1 %v6277_v11 }
 0x4a2   : > { %5543 = vmatpush3.bf16.msra.mxu1 %v6278_v32 }
 0x4a3   : > { %5544 = vmatprep.subr.bf16.mxu1 %v6279_v23 }
 0x4a6   : > { %5545 = vmatpush3.bf16.msra.mxu1 %v6280_v24 }
 0x4a7   : > { %5546 = vmatprep.subr.bf16.mxu1 %v6281_v25 }
 0x4aa   : > { %5547 = vmatpush3.bf16.msra.mxu1 %v6282_v26 }
 0x4ab   : > { %5548 = vmatprep.subr.bf16.mxu1 %v6283_v27 }
 0x4ae   : > { %5549 = vmatpush3.bf16.msra.mxu1 %v6284_v28 }
 0x4af   : > { %5550 = vmatprep.subr.bf16.mxu1 %v6285_v29 }
 0x4b2   : > { %5551 = vmatpush3.bf16.msra.mxu1 %v6286_v30 }
 0x4b3   : > { %5552 = vmatprep.subr.bf16.mxu1 %v6287_v31 }
 0x4b6   : > { %5553 = vmatpush3.bf16.msra.mxu1 %v6288_v33 }
 0x4b7   : > { %5554 = vmatprep.subr.bf16.mxu1 %v6289_v34 }
 0x4ba   : > { %5555 = vmatpush3.bf16.msra.mxu1 %v6290_v35  ;;  %v6331_v35 = vld [vmem:[%s8254_s7 + $0x8] ss:$16 sps:$4 sm:$0xff]  }
 0x4bb   : > { %5562 = vmatprep.subr.bf16.mxu1 %v6291_v36 }
 0x4bd   : > { %4195 = vmatmul.mubr.bf16.vlgmr.msra.gmra.mrb[8].mxu1 %v3727_v14  ;;  %v6339_v14 = vld [vmem:[%s8254_s7 + $0x4c] ss:$16 sps:$4 sm:$0xff]  }
 0x4be   : > { %5563 = vmatpush3.bf16.msra.mxu1 %v6292_v39  ;;  %4234 = vmatprep.mubr.bf16.mxu1 %v3730_v41  ;;  %v6334_v39 = vld [vmem:[%s8254_s7 + $0x28] ss:$16 sps:$4 sm:$0xff]   ;;  %v6342_v41 = vld [vmem:[%s8254_s7 + $0x6c] ss:$16 sps:$4 sm:$0xff]  }
 0x4bf   : > { %5564 = vmatprep.subr.bf16.mxu1 %v6293_v40  ;;  %v6337_v40 = vld [vmem:[%s8254_s7 + $0x48] ss:$16 sps:$4 sm:$0xff]  }
 0x4c2   : > { %5565 = vmatpush3.bf16.msra.mxu1 %v6294_v42  ;;  %v6340_v42 = vld [vmem:[%s8254_s7 + $0x68] ss:$16 sps:$4 sm:$0xff]  }
 0x4c3   : > { %5566 = vmatprep.subr.bf16.mxu1 %v6295_v43  ;;  %v6345_v43 = vld [vmem:[%s8254_s7 + $0x8c] ss:$16 sps:$4 sm:$0xff]  }
 0x4c6   : > { %5567 = vmatpush3.bf16.msra.mxu1 %v6296_v44  ;;  %v6343_v44 = vld [vmem:[%s8254_s7 + $0x88] ss:$16 sps:$4 sm:$0xff]  }
 0x4c7   : > { %5568 = vmatprep.subr.bf16.mxu1 %v6297_v45  ;;  %v6348_v45 = vld [vmem:[%s8254_s7 + $0xac] ss:$16 sps:$4 sm:$0xff]  }
 0x4ca   : > { %5569 = vmatpush3.bf16.msra.mxu1 %v6298_v46  ;;  %v6346_v46 = vld [vmem:[%s8254_s7 + $0xa8] ss:$16 sps:$4 sm:$0xff]  }
 0x4cb   : > { %5570 = vmatprep.subr.bf16.mxu1 %v6299_v47  ;;  %v6351_v47 = vld [vmem:[%s8254_s7 + $0xcc] ss:$16 sps:$4 sm:$0xff]  }
 0x4ce   : > { %5571 = vmatpush3.bf16.msra.mxu1 %v6300_v48  ;;  %v6349_v48 = vld [vmem:[%s8254_s7 + $0xc8] ss:$16 sps:$4 sm:$0xff]  }
 0x4cf   : > { %5572 = vmatprep.subr.bf16.mxu1 %v6301_v49  ;;  %v6354_v49 = vld [vmem:[%s8254_s7 + $0xec] ss:$16 sps:$4 sm:$0xff]  }
 0x4d2   : > { %5573 = vmatpush3.bf16.msra.mxu1 %v6302_v50  ;;  %v6352_v50 = vld [vmem:[%s8254_s7 + $0xe8] ss:$16 sps:$4 sm:$0xff]  }
 0x4d3   : > { %5574 = vmatprep.subr.bf16.mxu1 %v6303_v51  ;;  %v6355_v51 = vld [vmem:[%s8256_s9 + $0x40] sm:$0xff]  }
 0x4d6   : > { %5575 = vmatpush3.bf16.msra.mxu1 %v6304_v52  ;;  %v6356_v52 = vld [vmem:[%s8256_s9] sm:$0xff]  }
 0x4d7   : > { %5576 = vmatprep.subr.bf16.mxu1 %v6305_v53  ;;  %v6357_v53 = vld [vmem:[%s8256_s9 + $0x48] sm:$0xff]  }
 0x4da   : > { %5577 = vmatpush3.bf16.msra.mxu1 %v6306_v54  ;;  %v6358_v54 = vld [vmem:[%s8256_s9 + $0x8] sm:$0xff]  }
 0x4db   : > { %4461 = vmatprep.subr.bf16.mxu1 %v6309_v58  ;;  %v6362_v58 = vld [vmem:[%s8256_s9 + $0x18] sm:$0xff]  }
 0x4dd   : > { %4235 = vmatmul.mubr.bf16.vlgmr.msra.gmra.mrb[12].mxu1 %v3729_v56  ;;  %v6360_v56 = vld [vmem:[%s8256_s9 + $0x10] sm:$0xff]  }
 0x4de   : > { %4462 = vmatpush1.bf16.msra.mxu1 %v6307_v57  ;;  %4493 = vmatprep.mubr.bf16.mxu1 %v6397_v9  ;;  %v6361_v57 = vld [vmem:[%s8256_s9 + $0x58] sm:$0xff]  }
 0x4df   : > { %4463 = vmatprep.subr.bf16.mxu1 %v6312_v59  ;;  %v6363_v59 = vld [vmem:[%s8256_s9 + $0x60] sm:$0xff]  }
 0x4e2   : > { %4464 = vmatpush1.bf16.msra.mxu1 %v6310_v60  ;;  %v6364_v60 = vld [vmem:[%s8256_s9 + $0x20] sm:$0xff]  }
 0x4e3   : > { %4465 = vmatprep.subr.bf16.mxu1 %v6315_v61  ;;  %v6365_v61 = vld [vmem:[%s8256_s9 + $0x68] sm:$0xff]  }
 0x4e6   : > { %4466 = vmatpush1.bf16.msra.mxu1 %v6313_v62  ;;  %v6366_v62 = vld [vmem:[%s8256_s9 + $0x28] sm:$0xff]  }
 0x4e7   : > { %4467 = vmatprep.subr.bf16.mxu1 %v6318_v63  ;;  %v6367_v63 = vld [vmem:[%s8256_s9 + $0x70] sm:$0xff]  }
 0x4ea   : > { %4468 = vmatpush1.bf16.msra.mxu1 %v6316_v0  ;;  %v6368_v0 = vld [vmem:[%s8256_s9 + $0x30] sm:$0xff]  }
 0x4eb   : > { %4469 = vmatprep.subr.bf16.mxu1 %v6321_v1  ;;  %v6369_v1 = vld [vmem:[%s8256_s9 + $0x78] sm:$0xff]  }
 0x4ee   : > { %4470 = vmatpush1.bf16.msra.mxu1 %v6319_v2  ;;  %v6370_v2 = vld [vmem:[%s8256_s9 + $0x38] sm:$0xff]  }
 0x4ef   : > { %4471 = vmatprep.subr.bf16.mxu1 %v6324_v3  ;;  %v6371_v3 = vld [vmem:[%s8256_s9 + $0xc0] sm:$0xff]  }
 0x4f2   : > { %4472 = vmatpush1.bf16.msra.mxu1 %v6322_v4  ;;  %v4279_v4 = vld [vmem:[%s8255_s8] sm:$0xf] }
 0x4f3   : > { %4473 = vmatprep.subr.bf16.mxu1 %v6327_v5  ;;  %v4284_v5 = vrot.slane %v4279_v4, %v7549_v17  ;;  %v6373_v17 = vld [vmem:[%s8256_s9 + $0xc8] sm:$0xff]  }
 0x4f6   : > { %4474 = vmatpush1.bf16.msra.mxu1 %v6325_v6  ;;  %v4288_v6 = vrot.slane %v4279_v4, %v7555_v19  ;;  %v6374_v19 = vld [vmem:[%s8256_s9 + $0x88] sm:$0xff]  }
 0x4f7   : > { %4475 = vmatprep.subr.bf16.mxu1 %v6330_v7 }
 0x4fa   : > { %4476 = vmatpush1.bf16.msra.mxu1 %v6328_v8 }
 0x4fb   : > { %4502 = vmatprep.subr.bf16.mxu1 %v6333_v10 }
 0x570   : > { %v5534_v12 = vpop.f32.mrb[4].mxu1 }
 0x571   : > { %v5535_v13 = vpop.f32.mrb[5].mxu1 }
 0x572   : > { %v5536_v15 = vadd.f32 %v5535_v13, %v5534_v12  ;;  %v5537_v18 = vpop.f32.mrb[6].mxu1 }
 0x573   : > { %v5538_v20 = vpop.f32.mrb[7].mxu1 }
 0x574   : > { %v4157_v32 = vadd.f32 %v5536_v15, %v5402_v21  ;;  %v6372_v21 = vld [vmem:[%s8256_s9 + $0x80] sm:$0xff]  }
 0x590   : > { %v5556_v11 = vpop.f32.mrb[8].mxu1 }
 0x591   : > { %v5557_v22 = vpop.f32.mrb[9].mxu1 }
 0x592   : > { %v5558_v23 = vadd.f32 %v5557_v22, %v5556_v11  ;;  %v5559_v24 = vpop.f32.mrb[10].mxu1  ;;  %v6375_v22 = vld [vmem:[%s8256_s9 + $0xd0] sm:$0xff]  }
 0x593   : > { %v5560_v25 = vpop.f32.mrb[11].mxu1  ;;  %v6378_v24 = vld [vmem:[%s8256_s9 + $0x98] sm:$0xff]  }
 0x594   : > { %v4197_v26 = vadd.f32 %v5558_v23, %v4157_v32  ;;  %v6376_v32 = vld [vmem:[%s8256_s9 + $0x90] sm:$0xff]   ;;  %v6377_v23 = vld [vmem:[%s8256_s9 + $0xd8] sm:$0xff]   ;;  %v6379_v25 = vld [vmem:[%s8256_s9 + $0xe0] sm:$0xff]  }
 0x5b0   : > { %v5578_v27 = vpop.f32.mrb[12].mxu1 }
 0x5b1   : > { %v5579_v28 = vpop.f32.mrb[13].mxu1 }
 0x5b2   : > { %v5580_v29 = vadd.f32 %v5579_v28, %v5578_v27  ;;  %v5581_v30 = vpop.f32.mrb[14].mxu1  ;;  %v6381_v27 = vld [vmem:[%s8256_s9 + $0xe8] sm:$0xff]   ;;  %v4291_v28 = vsub.s32 2, %v7546_v16 }
 0x5b3   : > { %v5582_v31 = vpop.f32.mrb[15].mxu1  ;;  %v4295_v30 = vsub.s32 3, %v7546_v16 }
 0x5b4   : > { %v4237_v33 = vadd.f32 %v5580_v29, %v4197_v26  ;;  %v6380_v26 = vld [vmem:[%s8256_s9 + $0xa0] sm:$0xff]   ;;  %v6382_v29 = vld [vmem:[%s8256_s9 + $0xa8] sm:$0xff]   ;;  %v6383_v31 = vld [vmem:[%s8256_s9 + $0xf0] sm:$0xff]  }
 0x5b6   : > { %v4242_v34 = vmax.f32 %v4237_v33, 0.0  ;;  %v4292_v33 = vrot.slane %v4279_v4, %v4291_v28 }
 0x5b8   : > { %4244 = vst.msk [vmem:[#allocation5] sm:$0x1] %vm4243_vm3, %v4242_v34  ;;  %v4296_v34 = vrot.slane %v4279_v4, %v4295_v30 }
 0x5bf   : > { %v4245_v36 = vld [vmem:[#allocation5] sm:$0xff] }
 0x5c0   : > { %v4246_v37 = vpack.c.bf16 %v4245_v36, %v4245_v36  ;;  %v6385_v36 = vld [vmem:[%s8256_s9 + $0xf8] sm:$0xff]  }
 0x5c2   : > { %4494 = vmatmul.mubr.bf16.vlgmr.msra.gmra.mrb[16].mxu1 %v4246_v37 }
 0x5c3   : > { %4503 = vmatpush1.bf16.msra.mxu1 %v6331_v35  ;;  %4534 = vmatprep.mubr.bf16.mxu1 %v6397_v9  ;;  %v6384_v35 = vld [vmem:[%s8256_s9 + $0xb0] sm:$0xff]  }
 0x5c4   : > { %4504 = vmatprep.subr.bf16.mxu1 %v6336_v38 }
 0x5c7   : > { %4505 = vmatpush1.bf16.msra.mxu1 %v6334_v39 }
 0x5c8   : > { %4506 = vmatprep.subr.bf16.mxu1 %v6339_v14 }
 0x5cb   : > { %4507 = vmatpush1.bf16.msra.mxu1 %v6337_v40  ;;  %v6386_v40 = vld [vmem:[%s8256_s9 + $0xb8] sm:$0xff]  }
 0x5cc   : > { %4508 = vmatprep.subr.bf16.mxu1 %v6342_v41 }
 0x5cf   : > { %4509 = vmatpush1.bf16.msra.mxu1 %v6340_v42 }
 0x5d0   : > { %4510 = vmatprep.subr.bf16.mxu1 %v6345_v43 }
 0x5d3   : > { %4511 = vmatpush1.bf16.msra.mxu1 %v6343_v44 }
 0x5d4   : > { %4512 = vmatprep.subr.bf16.mxu1 %v6348_v45 }
 0x5d7   : > { %4513 = vmatpush1.bf16.msra.mxu1 %v6346_v46 }
 0x5d8   : > { %4514 = vmatprep.subr.bf16.mxu1 %v6351_v47 }
 0x5db   : > { %4515 = vmatpush1.bf16.msra.mxu1 %v6349_v48 }
 0x5dc   : > { %4516 = vmatprep.subr.bf16.mxu1 %v6354_v49 }
 0x5df   : > { %4517 = vmatpush1.bf16.msra.mxu1 %v6352_v50 }
 0x5e0   : > { %5584 = vmatprep.subr.bf16.mxu1 %v6355_v51  ;;  %v5483_v51 = vld [vmem:[%s8257_s10] ss:$0 sm:$0xff] }
 0x5e2   : > { %4535 = vmatmul.mubr.bf16.vlgmr.msra.gmra.mrb[20].mxu1 %v4246_v37 }
 0x5e3   : > { %5585 = vmatpush3.bf16.msra.mxu1 %v6356_v52 }
 0x5e4   : > { %5586 = vmatprep.subr.bf16.mxu1 %v6357_v53 }
 0x5e7   : > { %5587 = vmatpush3.bf16.msra.mxu1 %v6358_v54 }
 0x5e8   : > { %5588 = vmatprep.subr.bf16.mxu1 %v6359_v55 }
 0x5eb   : > { %5589 = vmatpush3.bf16.msra.mxu1 %v6360_v56 }
 0x5ec   : > { %5590 = vmatprep.subr.bf16.mxu1 %v6361_v57 }
 0x5ef   : > { %5591 = vmatpush3.bf16.msra.mxu1 %v6362_v58 }
 0x5f0   : > { %5592 = vmatprep.subr.bf16.mxu1 %v6363_v59 }
 0x5f3   : > { %5593 = vmatpush3.bf16.msra.mxu1 %v6364_v60 }
 0x5f4   : > { %5594 = vmatprep.subr.bf16.mxu1 %v6365_v61 }
 0x5f7   : > { %5595 = vmatpush3.bf16.msra.mxu1 %v6366_v62 }
 0x5f8   : > { %5596 = vmatprep.subr.bf16.mxu1 %v6367_v63 }
 0x5fb   : > { %5597 = vmatpush3.bf16.msra.mxu1 %v6368_v0 }
 0x5fc   : > { %5598 = vmatprep.subr.bf16.mxu1 %v6369_v1 }
 0x5ff   : > { %5599 = vmatpush3.bf16.msra.mxu1 %v6370_v2 }
 0x600   : > { %5606 = vmatprep.subr.bf16.mxu1 %v6371_v3 }
 0x695   : > { %v4495_v7 = vpop.f32.mrb[16].mxu1 }
 0x696   : > { %v4496_v8 = vadd.f32 %v4495_v7, %v4284_v5  ;;  %v4497_v9 = vpop.f32.mrb[17].mxu1 }
 0x697   : > { %v4498_v10 = vadd.f32 %v4497_v9, %v4288_v6  ;;  %v4499_v12 = vpop.f32.mrb[18].mxu1 }
 0x698   : > { %v4543_v13 = vmax.f32 %v4496_v8, 0.0  ;;  %v4500_v15 = vpop.f32.mrb[19].mxu1 }
 0x699   : > { %v4544_v18 = vmax.f32 %v4498_v10, 0.0 }
 0x69a   : > { %v4547_v11 = vpack.c.bf16 %v4543_v13, %v4543_v13 }
 0x69b   : > { %v4548_v20 = vpack.c.bf16 %v4544_v18, %v4544_v18 }
 0x69d   : > { %4846 = vmatprep.mubr.bf16.mxu1 %v4548_v20 }
 0x69e   : > { %4847 = vmatmul.mubr.bf16.vlgmr.msra.gmra.mrb[24].mxu1 %v4547_v11 }
 0x69f   : > { %5607 = vmatpush3.bf16.msra.mxu1 %v6372_v21 }
 0x6a0   : > { %5608 = vmatprep.subr.bf16.mxu1 %v6373_v17 }
 0x6a3   : > { %5609 = vmatpush3.bf16.msra.mxu1 %v6374_v19 }
 0x6a4   : > { %5610 = vmatprep.subr.bf16.mxu1 %v6375_v22 }
 0x6a7   : > { %5611 = vmatpush3.bf16.msra.mxu1 %v6376_v32 }
 0x6a8   : > { %5612 = vmatprep.subr.bf16.mxu1 %v6377_v23 }
 0x6ab   : > { %5613 = vmatpush3.bf16.msra.mxu1 %v6378_v24 }
 0x6ac   : > { %5614 = vmatprep.subr.bf16.mxu1 %v6379_v25 }
 0x6af   : > { %5615 = vmatpush3.bf16.msra.mxu1 %v6380_v26 }
 0x6b0   : > { %5616 = vmatprep.subr.bf16.mxu1 %v6381_v27 }
 0x6b3   : > { %5617 = vmatpush3.bf16.msra.mxu1 %v6382_v29 }
 0x6b4   : > { %5618 = vmatprep.subr.bf16.mxu1 %v6383_v31 }
 0x6b5   : > { %v4536_v37 = vpop.f32.mrb[20].mxu1 }
 0x6b6   : > { %v4537_v38 = vadd.f32 %v4536_v37, %v4292_v33  ;;  %v4538_v16 = vpop.f32.mrb[21].mxu1 }
 0x6b7   : > { %v4539_v39 = vadd.f32 %v4538_v16, %v4296_v34  ;;  %v4540_v14 = vpop.f32.mrb[22].mxu1  ;;  %5619 = vmatpush3.bf16.msra.mxu1 %v6384_v35 }
 0x6b8   : > { %v4545_v41 = vmax.f32 %v4537_v38, 0.0  ;;  %v4541_v42 = vpop.f32.mrb[23].mxu1  ;;  %5620 = vmatprep.subr.bf16.mxu1 %v6385_v36 }
 0x6b9   : > { %v4546_v43 = vmax.f32 %v4539_v39, 0.0 }
 0x6ba   : > { %v4549_v45 = vpack.c.bf16 %v4545_v41, %v4545_v41 }
 0x6bb   : > { %v4550_v44 = vpack.c.bf16 %v4546_v43, %v4546_v43  ;;  %5621 = vmatpush3.bf16.msra.mxu1 %v6386_v40 }
 0x6bd   : > { %4886 = vmatprep.mubr.bf16.mxu1 %v4550_v44 }
 0x6be   : > { %4887 = vmatmul.mubr.bf16.vlgmr.msra.gmra.mrb[28].mxu1 %v4549_v45 }
 0x771   : > { %v5600_v46 = vpop.f32.mrb[24].mxu1 }
 0x772   : > { %v5601_v47 = vpop.f32.mrb[25].mxu1 }
 0x773   : > { %v5602_v48 = vadd.f32 %v5601_v47, %v5600_v46  ;;  %v5603_v49 = vpop.f32.mrb[26].mxu1 }
 0x774   : > { %v5604_v50 = vpop.f32.mrb[27].mxu1 }
 0x775   : > { %v4849_v54 = vadd.f32 %v5602_v48, %v5483_v51 }
 0x791   : > { %v5622_v52 = vpop.f32.mrb[28].mxu1 }
 0x792   : > { %v5623_v53 = vpop.f32.mrb[29].mxu1 }
 0x793   : > { %v5624_v55 = vadd.f32 %v5623_v53, %v5622_v52  ;;  %v5625_v56 = vpop.f32.mrb[30].mxu1 }
 0x794   : > { %v5626_v57 = vpop.f32.mrb[31].mxu1 }
 0x795   : > { %v4889_v58 = vadd.f32 %v5624_v55, %v4849_v54 }
 0x797   : > { %4894 = vst [vmem:[%s384_s13] sm:$0xff] %v4889_v58 }
 0x798 PF: > { %s21_s17 = sadd.s32 1, %s6393_s17  }
 0x799   : > { %p18_p4 = scmp.ge.s32.totalorder %s21_s17, 4  }
 0x79b   :  { %20 = sbr.rel (!%p18_p4) target bundleno = 1 (0x1), region = 205 }

</bundles_post_ra>
